<compile_context>
chip_gen: v6e
topology: v6e:2x2x1
jax: 0.10.0
libtpu: 0.0.40
codegen_flags: <defaults>
</compile_context>

<pallas_src>
import jax
import jax.numpy as jnp
from jax import lax
from jax.experimental import pallas as pl
from jax.experimental.pallas import tpu as pltpu

HIDDEN = 128
EMB_DIM = 2


def _permute_gates(w):
    """Reorder the 4H gate axis (last axis) from PyTorch [i, f, g, o] -> [i, f, o, g]."""
    H = HIDDEN
    if_part = w[..., 0:2 * H]
    g_part = w[..., 2 * H:3 * H]
    o_part = w[..., 3 * H:4 * H]
    return jnp.concatenate([if_part, o_part, g_part], axis=-1)


def lstm_kernel(xproj_ref,            # (T, B, 4H) f32  layer-0 gate pre-activations
                whh0_ref,             # (H, 4H)   bf16  layer-0 recurrent weight
                w1_ref,               # (2H, 4H)  bf16  stacked [Wih1; Whh1]
                b1_ref,               # (1, 4H)   f32
                wfc1_ref, bfc1_ref,   # (H, 128) bf16, (1, 128) f32
                wfc2_ref, bfc2_ref,   # (128, Cpad) bf16, (1, Cpad) f32
                out_ref):             # (B, Cpad) f32
    T = xproj_ref.shape[0]
    B = xproj_ref.shape[1]
    H = HIDDEN

    whh0 = whh0_ref[...]              # loop-invariant bf16 RHS
    w1 = w1_ref[...]                  # loop-invariant bf16 RHS
    # Hoist the bias broadcast once (JAX does not CSE broadcast_in_dim per unrolled iter).
    b1 = jnp.broadcast_to(b1_ref[...], (B, 4 * H))

    def sigmoid(x):
        # One EUP push (tanh) per element instead of exp + reciprocal.
        return 0.5 * (jnp.tanh(0.5 * x) + 1.0)

    def gates_to_hc(g, c_prev):
        # Gate order [i, f, o, g]: one contiguous (B, 3H) sigmoid slice + one tanh slice.
        s = sigmoid(g[:, :3 * H])
        i = s[:, 0 * H:1 * H]
        f = s[:, 1 * H:2 * H]
        o = s[:, 2 * H:3 * H]
        gg = jnp.tanh(g[:, 3 * H:4 * H])
        c_new = f * c_prev + i * gg
        h_new = o * jnp.tanh(c_new)
        return h_new, c_new

    # TODO(synk): stage whh0 / w1 on the MXU across the unrolled steps with
    # pltpu.matmul_push_rhs + matmul_acc_lhs/matmul_pop (and on v7x accumulate
    # h0@wih1 and h1@whh1 into one MRB address instead of the lane concat).
    def step(t, carry):
        h0, c0, h1, c1 = carry
        # Layer 0: input projection pre-folded into xproj -> one bf16 matmul on path.
        g0 = xproj_ref[t] + jnp.dot(h0.astype(jnp.bfloat16), whh0,
                                    preferred_element_type=jnp.float32)
        h0n, c0n = gates_to_hc(g0, c0)
        # Layer 1: fused single K=2H bf16 matmul on the lane-concat of [h0n, h1].
        hcat = jnp.concatenate([h0n, h1], axis=1).astype(jnp.bfloat16)
        g1 = jnp.dot(hcat, w1, preferred_element_type=jnp.float32) + b1
        h1n, c1n = gates_to_hc(g1, c1)
        return (h0n, c0n, h1n, c1n)

    zeros = jnp.zeros((B, H), jnp.float32)
    # Serial dependence -> scheduling gains from unrolling saturate; cap at 8.
    _, _, h1_last, _ = lax.fori_loop(
        0, T, step, (zeros, zeros, zeros, zeros), unroll=min(int(T), 8))

    # Fully-connected head (FC1 padded to 128 lanes -> both matmuls K-/lane-aligned).
    z = jnp.dot(h1_last.astype(jnp.bfloat16), wfc1_ref[...],
                preferred_element_type=jnp.float32)
    z = jnp.maximum(z + bfc1_ref[...], 0.0)
    y = jnp.dot(z.astype(jnp.bfloat16), wfc2_ref[...],
                preferred_element_type=jnp.float32)
    out_ref[...] = (y + bfc2_ref[...]).astype(out_ref.dtype)


def prepare_kernel_params(params):
    """One-time (model-load) fold / reorder / pad of PyTorch-layout params.

    Pure layout plumbing: keep it OUT of the per-forward-call path.
    """
    # Fold embedding @ W_ih0 + b0 -> per-token layer-0 gate pre-activation table.
    proj_table = params["embedding"] @ params["wih0"] + params["b0"]     # (num_emb, 4H)
    proj_table = _permute_gates(proj_table).astype(jnp.float32)

    # Recurrent matmul operands in bf16 (single-pass MXU); biases / carries stay f32.
    whh0 = _permute_gates(params["whh0"]).astype(jnp.bfloat16)
    w1 = _permute_gates(
        jnp.concatenate([params["wih1"], params["whh1"]], axis=0)).astype(jnp.bfloat16)
    b1 = _permute_gates(params["b1"]).astype(jnp.float32)

    # FC head: pad the 32-wide FC1 output to a full 128-lane vreg (zeros are inert)
    # and the class dim to a multiple of 128 for a lane-dense final store.
    Hmid = params["wfc1"].shape[1]
    Hmid_pad = ((Hmid + 127) // 128) * 128
    C = params["wfc2"].shape[1]
    Cpad = ((C + 127) // 128) * 128
    wfc1 = jnp.pad(params["wfc1"], ((0, 0), (0, Hmid_pad - Hmid))).astype(jnp.bfloat16)
    bfc1 = jnp.pad(params["bfc1"], ((0, 0), (0, Hmid_pad - Hmid))).astype(jnp.float32)
    wfc2 = jnp.pad(params["wfc2"],
                   ((0, Hmid_pad - Hmid), (0, Cpad - C))).astype(jnp.bfloat16)
    bfc2 = jnp.pad(params["bfc2"], ((0, 0), (0, Cpad - C))).astype(jnp.float32)

    return {
        "proj_table": proj_table, "whh0": whh0, "w1": w1, "b1": b1,
        "wfc1": wfc1, "bfc1": bfc1, "wfc2": wfc2, "bfc2": bfc2,
        "C": C, "Cpad": Cpad,
    }


def custom_lstm_forward(x_idx, kp, *, batch_tile=256):
    """x_idx: int token indices (B, T); kp: output of prepare_kernel_params.

    batch_tile: MXU-row-sized batch tile for the grid path (256 on v6e/v7x;
    use 128 on v5e's 128-row MXU).
    """
    H = HIDDEN
    C, Cpad = kp["C"], kp["Cpad"]

    x_idx = x_idx.astype(jnp.int32)
    B, T = x_idx.shape

    # Embedding gather fused with the layer-0 input projection (plain-JAX glue).
    # TODO(synk): at large B*T, pass raw ids (scalar prefetch) and gather from a
    # VMEM-resident proj_table in-kernel, or store xproj as bf16, to cut the
    # dominant HBM stream.
    xproj = kp["proj_table"][x_idx]                                    # (B, T, 4H)
    xproj = jnp.transpose(xproj, (1, 0, 2)).astype(jnp.float32)        # (T, B, 4H)

    weights = (kp["whh0"], kp["w1"], kp["b1"],
               kp["wfc1"], kp["bfc1"], kp["wfc2"], kp["bfc2"])

    if B <= batch_tile:
        # Single batch tile: nothing to pipeline -> no grid, untiled VMEM refs
        # (avoids double-buffering every input for a 1-step "pipeline").
        B_pad = ((B + 7) // 8) * 8                                     # fill sublanes
        if B_pad != B:
            xproj = jnp.pad(xproj, ((0, 0), (0, B_pad - B), (0, 0)))
        vmem = pl.BlockSpec(memory_space=pltpu.MemorySpace.VMEM)
        out = pl.pallas_call(
            lstm_kernel,
            out_shape=jax.ShapeDtypeStruct((B_pad, Cpad), jnp.float32),
            in_specs=[vmem] * (1 + len(weights)),
            out_specs=vmem,
            compiler_params=pltpu.CompilerParams(
                vmem_limit_bytes=32 * 1024 * 1024),
        )(xproj, *weights)
    else:
        # Real batch sizes: tile the batch to the MXU row width on a "parallel"
        # grid axis (feeds both v7x TensorCores); constant-index weight specs are
        # not re-DMA'd per tile, and the xproj DMA of tile b+1 overlaps tile b.
        TB = batch_tile
        n_tiles = pl.cdiv(B, TB)
        B_pad = n_tiles * TB
        if B_pad != B:
            xproj = jnp.pad(xproj, ((0, 0), (0, B_pad - B), (0, 0)))

        def _const_spec(shape):
            nd = len(shape)
            return pl.BlockSpec(shape, lambda b, _nd=nd: (0,) * _nd)

        out = pl.pallas_call(
            lstm_kernel,
            out_shape=jax.ShapeDtypeStruct((B_pad, Cpad), jnp.float32),
            grid=(n_tiles,),
            in_specs=[pl.BlockSpec((T, TB, 4 * H), lambda b: (0, b, 0))]
                     + [_const_spec(w.shape) for w in weights],
            out_specs=pl.BlockSpec((TB, Cpad), lambda b: (b, 0)),
            compiler_params=pltpu.CompilerParams(
                dimension_semantics=("parallel",),
                vmem_limit_bytes=32 * 1024 * 1024),
        )(xproj, *weights)

    return out[:B, :C]


def init_params(key, codebook_size):
    H = HIDDEN
    num_emb = codebook_size + 2
    ks = jax.random.split(key, 16)
    inv_h = 1.0 / jnp.sqrt(H)

    def uni(k, shape, bound):
        return jax.random.uniform(k, shape, jnp.float32, -bound, bound)

    params = {}
    # nn.Embedding: N(0, 1)
    params["embedding"] = jax.random.normal(ks[0], (num_emb, EMB_DIM), jnp.float32)

    # LSTM layer 0 (PyTorch stores (4H, in)/(4H, H); pre-transposed to (in, 4H)).
    params["wih0"] = uni(ks[1], (EMB_DIM, 4 * H), inv_h)
    params["whh0"] = uni(ks[2], (H, 4 * H), inv_h)
    params["b0"] = (uni(ks[3], (1, 4 * H), inv_h) + uni(ks[4], (1, 4 * H), inv_h))
    # LSTM layer 1
    params["wih1"] = uni(ks[5], (H, 4 * H), inv_h)
    params["whh1"] = uni(ks[6], (H, 4 * H), inv_h)
    params["b1"] = (uni(ks[7], (1, 4 * H), inv_h) + uni(ks[8], (1, 4 * H), inv_h))

    # fc head: Linear(H, H//4) -> ReLU -> Linear(H//4, codebook_size)
    inv1 = 1.0 / jnp.sqrt(H)
    inv2 = 1.0 / jnp.sqrt(H // 4)
    params["wfc1"] = uni(ks[9], (H, H // 4), inv1)
    params["bfc1"] = uni(ks[10], (1, H // 4), inv1)
    params["wfc2"] = uni(ks[11], (H // 4, codebook_size), inv2)
    params["bfc2"] = uni(ks[12], (1, codebook_size), inv2)
    return params


def reference_forward(x_idx, params):
    """Pure-JAX f32 reference (PyTorch gate order, per-step matmuls)."""
    H = HIDDEN
    emb = params["embedding"][x_idx.astype(jnp.int32)]         # (B, T, 2)
    x_tm = jnp.transpose(emb, (1, 0, 2)).astype(jnp.float32)   # (T, B, 2)
    B = x_tm.shape[1]

    def cell(x_t, h, c, wih, whh, b):
        g = x_t @ wih + h @ whh + b
        i = jax.nn.sigmoid(g[:, 0 * H:1 * H])
        f = jax.nn.sigmoid(g[:, 1 * H:2 * H])
        gg = jnp.tanh(g[:, 2 * H:3 * H])
        o = jax.nn.sigmoid(g[:, 3 * H:4 * H])
        c = f * c + i * gg
        h = o * jnp.tanh(c)
        return h, c

    def scan_fn(carry, x_t):
        h0, c0, h1, c1 = carry
        h0, c0 = cell(x_t, h0, c0, params["wih0"], params["whh0"], params["b0"])
        h1, c1 = cell(h0, h1, c1, params["wih1"], params["whh1"], params["b1"])
        return (h0, c0, h1, c1), None

    z = jnp.zeros((B, H), jnp.float32)
    (h0, c0, h1, c1), _ = lax.scan(scan_fn, (z, z, z, z), x_tm)
    y = jnp.maximum(h1 @ params["wfc1"] + params["bfc1"], 0.0)
    return y @ params["wfc2"] + params["bfc2"]


if __name__ == "__main__":
    codebook_size = 64
    B, T = 2, 8

    key = jax.random.PRNGKey(0)
    k_param, k_data = jax.random.split(key)
    params = init_params(k_param, codebook_size)

    # One-time layout prep at "model load" (hoisted out of the per-call path).
    kp = prepare_kernel_params(params)

    # Token indices in [0, codebook_size + 2)  (module does x.int() -> embedding).
    x_idx = jax.random.randint(k_data, (B, T), 0, codebook_size + 2, jnp.int32)

    out = custom_lstm_forward(x_idx, kp)
    out = jax.block_until_ready(out)

    ref = jax.block_until_ready(reference_forward(x_idx, params))
    assert out.shape == (B, codebook_size), out.shape
    # Tolerance re-baselined for bf16 matmul operands (f32 gate math / carries).
    assert jnp.allclose(out, ref, atol=5e-2, rtol=5e-2), float(jnp.max(jnp.abs(out - ref)))

    print("KERNEL_OK")
</pallas_src>

<mosaic_0001>
module attributes {stable_mosaic.version = 11 : i64} {
  func.func @lstm_kernel(%arg0: memref<8x8x512xf32, #tpu.memory_space<vmem>>, %arg1: memref<128x512xbf16, #tpu.memory_space<vmem>>, %arg2: memref<256x512xbf16, #tpu.memory_space<vmem>>, %arg3: memref<1x512xf32, #tpu.memory_space<vmem>>, %arg4: memref<128x128xbf16, #tpu.memory_space<vmem>>, %arg5: memref<1x128xf32, #tpu.memory_space<vmem>>, %arg6: memref<128x128xbf16, #tpu.memory_space<vmem>>, %arg7: memref<1x128xf32, #tpu.memory_space<vmem>>, %arg8: memref<8x128xf32, #tpu.memory_space<vmem>>) attributes {dimension_semantics = [], scalar_prefetch = 0 : i64, scratch_operands = 0 : i64, tpu.core_type = #tpu.core_type<tc>} {
    %c0 = arith.constant 0 : index
    %c0_0 = arith.constant 0 : index
    %0 = vector.load %arg1[%c0, %c0_0] : memref<128x512xbf16, #tpu.memory_space<vmem>>, vector<128x512xbf16>
    %c0_1 = arith.constant 0 : index
    %c0_2 = arith.constant 0 : index
    %1 = vector.load %arg2[%c0_1, %c0_2] : memref<256x512xbf16, #tpu.memory_space<vmem>>, vector<256x512xbf16>
    %c0_3 = arith.constant 0 : index
    %c0_4 = arith.constant 0 : index
    %2 = vector.load %arg3[%c0_3, %c0_4] : memref<1x512xf32, #tpu.memory_space<vmem>>, vector<1x512xf32>
    %3 = vector.shape_cast %2 : vector<1x512xf32> to vector<1x512xf32>
    %4 = vector.broadcast %3 : vector<1x512xf32> to vector<8x512xf32>
    %cst = arith.constant 0.000000e+00 : f32
    %5 = vector.broadcast %cst : f32 to vector<8x128xf32>
    %c0_i32 = arith.constant 0 : i32
    %6 = arith.index_cast %c0_i32 : i32 to index
    %c0_5 = arith.constant 0 : index
    %c0_6 = arith.constant 0 : index
    %7 = vector.load %arg0[%6, %c0_5, %c0_6] : memref<8x8x512xf32, #tpu.memory_space<vmem>>, vector<1x8x512xf32>
    %8 = vector.shape_cast %7 : vector<1x8x512xf32> to vector<8x512xf32>
    %9 = arith.truncf %5 : vector<8x128xf32> to vector<8x128xbf16>
    %cst_7 = arith.constant dense<0.000000e+00> : vector<8x512xf32>
    %10 = tpu.matmul %9, %0, %cst_7 {dimension_numbers = #tpu.dot_dimension_numbers<[1], [0], [0], [1], [0, 0, 1, 1], [], []>} : vector<8x128xbf16>, vector<128x512xbf16>, vector<8x512xf32> -> vector<8x512xf32>
    %11 = arith.addf %8, %10 : vector<8x512xf32>
    %12 = vector.extract_strided_slice %11 {offsets = [0, 0], sizes = [8, 384], strides = [1, 1]} : vector<8x512xf32> to vector<8x384xf32>
    %cst_8 = arith.constant 5.000000e-01 : f32
    %13 = vector.broadcast %cst_8 : f32 to vector<8x384xf32>
    %14 = arith.mulf %13, %12 : vector<8x384xf32>
    %15 = math.tanh %14 : vector<8x384xf32>
    %cst_9 = arith.constant 1.000000e+00 : f32
    %16 = vector.broadcast %cst_9 : f32 to vector<8x384xf32>
    %17 = arith.addf %15, %16 : vector<8x384xf32>
    %cst_10 = arith.constant 5.000000e-01 : f32
    %18 = vector.broadcast %cst_10 : f32 to vector<8x384xf32>
    %19 = arith.mulf %18, %17 : vector<8x384xf32>
    %20 = vector.extract_strided_slice %19 {offsets = [0, 0], sizes = [8, 128], strides = [1, 1]} : vector<8x384xf32> to vector<8x128xf32>
    %21 = vector.extract_strided_slice %19 {offsets = [0, 128], sizes = [8, 128], strides = [1, 1]} : vector<8x384xf32> to vector<8x128xf32>
    %22 = vector.extract_strided_slice %19 {offsets = [0, 256], sizes = [8, 128], strides = [1, 1]} : vector<8x384xf32> to vector<8x128xf32>
    %23 = vector.extract_strided_slice %11 {offsets = [0, 384], sizes = [8, 128], strides = [1, 1]} : vector<8x512xf32> to vector<8x128xf32>
    %24 = math.tanh %23 : vector<8x128xf32>
    %25 = arith.mulf %21, %5 : vector<8x128xf32>
    %26 = arith.mulf %20, %24 : vector<8x128xf32>
    %27 = arith.addf %25, %26 : vector<8x128xf32>
    %28 = math.tanh %27 : vector<8x128xf32>
    %29 = arith.mulf %22, %28 : vector<8x128xf32>
    %30 = tpu.concatenate %29, %5 in 1 : vector<8x128xf32>, vector<8x128xf32> -> vector<8x256xf32>
    %31 = arith.truncf %30 : vector<8x256xf32> to vector<8x256xbf16>
    %cst_11 = arith.constant dense<0.000000e+00> : vector<8x512xf32>
    %32 = tpu.matmul %31, %1, %cst_11 {dimension_numbers = #tpu.dot_dimension_numbers<[1], [0], [0], [1], [0, 0, 1, 1], [], []>} : vector<8x256xbf16>, vector<256x512xbf16>, vector<8x512xf32> -> vector<8x512xf32>
    %33 = arith.addf %32, %4 : vector<8x512xf32>
    %34 = vector.extract_strided_slice %33 {offsets = [0, 0], sizes = [8, 384], strides = [1, 1]} : vector<8x512xf32> to vector<8x384xf32>
    %cst_12 = arith.constant 5.000000e-01 : f32
    %35 = vector.broadcast %cst_12 : f32 to vector<8x384xf32>
    %36 = arith.mulf %35, %34 : vector<8x384xf32>
    %37 = math.tanh %36 : vector<8x384xf32>
    %cst_13 = arith.constant 1.000000e+00 : f32
    %38 = vector.broadcast %cst_13 : f32 to vector<8x384xf32>
    %39 = arith.addf %37, %38 : vector<8x384xf32>
    %cst_14 = arith.constant 5.000000e-01 : f32
    %40 = vector.broadcast %cst_14 : f32 to vector<8x384xf32>
    %41 = arith.mulf %40, %39 : vector<8x384xf32>
    %42 = vector.extract_strided_slice %41 {offsets = [0, 0], sizes = [8, 128], strides = [1, 1]} : vector<8x384xf32> to vector<8x128xf32>
    %43 = vector.extract_strided_slice %41 {offsets = [0, 128], sizes = [8, 128], strides = [1, 1]} : vector<8x384xf32> to vector<8x128xf32>
    %44 = vector.extract_strided_slice %41 {offsets = [0, 256], sizes = [8, 128], strides = [1, 1]} : vector<8x384xf32> to vector<8x128xf32>
    %45 = vector.extract_strided_slice %33 {offsets = [0, 384], sizes = [8, 128], strides = [1, 1]} : vector<8x512xf32> to vector<8x128xf32>
    %46 = math.tanh %45 : vector<8x128xf32>
    %47 = arith.mulf %43, %5 : vector<8x128xf32>
    %48 = arith.mulf %42, %46 : vector<8x128xf32>
    %49 = arith.addf %47, %48 : vector<8x128xf32>
    %50 = math.tanh %49 : vector<8x128xf32>
    %51 = arith.mulf %44, %50 : vector<8x128xf32>
    %c1_i32 = arith.constant 1 : i32
    %52 = arith.index_cast %c1_i32 : i32 to index
    %c0_15 = arith.constant 0 : index
    %c0_16 = arith.constant 0 : index
    %53 = vector.load %arg0[%52, %c0_15, %c0_16] : memref<8x8x512xf32, #tpu.memory_space<vmem>>, vector<1x8x512xf32>
    %54 = vector.shape_cast %53 : vector<1x8x512xf32> to vector<8x512xf32>
    %55 = arith.truncf %29 : vector<8x128xf32> to vector<8x128xbf16>
    %cst_17 = arith.constant dense<0.000000e+00> : vector<8x512xf32>
    %56 = tpu.matmul %55, %0, %cst_17 {dimension_numbers = #tpu.dot_dimension_numbers<[1], [0], [0], [1], [0, 0, 1, 1], [], []>} : vector<8x128xbf16>, vector<128x512xbf16>, vector<8x512xf32> -> vector<8x512xf32>
    %57 = arith.addf %54, %56 : vector<8x512xf32>
    %58 = vector.extract_strided_slice %57 {offsets = [0, 0], sizes = [8, 384], strides = [1, 1]} : vector<8x512xf32> to vector<8x384xf32>
    %cst_18 = arith.constant 5.000000e-01 : f32
    %59 = vector.broadcast %cst_18 : f32 to vector<8x384xf32>
    %60 = arith.mulf %59, %58 : vector<8x384xf32>
    %61 = math.tanh %60 : vector<8x384xf32>
    %cst_19 = arith.constant 1.000000e+00 : f32
    %62 = vector.broadcast %cst_19 : f32 to vector<8x384xf32>
    %63 = arith.addf %61, %62 : vector<8x384xf32>
    %cst_20 = arith.constant 5.000000e-01 : f32
    %64 = vector.broadcast %cst_20 : f32 to vector<8x384xf32>
    %65 = arith.mulf %64, %63 : vector<8x384xf32>
    %66 = vector.extract_strided_slice %65 {offsets = [0, 0], sizes = [8, 128], strides = [1, 1]} : vector<8x384xf32> to vector<8x128xf32>
    %67 = vector.extract_strided_slice %65 {offsets = [0, 128], sizes = [8, 128], strides = [1, 1]} : vector<8x384xf32> to vector<8x128xf32>
    %68 = vector.extract_strided_slice %65 {offsets = [0, 256], sizes = [8, 128], strides = [1, 1]} : vector<8x384xf32> to vector<8x128xf32>
    %69 = vector.extract_strided_slice %57 {offsets = [0, 384], sizes = [8, 128], strides = [1, 1]} : vector<8x512xf32> to vector<8x128xf32>
    %70 = math.tanh %69 : vector<8x128xf32>
    %71 = arith.mulf %67, %27 : vector<8x128xf32>
    %72 = arith.mulf %66, %70 : vector<8x128xf32>
    %73 = arith.addf %71, %72 : vector<8x128xf32>
    %74 = math.tanh %73 : vector<8x128xf32>
    %75 = arith.mulf %68, %74 : vector<8x128xf32>
    %76 = tpu.concatenate %75, %51 in 1 : vector<8x128xf32>, vector<8x128xf32> -> vector<8x256xf32>
    %77 = arith.truncf %76 : vector<8x256xf32> to vector<8x256xbf16>
    %cst_21 = arith.constant dense<0.000000e+00> : vector<8x512xf32>
    %78 = tpu.matmul %77, %1, %cst_21 {dimension_numbers = #tpu.dot_dimension_numbers<[1], [0], [0], [1], [0, 0, 1, 1], [], []>} : vector<8x256xbf16>, vector<256x512xbf16>, vector<8x512xf32> -> vector<8x512xf32>
    %79 = arith.addf %78, %4 : vector<8x512xf32>
    %80 = vector.extract_strided_slice %79 {offsets = [0, 0], sizes = [8, 384], strides = [1, 1]} : vector<8x512xf32> to vector<8x384xf32>
    %cst_22 = arith.constant 5.000000e-01 : f32
    %81 = vector.broadcast %cst_22 : f32 to vector<8x384xf32>
    %82 = arith.mulf %81, %80 : vector<8x384xf32>
    %83 = math.tanh %82 : vector<8x384xf32>
    %cst_23 = arith.constant 1.000000e+00 : f32
    %84 = vector.broadcast %cst_23 : f32 to vector<8x384xf32>
    %85 = arith.addf %83, %84 : vector<8x384xf32>
    %cst_24 = arith.constant 5.000000e-01 : f32
    %86 = vector.broadcast %cst_24 : f32 to vector<8x384xf32>
    %87 = arith.mulf %86, %85 : vector<8x384xf32>
    %88 = vector.extract_strided_slice %87 {offsets = [0, 0], sizes = [8, 128], strides = [1, 1]} : vector<8x384xf32> to vector<8x128xf32>
    %89 = vector.extract_strided_slice %87 {offsets = [0, 128], sizes = [8, 128], strides = [1, 1]} : vector<8x384xf32> to vector<8x128xf32>
    %90 = vector.extract_strided_slice %87 {offsets = [0, 256], sizes = [8, 128], strides = [1, 1]} : vector<8x384xf32> to vector<8x128xf32>
    %91 = vector.extract_strided_slice %79 {offsets = [0, 384], sizes = [8, 128], strides = [1, 1]} : vector<8x512xf32> to vector<8x128xf32>
    %92 = math.tanh %91 : vector<8x128xf32>
    %93 = arith.mulf %89, %49 : vector<8x128xf32>
    %94 = arith.mulf %88, %92 : vector<8x128xf32>
    %95 = arith.addf %93, %94 : vector<8x128xf32>
    %96 = math.tanh %95 : vector<8x128xf32>
    %97 = arith.mulf %90, %96 : vector<8x128xf32>
    %c2_i32 = arith.constant 2 : i32
    %98 = arith.index_cast %c2_i32 : i32 to index
    %c0_25 = arith.constant 0 : index
    %c0_26 = arith.constant 0 : index
    %99 = vector.load %arg0[%98, %c0_25, %c0_26] : memref<8x8x512xf32, #tpu.memory_space<vmem>>, vector<1x8x512xf32>
    %100 = vector.shape_cast %99 : vector<1x8x512xf32> to vector<8x512xf32>
    %101 = arith.truncf %75 : vector<8x128xf32> to vector<8x128xbf16>
    %cst_27 = arith.constant dense<0.000000e+00> : vector<8x512xf32>
    %102 = tpu.matmul %101, %0, %cst_27 {dimension_numbers = #tpu.dot_dimension_numbers<[1], [0], [0], [1], [0, 0, 1, 1], [], []>} : vector<8x128xbf16>, vector<128x512xbf16>, vector<8x512xf32> -> vector<8x512xf32>
    %103 = arith.addf %100, %102 : vector<8x512xf32>
    %104 = vector.extract_strided_slice %103 {offsets = [0, 0], sizes = [8, 384], strides = [1, 1]} : vector<8x512xf32> to vector<8x384xf32>
    %cst_28 = arith.constant 5.000000e-01 : f32
    %105 = vector.broadcast %cst_28 : f32 to vector<8x384xf32>
    %106 = arith.mulf %105, %104 : vector<8x384xf32>
    %107 = math.tanh %106 : vector<8x384xf32>
    %cst_29 = arith.constant 1.000000e+00 : f32
    %108 = vector.broadcast %cst_29 : f32 to vector<8x384xf32>
    %109 = arith.addf %107, %108 : vector<8x384xf32>
    %cst_30 = arith.constant 5.000000e-01 : f32
    %110 = vector.broadcast %cst_30 : f32 to vector<8x384xf32>
    %111 = arith.mulf %110, %109 : vector<8x384xf32>
    %112 = vector.extract_strided_slice %111 {offsets = [0, 0], sizes = [8, 128], strides = [1, 1]} : vector<8x384xf32> to vector<8x128xf32>
    %113 = vector.extract_strided_slice %111 {offsets = [0, 128], sizes = [8, 128], strides = [1, 1]} : vector<8x384xf32> to vector<8x128xf32>
    %114 = vector.extract_strided_slice %111 {offsets = [0, 256], sizes = [8, 128], strides = [1, 1]} : vector<8x384xf32> to vector<8x128xf32>
    %115 = vector.extract_strided_slice %103 {offsets = [0, 384], sizes = [8, 128], strides = [1, 1]} : vector<8x512xf32> to vector<8x128xf32>
    %116 = math.tanh %115 : vector<8x128xf32>
    %117 = arith.mulf %113, %73 : vector<8x128xf32>
    %118 = arith.mulf %112, %116 : vector<8x128xf32>
    %119 = arith.addf %117, %118 : vector<8x128xf32>
    %120 = math.tanh %119 : vector<8x128xf32>
    %121 = arith.mulf %114, %120 : vector<8x128xf32>
    %122 = tpu.concatenate %121, %97 in 1 : vector<8x128xf32>, vector<8x128xf32> -> vector<8x256xf32>
    %123 = arith.truncf %122 : vector<8x256xf32> to vector<8x256xbf16>
    %cst_31 = arith.constant dense<0.000000e+00> : vector<8x512xf32>
    %124 = tpu.matmul %123, %1, %cst_31 {dimension_numbers = #tpu.dot_dimension_numbers<[1], [0], [0], [1], [0, 0, 1, 1], [], []>} : vector<8x256xbf16>, vector<256x512xbf16>, vector<8x512xf32> -> vector<8x512xf32>
    %125 = arith.addf %124, %4 : vector<8x512xf32>
    %126 = vector.extract_strided_slice %125 {offsets = [0, 0], sizes = [8, 384], strides = [1, 1]} : vector<8x512xf32> to vector<8x384xf32>
    %cst_32 = arith.constant 5.000000e-01 : f32
    %127 = vector.broadcast %cst_32 : f32 to vector<8x384xf32>
    %128 = arith.mulf %127, %126 : vector<8x384xf32>
    %129 = math.tanh %128 : vector<8x384xf32>
    %cst_33 = arith.constant 1.000000e+00 : f32
    %130 = vector.broadcast %cst_33 : f32 to vector<8x384xf32>
    %131 = arith.addf %129, %130 : vector<8x384xf32>
    %cst_34 = arith.constant 5.000000e-01 : f32
    %132 = vector.broadcast %cst_34 : f32 to vector<8x384xf32>
    %133 = arith.mulf %132, %131 : vector<8x384xf32>
    %134 = vector.extract_strided_slice %133 {offsets = [0, 0], sizes = [8, 128], strides = [1, 1]} : vector<8x384xf32> to vector<8x128xf32>
    %135 = vector.extract_strided_slice %133 {offsets = [0, 128], sizes = [8, 128], strides = [1, 1]} : vector<8x384xf32> to vector<8x128xf32>
    %136 = vector.extract_strided_slice %133 {offsets = [0, 256], sizes = [8, 128], strides = [1, 1]} : vector<8x384xf32> to vector<8x128xf32>
    %137 = vector.extract_strided_slice %125 {offsets = [0, 384], sizes = [8, 128], strides = [1, 1]} : vector<8x512xf32> to vector<8x128xf32>
    %138 = math.tanh %137 : vector<8x128xf32>
    %139 = arith.mulf %135, %95 : vector<8x128xf32>
    %140 = arith.mulf %134, %138 : vector<8x128xf32>
    %141 = arith.addf %139, %140 : vector<8x128xf32>
    %142 = math.tanh %141 : vector<8x128xf32>
    %143 = arith.mulf %136, %142 : vector<8x128xf32>
    %c3_i32 = arith.constant 3 : i32
    %144 = arith.index_cast %c3_i32 : i32 to index
    %c0_35 = arith.constant 0 : index
    %c0_36 = arith.constant 0 : index
    %145 = vector.load %arg0[%144, %c0_35, %c0_36] : memref<8x8x512xf32, #tpu.memory_space<vmem>>, vector<1x8x512xf32>
    %146 = vector.shape_cast %145 : vector<1x8x512xf32> to vector<8x512xf32>
    %147 = arith.truncf %121 : vector<8x128xf32> to vector<8x128xbf16>
    %cst_37 = arith.constant dense<0.000000e+00> : vector<8x512xf32>
    %148 = tpu.matmul %147, %0, %cst_37 {dimension_numbers = #tpu.dot_dimension_numbers<[1], [0], [0], [1], [0, 0, 1, 1], [], []>} : vector<8x128xbf16>, vector<128x512xbf16>, vector<8x512xf32> -> vector<8x512xf32>
    %149 = arith.addf %146, %148 : vector<8x512xf32>
    %150 = vector.extract_strided_slice %149 {offsets = [0, 0], sizes = [8, 384], strides = [1, 1]} : vector<8x512xf32> to vector<8x384xf32>
    %cst_38 = arith.constant 5.000000e-01 : f32
    %151 = vector.broadcast %cst_38 : f32 to vector<8x384xf32>
    %152 = arith.mulf %151, %150 : vector<8x384xf32>
    %153 = math.tanh %152 : vector<8x384xf32>
    %cst_39 = arith.constant 1.000000e+00 : f32
    %154 = vector.broadcast %cst_39 : f32 to vector<8x384xf32>
    %155 = arith.addf %153, %154 : vector<8x384xf32>
    %cst_40 = arith.constant 5.000000e-01 : f32
    %156 = vector.broadcast %cst_40 : f32 to vector<8x384xf32>
    %157 = arith.mulf %156, %155 : vector<8x384xf32>
    %158 = vector.extract_strided_slice %157 {offsets = [0, 0], sizes = [8, 128], strides = [1, 1]} : vector<8x384xf32> to vector<8x128xf32>
    %159 = vector.extract_strided_slice %157 {offsets = [0, 128], sizes = [8, 128], strides = [1, 1]} : vector<8x384xf32> to vector<8x128xf32>
    %160 = vector.extract_strided_slice %157 {offsets = [0, 256], sizes = [8, 128], strides = [1, 1]} : vector<8x384xf32> to vector<8x128xf32>
    %161 = vector.extract_strided_slice %149 {offsets = [0, 384], sizes = [8, 128], strides = [1, 1]} : vector<8x512xf32> to vector<8x128xf32>
    %162 = math.tanh %161 : vector<8x128xf32>
    %163 = arith.mulf %159, %119 : vector<8x128xf32>
    %164 = arith.mulf %158, %162 : vector<8x128xf32>
    %165 = arith.addf %163, %164 : vector<8x128xf32>
    %166 = math.tanh %165 : vector<8x128xf32>
    %167 = arith.mulf %160, %166 : vector<8x128xf32>
    %168 = tpu.concatenate %167, %143 in 1 : vector<8x128xf32>, vector<8x128xf32> -> vector<8x256xf32>
    %169 = arith.truncf %168 : vector<8x256xf32> to vector<8x256xbf16>
    %cst_41 = arith.constant dense<0.000000e+00> : vector<8x512xf32>
    %170 = tpu.matmul %169, %1, %cst_41 {dimension_numbers = #tpu.dot_dimension_numbers<[1], [0], [0], [1], [0, 0, 1, 1], [], []>} : vector<8x256xbf16>, vector<256x512xbf16>, vector<8x512xf32> -> vector<8x512xf32>
    %171 = arith.addf %170, %4 : vector<8x512xf32>
    %172 = vector.extract_strided_slice %171 {offsets = [0, 0], sizes = [8, 384], strides = [1, 1]} : vector<8x512xf32> to vector<8x384xf32>
    %cst_42 = arith.constant 5.000000e-01 : f32
    %173 = vector.broadcast %cst_42 : f32 to vector<8x384xf32>
    %174 = arith.mulf %173, %172 : vector<8x384xf32>
    %175 = math.tanh %174 : vector<8x384xf32>
    %cst_43 = arith.constant 1.000000e+00 : f32
    %176 = vector.broadcast %cst_43 : f32 to vector<8x384xf32>
    %177 = arith.addf %175, %176 : vector<8x384xf32>
    %cst_44 = arith.constant 5.000000e-01 : f32
    %178 = vector.broadcast %cst_44 : f32 to vector<8x384xf32>
    %179 = arith.mulf %178, %177 : vector<8x384xf32>
    %180 = vector.extract_strided_slice %179 {offsets = [0, 0], sizes = [8, 128], strides = [1, 1]} : vector<8x384xf32> to vector<8x128xf32>
    %181 = vector.extract_strided_slice %179 {offsets = [0, 128], sizes = [8, 128], strides = [1, 1]} : vector<8x384xf32> to vector<8x128xf32>
    %182 = vector.extract_strided_slice %179 {offsets = [0, 256], sizes = [8, 128], strides = [1, 1]} : vector<8x384xf32> to vector<8x128xf32>
    %183 = vector.extract_strided_slice %171 {offsets = [0, 384], sizes = [8, 128], strides = [1, 1]} : vector<8x512xf32> to vector<8x128xf32>
    %184 = math.tanh %183 : vector<8x128xf32>
    %185 = arith.mulf %181, %141 : vector<8x128xf32>
    %186 = arith.mulf %180, %184 : vector<8x128xf32>
    %187 = arith.addf %185, %186 : vector<8x128xf32>
    %188 = math.tanh %187 : vector<8x128xf32>
    %189 = arith.mulf %182, %188 : vector<8x128xf32>
    %c4_i32 = arith.constant 4 : i32
    %190 = arith.index_cast %c4_i32 : i32 to index
    %c0_45 = arith.constant 0 : index
    %c0_46 = arith.constant 0 : index
    %191 = vector.load %arg0[%190, %c0_45, %c0_46] : memref<8x8x512xf32, #tpu.memory_space<vmem>>, vector<1x8x512xf32>
    %192 = vector.shape_cast %191 : vector<1x8x512xf32> to vector<8x512xf32>
    %193 = arith.truncf %167 : vector<8x128xf32> to vector<8x128xbf16>
    %cst_47 = arith.constant dense<0.000000e+00> : vector<8x512xf32>
    %194 = tpu.matmul %193, %0, %cst_47 {dimension_numbers = #tpu.dot_dimension_numbers<[1], [0], [0], [1], [0, 0, 1, 1], [], []>} : vector<8x128xbf16>, vector<128x512xbf16>, vector<8x512xf32> -> vector<8x512xf32>
    %195 = arith.addf %192, %194 : vector<8x512xf32>
    %196 = vector.extract_strided_slice %195 {offsets = [0, 0], sizes = [8, 384], strides = [1, 1]} : vector<8x512xf32> to vector<8x384xf32>
    %cst_48 = arith.constant 5.000000e-01 : f32
    %197 = vector.broadcast %cst_48 : f32 to vector<8x384xf32>
    %198 = arith.mulf %197, %196 : vector<8x384xf32>
    %199 = math.tanh %198 : vector<8x384xf32>
    %cst_49 = arith.constant 1.000000e+00 : f32
    %200 = vector.broadcast %cst_49 : f32 to vector<8x384xf32>
    %201 = arith.addf %199, %200 : vector<8x384xf32>
    %cst_50 = arith.constant 5.000000e-01 : f32
    %202 = vector.broadcast %cst_50 : f32 to vector<8x384xf32>
    %203 = arith.mulf %202, %201 : vector<8x384xf32>
    %204 = vector.extract_strided_slice %203 {offsets = [0, 0], sizes = [8, 128], strides = [1, 1]} : vector<8x384xf32> to vector<8x128xf32>
    %205 = vector.extract_strided_slice %203 {offsets = [0, 128], sizes = [8, 128], strides = [1, 1]} : vector<8x384xf32> to vector<8x128xf32>
    %206 = vector.extract_strided_slice %203 {offsets = [0, 256], sizes = [8, 128], strides = [1, 1]} : vector<8x384xf32> to vector<8x128xf32>
    %207 = vector.extract_strided_slice %195 {offsets = [0, 384], sizes = [8, 128], strides = [1, 1]} : vector<8x512xf32> to vector<8x128xf32>
    %208 = math.tanh %207 : vector<8x128xf32>
    %209 = arith.mulf %205, %165 : vector<8x128xf32>
    %210 = arith.mulf %204, %208 : vector<8x128xf32>
    %211 = arith.addf %209, %210 : vector<8x128xf32>
    %212 = math.tanh %211 : vector<8x128xf32>
    %213 = arith.mulf %206, %212 : vector<8x128xf32>
    %214 = tpu.concatenate %213, %189 in 1 : vector<8x128xf32>, vector<8x128xf32> -> vector<8x256xf32>
    %215 = arith.truncf %214 : vector<8x256xf32> to vector<8x256xbf16>
    %cst_51 = arith.constant dense<0.000000e+00> : vector<8x512xf32>
    %216 = tpu.matmul %215, %1, %cst_51 {dimension_numbers = #tpu.dot_dimension_numbers<[1], [0], [0], [1], [0, 0, 1, 1], [], []>} : vector<8x256xbf16>, vector<256x512xbf16>, vector<8x512xf32> -> vector<8x512xf32>
    %217 = arith.addf %216, %4 : vector<8x512xf32>
    %218 = vector.extract_strided_slice %217 {offsets = [0, 0], sizes = [8, 384], strides = [1, 1]} : vector<8x512xf32> to vector<8x384xf32>
    %cst_52 = arith.constant 5.000000e-01 : f32
    %219 = vector.broadcast %cst_52 : f32 to vector<8x384xf32>
    %220 = arith.mulf %219, %218 : vector<8x384xf32>
    %221 = math.tanh %220 : vector<8x384xf32>
    %cst_53 = arith.constant 1.000000e+00 : f32
    %222 = vector.broadcast %cst_53 : f32 to vector<8x384xf32>
    %223 = arith.addf %221, %222 : vector<8x384xf32>
    %cst_54 = arith.constant 5.000000e-01 : f32
    %224 = vector.broadcast %cst_54 : f32 to vector<8x384xf32>
    %225 = arith.mulf %224, %223 : vector<8x384xf32>
    %226 = vector.extract_strided_slice %225 {offsets = [0, 0], sizes = [8, 128], strides = [1, 1]} : vector<8x384xf32> to vector<8x128xf32>
    %227 = vector.extract_strided_slice %225 {offsets = [0, 128], sizes = [8, 128], strides = [1, 1]} : vector<8x384xf32> to vector<8x128xf32>
    %228 = vector.extract_strided_slice %225 {offsets = [0, 256], sizes = [8, 128], strides = [1, 1]} : vector<8x384xf32> to vector<8x128xf32>
    %229 = vector.extract_strided_slice %217 {offsets = [0, 384], sizes = [8, 128], strides = [1, 1]} : vector<8x512xf32> to vector<8x128xf32>
    %230 = math.tanh %229 : vector<8x128xf32>
    %231 = arith.mulf %227, %187 : vector<8x128xf32>
    %232 = arith.mulf %226, %230 : vector<8x128xf32>
    %233 = arith.addf %231, %232 : vector<8x128xf32>
    %234 = math.tanh %233 : vector<8x128xf32>
    %235 = arith.mulf %228, %234 : vector<8x128xf32>
    %c5_i32 = arith.constant 5 : i32
    %236 = arith.index_cast %c5_i32 : i32 to index
    %c0_55 = arith.constant 0 : index
    %c0_56 = arith.constant 0 : index
    %237 = vector.load %arg0[%236, %c0_55, %c0_56] : memref<8x8x512xf32, #tpu.memory_space<vmem>>, vector<1x8x512xf32>
    %238 = vector.shape_cast %237 : vector<1x8x512xf32> to vector<8x512xf32>
    %239 = arith.truncf %213 : vector<8x128xf32> to vector<8x128xbf16>
    %cst_57 = arith.constant dense<0.000000e+00> : vector<8x512xf32>
    %240 = tpu.matmul %239, %0, %cst_57 {dimension_numbers = #tpu.dot_dimension_numbers<[1], [0], [0], [1], [0, 0, 1, 1], [], []>} : vector<8x128xbf16>, vector<128x512xbf16>, vector<8x512xf32> -> vector<8x512xf32>
    %241 = arith.addf %238, %240 : vector<8x512xf32>
    %242 = vector.extract_strided_slice %241 {offsets = [0, 0], sizes = [8, 384], strides = [1, 1]} : vector<8x512xf32> to vector<8x384xf32>
    %cst_58 = arith.constant 5.000000e-01 : f32
    %243 = vector.broadcast %cst_58 : f32 to vector<8x384xf32>
    %244 = arith.mulf %243, %242 : vector<8x384xf32>
    %245 = math.tanh %244 : vector<8x384xf32>
    %cst_59 = arith.constant 1.000000e+00 : f32
    %246 = vector.broadcast %cst_59 : f32 to vector<8x384xf32>
    %247 = arith.addf %245, %246 : vector<8x384xf32>
    %cst_60 = arith.constant 5.000000e-01 : f32
    %248 = vector.broadcast %cst_60 : f32 to vector<8x384xf32>
    %249 = arith.mulf %248, %247 : vector<8x384xf32>
    %250 = vector.extract_strided_slice %249 {offsets = [0, 0], sizes = [8, 128], strides = [1, 1]} : vector<8x384xf32> to vector<8x128xf32>
    %251 = vector.extract_strided_slice %249 {offsets = [0, 128], sizes = [8, 128], strides = [1, 1]} : vector<8x384xf32> to vector<8x128xf32>
    %252 = vector.extract_strided_slice %249 {offsets = [0, 256], sizes = [8, 128], strides = [1, 1]} : vector<8x384xf32> to vector<8x128xf32>
    %253 = vector.extract_strided_slice %241 {offsets = [0, 384], sizes = [8, 128], strides = [1, 1]} : vector<8x512xf32> to vector<8x128xf32>
    %254 = math.tanh %253 : vector<8x128xf32>
    %255 = arith.mulf %251, %211 : vector<8x128xf32>
    %256 = arith.mulf %250, %254 : vector<8x128xf32>
    %257 = arith.addf %255, %256 : vector<8x128xf32>
    %258 = math.tanh %257 : vector<8x128xf32>
    %259 = arith.mulf %252, %258 : vector<8x128xf32>
    %260 = tpu.concatenate %259, %235 in 1 : vector<8x128xf32>, vector<8x128xf32> -> vector<8x256xf32>
    %261 = arith.truncf %260 : vector<8x256xf32> to vector<8x256xbf16>
    %cst_61 = arith.constant dense<0.000000e+00> : vector<8x512xf32>
    %262 = tpu.matmul %261, %1, %cst_61 {dimension_numbers = #tpu.dot_dimension_numbers<[1], [0], [0], [1], [0, 0, 1, 1], [], []>} : vector<8x256xbf16>, vector<256x512xbf16>, vector<8x512xf32> -> vector<8x512xf32>
    %263 = arith.addf %262, %4 : vector<8x512xf32>
    %264 = vector.extract_strided_slice %263 {offsets = [0, 0], sizes = [8, 384], strides = [1, 1]} : vector<8x512xf32> to vector<8x384xf32>
    %cst_62 = arith.constant 5.000000e-01 : f32
    %265 = vector.broadcast %cst_62 : f32 to vector<8x384xf32>
    %266 = arith.mulf %265, %264 : vector<8x384xf32>
    %267 = math.tanh %266 : vector<8x384xf32>
    %cst_63 = arith.constant 1.000000e+00 : f32
    %268 = vector.broadcast %cst_63 : f32 to vector<8x384xf32>
    %269 = arith.addf %267, %268 : vector<8x384xf32>
    %cst_64 = arith.constant 5.000000e-01 : f32
    %270 = vector.broadcast %cst_64 : f32 to vector<8x384xf32>
    %271 = arith.mulf %270, %269 : vector<8x384xf32>
    %272 = vector.extract_strided_slice %271 {offsets = [0, 0], sizes = [8, 128], strides = [1, 1]} : vector<8x384xf32> to vector<8x128xf32>
    %273 = vector.extract_strided_slice %271 {offsets = [0, 128], sizes = [8, 128], strides = [1, 1]} : vector<8x384xf32> to vector<8x128xf32>
    %274 = vector.extract_strided_slice %271 {offsets = [0, 256], sizes = [8, 128], strides = [1, 1]} : vector<8x384xf32> to vector<8x128xf32>
    %275 = vector.extract_strided_slice %263 {offsets = [0, 384], sizes = [8, 128], strides = [1, 1]} : vector<8x512xf32> to vector<8x128xf32>
    %276 = math.tanh %275 : vector<8x128xf32>
    %277 = arith.mulf %273, %233 : vector<8x128xf32>
    %278 = arith.mulf %272, %276 : vector<8x128xf32>
    %279 = arith.addf %277, %278 : vector<8x128xf32>
    %280 = math.tanh %279 : vector<8x128xf32>
    %281 = arith.mulf %274, %280 : vector<8x128xf32>
    %c6_i32 = arith.constant 6 : i32
    %282 = arith.index_cast %c6_i32 : i32 to index
    %c0_65 = arith.constant 0 : index
    %c0_66 = arith.constant 0 : index
    %283 = vector.load %arg0[%282, %c0_65, %c0_66] : memref<8x8x512xf32, #tpu.memory_space<vmem>>, vector<1x8x512xf32>
    %284 = vector.shape_cast %283 : vector<1x8x512xf32> to vector<8x512xf32>
    %285 = arith.truncf %259 : vector<8x128xf32> to vector<8x128xbf16>
    %cst_67 = arith.constant dense<0.000000e+00> : vector<8x512xf32>
    %286 = tpu.matmul %285, %0, %cst_67 {dimension_numbers = #tpu.dot_dimension_numbers<[1], [0], [0], [1], [0, 0, 1, 1], [], []>} : vector<8x128xbf16>, vector<128x512xbf16>, vector<8x512xf32> -> vector<8x512xf32>
    %287 = arith.addf %284, %286 : vector<8x512xf32>
    %288 = vector.extract_strided_slice %287 {offsets = [0, 0], sizes = [8, 384], strides = [1, 1]} : vector<8x512xf32> to vector<8x384xf32>
    %cst_68 = arith.constant 5.000000e-01 : f32
    %289 = vector.broadcast %cst_68 : f32 to vector<8x384xf32>
    %290 = arith.mulf %289, %288 : vector<8x384xf32>
    %291 = math.tanh %290 : vector<8x384xf32>
    %cst_69 = arith.constant 1.000000e+00 : f32
    %292 = vector.broadcast %cst_69 : f32 to vector<8x384xf32>
    %293 = arith.addf %291, %292 : vector<8x384xf32>
    %cst_70 = arith.constant 5.000000e-01 : f32
    %294 = vector.broadcast %cst_70 : f32 to vector<8x384xf32>
    %295 = arith.mulf %294, %293 : vector<8x384xf32>
    %296 = vector.extract_strided_slice %295 {offsets = [0, 0], sizes = [8, 128], strides = [1, 1]} : vector<8x384xf32> to vector<8x128xf32>
    %297 = vector.extract_strided_slice %295 {offsets = [0, 128], sizes = [8, 128], strides = [1, 1]} : vector<8x384xf32> to vector<8x128xf32>
    %298 = vector.extract_strided_slice %295 {offsets = [0, 256], sizes = [8, 128], strides = [1, 1]} : vector<8x384xf32> to vector<8x128xf32>
    %299 = vector.extract_strided_slice %287 {offsets = [0, 384], sizes = [8, 128], strides = [1, 1]} : vector<8x512xf32> to vector<8x128xf32>
    %300 = math.tanh %299 : vector<8x128xf32>
    %301 = arith.mulf %297, %257 : vector<8x128xf32>
    %302 = arith.mulf %296, %300 : vector<8x128xf32>
    %303 = arith.addf %301, %302 : vector<8x128xf32>
    %304 = math.tanh %303 : vector<8x128xf32>
    %305 = arith.mulf %298, %304 : vector<8x128xf32>
    %306 = tpu.concatenate %305, %281 in 1 : vector<8x128xf32>, vector<8x128xf32> -> vector<8x256xf32>
    %307 = arith.truncf %306 : vector<8x256xf32> to vector<8x256xbf16>
    %cst_71 = arith.constant dense<0.000000e+00> : vector<8x512xf32>
    %308 = tpu.matmul %307, %1, %cst_71 {dimension_numbers = #tpu.dot_dimension_numbers<[1], [0], [0], [1], [0, 0, 1, 1], [], []>} : vector<8x256xbf16>, vector<256x512xbf16>, vector<8x512xf32> -> vector<8x512xf32>
    %309 = arith.addf %308, %4 : vector<8x512xf32>
    %310 = vector.extract_strided_slice %309 {offsets = [0, 0], sizes = [8, 384], strides = [1, 1]} : vector<8x512xf32> to vector<8x384xf32>
    %cst_72 = arith.constant 5.000000e-01 : f32
    %311 = vector.broadcast %cst_72 : f32 to vector<8x384xf32>
    %312 = arith.mulf %311, %310 : vector<8x384xf32>
    %313 = math.tanh %312 : vector<8x384xf32>
    %cst_73 = arith.constant 1.000000e+00 : f32
    %314 = vector.broadcast %cst_73 : f32 to vector<8x384xf32>
    %315 = arith.addf %313, %314 : vector<8x384xf32>
    %cst_74 = arith.constant 5.000000e-01 : f32
    %316 = vector.broadcast %cst_74 : f32 to vector<8x384xf32>
    %317 = arith.mulf %316, %315 : vector<8x384xf32>
    %318 = vector.extract_strided_slice %317 {offsets = [0, 0], sizes = [8, 128], strides = [1, 1]} : vector<8x384xf32> to vector<8x128xf32>
    %319 = vector.extract_strided_slice %317 {offsets = [0, 128], sizes = [8, 128], strides = [1, 1]} : vector<8x384xf32> to vector<8x128xf32>
    %320 = vector.extract_strided_slice %317 {offsets = [0, 256], sizes = [8, 128], strides = [1, 1]} : vector<8x384xf32> to vector<8x128xf32>
    %321 = vector.extract_strided_slice %309 {offsets = [0, 384], sizes = [8, 128], strides = [1, 1]} : vector<8x512xf32> to vector<8x128xf32>
    %322 = math.tanh %321 : vector<8x128xf32>
    %323 = arith.mulf %319, %279 : vector<8x128xf32>
    %324 = arith.mulf %318, %322 : vector<8x128xf32>
    %325 = arith.addf %323, %324 : vector<8x128xf32>
    %326 = math.tanh %325 : vector<8x128xf32>
    %327 = arith.mulf %320, %326 : vector<8x128xf32>
    %c7_i32 = arith.constant 7 : i32
    %328 = arith.index_cast %c7_i32 : i32 to index
    %c0_75 = arith.constant 0 : index
    %c0_76 = arith.constant 0 : index
    %329 = vector.load %arg0[%328, %c0_75, %c0_76] : memref<8x8x512xf32, #tpu.memory_space<vmem>>, vector<1x8x512xf32>
    %330 = vector.shape_cast %329 : vector<1x8x512xf32> to vector<8x512xf32>
    %331 = arith.truncf %305 : vector<8x128xf32> to vector<8x128xbf16>
    %cst_77 = arith.constant dense<0.000000e+00> : vector<8x512xf32>
    %332 = tpu.matmul %331, %0, %cst_77 {dimension_numbers = #tpu.dot_dimension_numbers<[1], [0], [0], [1], [0, 0, 1, 1], [], []>} : vector<8x128xbf16>, vector<128x512xbf16>, vector<8x512xf32> -> vector<8x512xf32>
    %333 = arith.addf %330, %332 : vector<8x512xf32>
    %334 = vector.extract_strided_slice %333 {offsets = [0, 0], sizes = [8, 384], strides = [1, 1]} : vector<8x512xf32> to vector<8x384xf32>
    %cst_78 = arith.constant 5.000000e-01 : f32
    %335 = vector.broadcast %cst_78 : f32 to vector<8x384xf32>
    %336 = arith.mulf %335, %334 : vector<8x384xf32>
    %337 = math.tanh %336 : vector<8x384xf32>
    %cst_79 = arith.constant 1.000000e+00 : f32
    %338 = vector.broadcast %cst_79 : f32 to vector<8x384xf32>
    %339 = arith.addf %337, %338 : vector<8x384xf32>
    %cst_80 = arith.constant 5.000000e-01 : f32
    %340 = vector.broadcast %cst_80 : f32 to vector<8x384xf32>
    %341 = arith.mulf %340, %339 : vector<8x384xf32>
    %342 = vector.extract_strided_slice %341 {offsets = [0, 0], sizes = [8, 128], strides = [1, 1]} : vector<8x384xf32> to vector<8x128xf32>
    %343 = vector.extract_strided_slice %341 {offsets = [0, 128], sizes = [8, 128], strides = [1, 1]} : vector<8x384xf32> to vector<8x128xf32>
    %344 = vector.extract_strided_slice %341 {offsets = [0, 256], sizes = [8, 128], strides = [1, 1]} : vector<8x384xf32> to vector<8x128xf32>
    %345 = vector.extract_strided_slice %333 {offsets = [0, 384], sizes = [8, 128], strides = [1, 1]} : vector<8x512xf32> to vector<8x128xf32>
    %346 = math.tanh %345 : vector<8x128xf32>
    %347 = arith.mulf %343, %303 : vector<8x128xf32>
    %348 = arith.mulf %342, %346 : vector<8x128xf32>
    %349 = arith.addf %347, %348 : vector<8x128xf32>
    %350 = math.tanh %349 : vector<8x128xf32>
    %351 = arith.mulf %344, %350 : vector<8x128xf32>
    %352 = tpu.concatenate %351, %327 in 1 : vector<8x128xf32>, vector<8x128xf32> -> vector<8x256xf32>
    %353 = arith.truncf %352 : vector<8x256xf32> to vector<8x256xbf16>
    %cst_81 = arith.constant dense<0.000000e+00> : vector<8x512xf32>
    %354 = tpu.matmul %353, %1, %cst_81 {dimension_numbers = #tpu.dot_dimension_numbers<[1], [0], [0], [1], [0, 0, 1, 1], [], []>} : vector<8x256xbf16>, vector<256x512xbf16>, vector<8x512xf32> -> vector<8x512xf32>
    %355 = arith.addf %354, %4 : vector<8x512xf32>
    %356 = vector.extract_strided_slice %355 {offsets = [0, 0], sizes = [8, 384], strides = [1, 1]} : vector<8x512xf32> to vector<8x384xf32>
    %cst_82 = arith.constant 5.000000e-01 : f32
    %357 = vector.broadcast %cst_82 : f32 to vector<8x384xf32>
    %358 = arith.mulf %357, %356 : vector<8x384xf32>
    %359 = math.tanh %358 : vector<8x384xf32>
    %cst_83 = arith.constant 1.000000e+00 : f32
    %360 = vector.broadcast %cst_83 : f32 to vector<8x384xf32>
    %361 = arith.addf %359, %360 : vector<8x384xf32>
    %cst_84 = arith.constant 5.000000e-01 : f32
    %362 = vector.broadcast %cst_84 : f32 to vector<8x384xf32>
    %363 = arith.mulf %362, %361 : vector<8x384xf32>
    %364 = vector.extract_strided_slice %363 {offsets = [0, 0], sizes = [8, 128], strides = [1, 1]} : vector<8x384xf32> to vector<8x128xf32>
    %365 = vector.extract_strided_slice %363 {offsets = [0, 128], sizes = [8, 128], strides = [1, 1]} : vector<8x384xf32> to vector<8x128xf32>
    %366 = vector.extract_strided_slice %363 {offsets = [0, 256], sizes = [8, 128], strides = [1, 1]} : vector<8x384xf32> to vector<8x128xf32>
    %367 = vector.extract_strided_slice %355 {offsets = [0, 384], sizes = [8, 128], strides = [1, 1]} : vector<8x512xf32> to vector<8x128xf32>
    %368 = math.tanh %367 : vector<8x128xf32>
    %369 = arith.mulf %365, %325 : vector<8x128xf32>
    %370 = arith.mulf %364, %368 : vector<8x128xf32>
    %371 = arith.addf %369, %370 : vector<8x128xf32>
    %372 = math.tanh %371 : vector<8x128xf32>
    %373 = arith.mulf %366, %372 : vector<8x128xf32>
    %c8_i32 = arith.constant 8 : i32
    %374 = arith.truncf %373 : vector<8x128xf32> to vector<8x128xbf16>
    %c0_85 = arith.constant 0 : index
    %c0_86 = arith.constant 0 : index
    %375 = vector.load %arg4[%c0_85, %c0_86] : memref<128x128xbf16, #tpu.memory_space<vmem>>, vector<128x128xbf16>
    %cst_87 = arith.constant dense<0.000000e+00> : vector<8x128xf32>
    %376 = tpu.matmul %374, %375, %cst_87 {dimension_numbers = #tpu.dot_dimension_numbers<[1], [0], [0], [1], [0, 0, 1, 1], [], []>} : vector<8x128xbf16>, vector<128x128xbf16>, vector<8x128xf32> -> vector<8x128xf32>
    %c0_88 = arith.constant 0 : index
    %c0_89 = arith.constant 0 : index
    %377 = vector.load %arg5[%c0_88, %c0_89] : memref<1x128xf32, #tpu.memory_space<vmem>>, vector<1x128xf32>
    %378 = vector.broadcast %377 : vector<1x128xf32> to vector<8x128xf32>
    %379 = arith.addf %376, %378 : vector<8x128xf32>
    %cst_90 = arith.constant 0.000000e+00 : f32
    %380 = vector.broadcast %cst_90 : f32 to vector<8x128xf32>
    %381 = arith.maximumf %379, %380 : vector<8x128xf32>
    %382 = arith.truncf %381 : vector<8x128xf32> to vector<8x128xbf16>
    %c0_91 = arith.constant 0 : index
    %c0_92 = arith.constant 0 : index
    %383 = vector.load %arg6[%c0_91, %c0_92] : memref<128x128xbf16, #tpu.memory_space<vmem>>, vector<128x128xbf16>
    %cst_93 = arith.constant dense<0.000000e+00> : vector<8x128xf32>
    %384 = tpu.matmul %382, %383, %cst_93 {dimension_numbers = #tpu.dot_dimension_numbers<[1], [0], [0], [1], [0, 0, 1, 1], [], []>} : vector<8x128xbf16>, vector<128x128xbf16>, vector<8x128xf32> -> vector<8x128xf32>
    %c0_94 = arith.constant 0 : index
    %c0_95 = arith.constant 0 : index
    %385 = vector.load %arg7[%c0_94, %c0_95] : memref<1x128xf32, #tpu.memory_space<vmem>>, vector<1x128xf32>
    %386 = vector.broadcast %385 : vector<1x128xf32> to vector<8x128xf32>
    %387 = arith.addf %384, %386 : vector<8x128xf32>
    %c0_96 = arith.constant 0 : index
    %c0_97 = arith.constant 0 : index
    %388 = vector.load %arg8[%c0_96, %c0_97] : memref<8x128xf32, #tpu.memory_space<vmem>>, vector<8x128xf32>
    tpu.vector_store %arg8[%c0_96, %c0_97], %387 {strides = array<i32>} : memref<8x128xf32, #tpu.memory_space<vmem>>, vector<8x128xf32>,
    return
  }
}

</mosaic_0001>

<bundles_post_ra>
// kernel: tpu_custom_call.1
= control target key start
LH: loop header
LB: loop body
LE: loop exit
PB: predicated region body
PF: predicated region fallthrough
CT: control target
= control target key end

     0   :  { %13 = vsyncpa [#allocation3], 0  ;;  %s5031_s0 = inlined_call_operand.hbm [shape: f32[8,8,512], index: 0, kind: input, shape index: {}]   ;;  %s5032_s1 = inlined_call_operand.hbm [shape: bf16[128,512], index: 1, kind: input, shape index: {}]   ;;  %s5033_s2 = inlined_call_operand.hbm [shape: bf16[256,512], index: 2, kind: input, shape index: {}]   ;;  %s5034_s3 = inlined_call_operand.vmem [shape: f32[1,512], index: 3, kind: input, shape index: {}]   ;;  %s5035_s4 = inlined_call_operand.hbm [shape: bf16[128,128], index: 4, kind: input, shape index: {}]   ;;  %s5036_s5 = inlined_call_operand.vmem [shape: f32[1,128], index: 5, kind: input, shape index: {}]   ;;  %s5037_s6 = inlined_call_operand.hbm [shape: bf16[128,128], index: 6, kind: input, shape index: {}]   ;;  %s5038_s7 = inlined_call_operand.vmem [shape: f32[1,128], index: 7, kind: input, shape index: {}]   ;;  %s5039_s8 = inlined_call_operand.hbm [shape: f32[8,128], index: 8, kind: output, shape index: {}]  }
   0x1   :  { %14 = vsyncpa [#allocation6], 0 }
   0x2   :  { %15 = vsyncpa [#allocation9], 0 }
   0x3   :  { %16 = vsyncpa [#allocation4], 0  ;;  %s3455_s27 = smov [#allocation5]  }
   0x4   :  { %s34_s28 = sshll.u32 %s3455_s27, 4  ;;  %s35_s28 = int_to_ptr.vmem [resolvable:$true] %s34_s28 }
   0x5   :  { %s3335_s29 = scalar_lea.vmem %s35_s28, 4096  ;;  %p3340_p1 = scmp.lt.s32.totalorder %s35_s28, %s35_s28 }
   0x6   :  { %p3336_p0 = scmp.ne.s32.totalorder %s35_s28, %s3335_s29  ;;  %p3341_p2 = scmp.lt.s32.totalorder %s3335_s29, %s3335_s29 }
   0x8   :  { %p3342_p3 = por %p3341_p2, %p3340_p1 }
   0xa   :  { %p3343_p4 = pnand %p3342_p3, %p3336_p0 }
   0xc   :  { %3346 = shalt.err (!%p3343_p4)
}
   0xd   :  { %s3456_s30 = smov 256   ;;  %s3457_s9 = smov 16  }
   0xe   :  { %40 = dma.hbm_to_vmem [thread:$0]  %s5032_s1, 4096, %s35_s28, [#allocation6], %s3456_s30, %s3456_s30, %s3457_s9  }
   0xf   :  { %s3458_s12 = smov [#allocation8]  }
  0x10   :  { %s60_s13 = sshll.u32 %s3458_s12, 4  ;;  %s61_s13 = int_to_ptr.vmem [resolvable:$true] %s60_s13 }
  0x11   :  { %s3355_s14 = scalar_lea.vmem %s61_s13, 1024  ;;  %p3360_p6 = scmp.lt.s32.totalorder %s61_s13, %s61_s13 }
  0x12   :  { %p3356_p5 = scmp.ne.s32.totalorder %s61_s13, %s3355_s14  ;;  %p3361_p7 = scmp.lt.s32.totalorder %s3355_s14, %s3355_s14 }
  0x14   :  { %p3362_p8 = por %p3361_p7, %p3360_p6 }
  0x16   :  { %p3363_p9 = pnand %p3362_p8, %p3356_p5 }
  0x18   :  { %3366 = shalt.err (!%p3363_p9)
}
  0x19   :  { %s3459_s15 = smov 64   ;;  %s3460_s16 = smov 4  }
  0x1a   :  { %66 = dma.hbm_to_vmem [thread:$0]  %s5035_s4, 1024, %s61_s13, [#allocation9], %s3459_s15, %s3459_s15, %s3460_s16  }
  0x1b   :  { %s3461_s1 = smov [#allocation2]  }
  0x1c   :  { %s22_s19 = sshll.u32 %s3461_s1, 4  ;;  %s23_s19 = int_to_ptr.vmem [resolvable:$true] %s22_s19 }
  0x1d   :  { %s3375_s20 = scalar_lea.vmem %s23_s19, 4096  ;;  %p3380_p11 = scmp.lt.s32.totalorder %s23_s19, %s23_s19 }
  0x1e   :  { %p3376_p10 = scmp.ne.s32.totalorder %s23_s19, %s3375_s20  ;;  %p3381_p12 = scmp.lt.s32.totalorder %s3375_s20, %s3375_s20 }
  0x20   :  { %p3382_p13 = por %p3381_p12, %p3380_p11 }
  0x22   :  { %p3383_p0 = pnand %p3382_p13, %p3376_p10 }
  0x24   :  { %3386 = shalt.err (!%p3383_p0)
}
  0x25   :  { %s3462_s21 = smov 512   ;;  %s3463_s22 = smov 32  }
  0x26   :  { %28 = dma.hbm_to_vmem [thread:$0]  %s5031_s0, 4096, %s23_s19, [#allocation3], %s3462_s21, %s3462_s21, %s3463_s22  }
  0x27   :  { %s3464_s25 = smov [#allocation7]   ;;  %s3465_s4 = smov [#allocation10]  }
  0x28   :  { %s46_s26 = sshll.u32 %s3464_s25, 4  ;;  %s74_s27 = sshll.u32 %s3465_s4, 4  ;;  %s47_s26 = int_to_ptr.vmem [resolvable:$true] %s46_s26  ;;  %s75_s27 = int_to_ptr.vmem [resolvable:$true] %s74_s27 }
  0x29   :  { %s3395_s28 = scalar_lea.vmem %s47_s26, 8192  ;;  %p3400_p2 = scmp.lt.s32.totalorder %s47_s26, %s47_s26 }
  0x2a   :  { %p3396_p1 = scmp.ne.s32.totalorder %s47_s26, %s3395_s28  ;;  %p3401_p3 = scmp.lt.s32.totalorder %s3395_s28, %s3395_s28 }
  0x2c   :  { %p3402_p4 = por %p3401_p3, %p3400_p2 }
  0x2e   :  { %p3403_p5 = pnand %p3402_p4, %p3396_p1 }
  0x30   :  { %3406 = shalt.err (!%p3403_p5)
}
  0x31   :  { %52 = dma.hbm_to_vmem [thread:$0]  %s5033_s2, 8192, %s47_s26, [#allocation6], %s3456_s30, %s3456_s30, %s3457_s9  }
  0x32   :  { %s3415_s0 = scalar_lea.vmem %s75_s27, 1024  ;;  %p3420_p7 = scmp.lt.s32.totalorder %s75_s27, %s75_s27 }
  0x33   :  { %p3416_p6 = scmp.ne.s32.totalorder %s75_s27, %s3415_s0  ;;  %p3421_p8 = scmp.lt.s32.totalorder %s3415_s0, %s3415_s0 }
  0x35   :  { %p3422_p9 = por %p3421_p8, %p3420_p7 }
  0x37   :  { %p3423_p10 = pnand %p3422_p9, %p3416_p6 }
  0x39   :  { %3426 = shalt.err (!%p3423_p10)
}
  0x3a   :  { %80 = dma.hbm_to_vmem [thread:$0]  %s5037_s6, 1024, %s75_s27, [#allocation9], %s3459_s15, %s3459_s15, %s3460_s16  }
  0x3b   :  { %3447 = dma.done.wait [#allocation3], 4096  }
  0x3c   :  { %3448 = vsyncadd [#allocation3], 4294963200 }
  0x3d   :  { %3449 = dma.done.wait [#allocation6], 12288  }
  0x3e   :  { %3450 = vsyncadd [#allocation6], 4294955008 }
  0x3f   :  { %3451 = dma.done.wait [#allocation9], 2048  }
  0x40   :  { %3452 = vsyncadd [#allocation9], 4294965248  ;;  %v5040_v0 = vmov 0   ;;  %v3545_v1 = vld [vmem:[#allocation5 + $0xe4] ss:$16 sps:$4 sm:$0xff]   ;;  %vm3469_vm0 = vmmov 0  }
  0x41   :  { %413 = vmatprep.mubr.bf16.mxu0 %v5040_v0  ;;  %454 = vmatprep.mubr.bf16.mxu1 %v5040_v0  ;;  %5332 = vst [vmem:[#allocation16_spill] sm:$0xff] %v3545_v1  ;;  %v3547_v2 = vld [vmem:[#allocation5 + $0xec] ss:$16 sps:$4 sm:$0xff]   ;;  %v3550_v3 = vld [vmem:[#allocation5 + $0xe0] ss:$16 sps:$4 sm:$0xff]   ;;  %s3470_s14 = smov [#allocation11]  }
  0x42   :  { %5333 = vst [vmem:[#allocation17_spill] sm:$0xff] %v3547_v2  ;;  %381 = vmatprep.subr.bf16.mxu0 %v3545_v1  ;;  %v3552_v4 = vld [vmem:[#allocation5 + $0xe8] ss:$16 sps:$4 sm:$0xff]   ;;  %422 = vmatprep.subr.bf16.mxu1 %v3547_v2  ;;  %v3555_v5 = vld [vmem:[#allocation5 + $0xc4] ss:$16 sps:$4 sm:$0xff]   ;;  %s2616_s15 = sshll.u32 %s3470_s14, 4  ;;  %s2617_s15 = int_to_ptr.vmem [resolvable:$true] %s2616_s15 }
  0x43   :  { %382 = vmatpush1.bf16.msra.mxu0 %v3550_v3  ;;  %423 = vmatpush1.bf16.msra.mxu1 %v3552_v4  ;;  %v3559_v6 = vld [vmem:[#allocation5 + $0xcc] ss:$16 sps:$4 sm:$0xff]   ;;  %v3561_v7 = vld [vmem:[#allocation5 + $0xc0] ss:$16 sps:$4 sm:$0xff]   ;;  %v3564_v8 = vld [vmem:[#allocation5 + $0xc8] ss:$16 sps:$4 sm:$0xff]   ;;  %p3432_p12 = scmp.lt.s32.totalorder %s2617_s15, %s2617_s15 }
  0x44   :  { %383 = vmatprep.subr.bf16.mxu0 %v3555_v5  ;;  %424 = vmatprep.subr.bf16.mxu1 %v3559_v6  ;;  %v3567_v9 = vld [vmem:[#allocation5 + $0xa4] ss:$16 sps:$4 sm:$0xff]   ;;  %v3569_v10 = vld [vmem:[#allocation5 + $0xac] ss:$16 sps:$4 sm:$0xff]   ;;  %v3571_v11 = vld [vmem:[#allocation5 + $0xa0] ss:$16 sps:$4 sm:$0xff]  }
  0x45   :  { %v3573_v12 = vld [vmem:[#allocation5 + $0xa8] ss:$16 sps:$4 sm:$0xff]   ;;  %v3577_v13 = vld [vmem:[#allocation5 + $0x84] ss:$16 sps:$4 sm:$0xff]   ;;  %v3581_v14 = vld [vmem:[#allocation5 + $0x8c] ss:$16 sps:$4 sm:$0xff]  }
  0x46   :  { %v3583_v15 = vld [vmem:[#allocation5 + $0x80] ss:$16 sps:$4 sm:$0xff]   ;;  %v3587_v16 = vld [vmem:[#allocation5 + $0x88] ss:$16 sps:$4 sm:$0xff]   ;;  %v3589_v17 = vld [vmem:[#allocation5 + $0x64] ss:$16 sps:$4 sm:$0xff]  }
  0x47   :  { %384 = vmatpush1.bf16.msra.mxu0 %v3561_v7  ;;  %425 = vmatpush1.bf16.msra.mxu1 %v3564_v8  ;;  %v3593_v18 = vld [vmem:[#allocation5 + $0x6c] ss:$16 sps:$4 sm:$0xff]   ;;  %v3595_v19 = vld [vmem:[#allocation5 + $0x60] ss:$16 sps:$4 sm:$0xff]   ;;  %v3597_v20 = vld [vmem:[#allocation5 + $0x68] ss:$16 sps:$4 sm:$0xff]  }
  0x48   :  { %385 = vmatprep.subr.bf16.mxu0 %v3567_v9  ;;  %426 = vmatprep.subr.bf16.mxu1 %v3569_v10  ;;  %v3601_v21 = vld [vmem:[#allocation5 + $0x44] ss:$16 sps:$4 sm:$0xff]   ;;  %v3605_v22 = vld [vmem:[#allocation5 + $0x4c] ss:$16 sps:$4 sm:$0xff]   ;;  %v3607_v23 = vld [vmem:[#allocation5 + $0x40] ss:$16 sps:$4 sm:$0xff]  }
  0x49   :  { %v3611_v24 = vld [vmem:[#allocation5 + $0x48] ss:$16 sps:$4 sm:$0xff]   ;;  %v3613_v25 = vld [vmem:[#allocation5 + $0x24] ss:$16 sps:$4 sm:$0xff]   ;;  %v3617_v26 = vld [vmem:[#allocation5 + $0x2c] ss:$16 sps:$4 sm:$0xff]  }
  0x4a   :  { %v3619_v27 = vld [vmem:[#allocation5 + $0x20] ss:$16 sps:$4 sm:$0xff]   ;;  %v3621_v28 = vld [vmem:[#allocation5 + $0x28] ss:$16 sps:$4 sm:$0xff]   ;;  %v3625_v29 = vld [vmem:[#allocation5 + $0x4] ss:$16 sps:$4 sm:$0xff]  }
  0x4b   :  { %386 = vmatpush1.bf16.msra.mxu0 %v3571_v11  ;;  %427 = vmatpush1.bf16.msra.mxu1 %v3573_v12  ;;  %v3629_v30 = vld [vmem:[#allocation5 + $0xc] ss:$16 sps:$4 sm:$0xff]   ;;  %v3631_v31 = vld [vmem:[#allocation5] ss:$16 sps:$4 sm:$0xff]   ;;  %v3635_v32 = vld [vmem:[#allocation5 + $0x8] ss:$16 sps:$4 sm:$0xff]  }
  0x4c   :  { %387 = vmatprep.subr.bf16.mxu0 %v3577_v13  ;;  %428 = vmatprep.subr.bf16.mxu1 %v3581_v14  ;;  %v3637_v33 = vld [vmem:[#allocation7 + $0xe4] ss:$16 sps:$4 sm:$0xff]   ;;  %v3641_v34 = vld [vmem:[#allocation7 + $0xec] ss:$16 sps:$4 sm:$0xff]   ;;  %v3643_v35 = vld [vmem:[#allocation7 + $0xe0] ss:$16 sps:$4 sm:$0xff]  }
  0x4d   :  { %v3645_v36 = vld [vmem:[#allocation7 + $0xe8] ss:$16 sps:$4 sm:$0xff]   ;;  %v3649_v37 = vld [vmem:[#allocation7 + $0xc4] ss:$16 sps:$4 sm:$0xff]   ;;  %v3653_v38 = vld [vmem:[#allocation7 + $0xcc] ss:$16 sps:$4 sm:$0xff]  }
  0x4e   :  { %v3655_v39 = vld [vmem:[#allocation7 + $0xc0] ss:$16 sps:$4 sm:$0xff]   ;;  %v3657_v40 = vld [vmem:[#allocation7 + $0xc8] ss:$16 sps:$4 sm:$0xff]   ;;  %v3661_v41 = vld [vmem:[#allocation7 + $0xa4] ss:$16 sps:$4 sm:$0xff]  }
  0x4f   :  { %388 = vmatpush1.bf16.msra.mxu0 %v3583_v15  ;;  %429 = vmatpush1.bf16.msra.mxu1 %v3587_v16  ;;  %v3663_v42 = vld [vmem:[#allocation7 + $0xac] ss:$16 sps:$4 sm:$0xff]   ;;  %v3669_v43 = vld [vmem:[#allocation7 + $0xa0] ss:$16 sps:$4 sm:$0xff]   ;;  %v3671_v44 = vld [vmem:[#allocation7 + $0xa8] ss:$16 sps:$4 sm:$0xff]  }
  0x50   :  { %389 = vmatprep.subr.bf16.mxu0 %v3589_v17  ;;  %430 = vmatprep.subr.bf16.mxu1 %v3593_v18  ;;  %v3673_v45 = vld [vmem:[#allocation7 + $0x84] ss:$16 sps:$4 sm:$0xff]   ;;  %v3675_v46 = vld [vmem:[#allocation7 + $0x8c] ss:$16 sps:$4 sm:$0xff]   ;;  %v3681_v47 = vld [vmem:[#allocation7 + $0x80] ss:$16 sps:$4 sm:$0xff]  }
  0x51   :  { %5334 = vst [vmem:[#allocation18_spill] sm:$0xff] %v3673_v45  ;;  %5335 = vst [vmem:[#allocation19_spill] sm:$0xff] %v3675_v46  ;;  %v3683_v48 = vld [vmem:[#allocation7 + $0x88] ss:$16 sps:$4 sm:$0xff]   ;;  %v3685_v49 = vld [vmem:[#allocation7 + $0x64] ss:$16 sps:$4 sm:$0xff]  }
  0x52   :  { %5336 = vst [vmem:[#allocation20_spill] sm:$0xff] %v3681_v47  ;;  %5337 = vst [vmem:[#allocation21_spill] sm:$0xff] %v3683_v48  ;;  %v3687_v50 = vld [vmem:[#allocation7 + $0x6c] ss:$16 sps:$4 sm:$0xff]   ;;  %v3693_v51 = vld [vmem:[#allocation7 + $0x60] ss:$16 sps:$4 sm:$0xff]  }
  0x53   :  { %390 = vmatpush1.bf16.msra.mxu0 %v3595_v19  ;;  %431 = vmatpush1.bf16.msra.mxu1 %v3597_v20  ;;  %5338 = vst [vmem:[#allocation22_spill] sm:$0xff] %v3685_v49  ;;  %5339 = vst [vmem:[#allocation23_spill] sm:$0xff] %v3687_v50  ;;  %v3695_v52 = vld [vmem:[#allocation7 + $0x68] ss:$16 sps:$4 sm:$0xff]   ;;  %v3703_v53 = vld [vmem:[#allocation7 + $0x44] ss:$16 sps:$4 sm:$0xff]  }
  0x54   :  { %391 = vmatprep.subr.bf16.mxu0 %v3601_v21  ;;  %432 = vmatprep.subr.bf16.mxu1 %v3605_v22  ;;  %5340 = vst [vmem:[#allocation24_spill] sm:$0xff] %v3693_v51  ;;  %5341 = vst [vmem:[#allocation25_spill] sm:$0xff] %v3695_v52  ;;  %v3705_v54 = vld [vmem:[#allocation7 + $0x4c] ss:$16 sps:$4 sm:$0xff]   ;;  %v3707_v55 = vld [vmem:[#allocation7 + $0x40] ss:$16 sps:$4 sm:$0xff]  }
  0x55   :  { %5342 = vst [vmem:[#allocation26_spill] sm:$0xff] %v3703_v53  ;;  %5343 = vst [vmem:[#allocation27_spill] sm:$0xff] %v3705_v54  ;;  %v3709_v56 = vld [vmem:[#allocation7 + $0x48] ss:$16 sps:$4 sm:$0xff]   ;;  %v3715_v57 = vld [vmem:[#allocation7 + $0x24] ss:$16 sps:$4 sm:$0xff]  }
  0x56   :  { %5344 = vst [vmem:[#allocation28_spill] sm:$0xff] %v3707_v55  ;;  %5345 = vst [vmem:[#allocation29_spill] sm:$0xff] %v3709_v56  ;;  %v3717_v58 = vld [vmem:[#allocation7 + $0x2c] ss:$16 sps:$4 sm:$0xff]   ;;  %v3719_v59 = vld [vmem:[#allocation7 + $0x20] ss:$16 sps:$4 sm:$0xff]  }
  0x57   :  { %392 = vmatpush1.bf16.msra.mxu0 %v3607_v23  ;;  %433 = vmatpush1.bf16.msra.mxu1 %v3611_v24  ;;  %5346 = vst [vmem:[#allocation30_spill] sm:$0xff] %v3715_v57  ;;  %5347 = vst [vmem:[#allocation31_spill] sm:$0xff] %v3717_v58  ;;  %v3721_v60 = vld [vmem:[#allocation7 + $0x28] ss:$16 sps:$4 sm:$0xff]   ;;  %v3727_v61 = vld [vmem:[#allocation7 + $0x4] ss:$16 sps:$4 sm:$0xff]  }
  0x58   :  { %393 = vmatprep.subr.bf16.mxu0 %v3613_v25  ;;  %434 = vmatprep.subr.bf16.mxu1 %v3617_v26  ;;  %5348 = vst [vmem:[#allocation32_spill] sm:$0xff] %v3719_v59  ;;  %5349 = vst [vmem:[#allocation33_spill] sm:$0xff] %v3721_v60  ;;  %v3729_v62 = vld [vmem:[#allocation7 + $0xc] ss:$16 sps:$4 sm:$0xff]   ;;  %v3731_v63 = vld [vmem:[#allocation7] ss:$16 sps:$4 sm:$0xff]  }
  0x59   :  { %5350 = vst [vmem:[#allocation34_spill] sm:$0xff] %v3727_v61  ;;  %5351 = vst [vmem:[#allocation35_spill] sm:$0xff] %v3729_v62 }
  0x5a   :  { %5352 = vst [vmem:[#allocation36_spill] sm:$0xff] %v3731_v63 }
  0x5b   :  { %394 = vmatpush1.bf16.msra.mxu0 %v3619_v27  ;;  %435 = vmatpush1.bf16.msra.mxu1 %v3621_v28 }
  0x5c   :  { %395 = vmatprep.subr.bf16.mxu0 %v3625_v29  ;;  %436 = vmatprep.subr.bf16.mxu1 %v3629_v30 }
  0x5f   :  { %396 = vmatpush1.bf16.msra.mxu0 %v3631_v31  ;;  %437 = vmatpush1.bf16.msra.mxu1 %v3635_v32 }
  0x60   :  { %807 = vmatprep.subr.bf16.mxu0 %v3637_v33  ;;  %848 = vmatprep.subr.bf16.mxu1 %v3641_v34 }
  0x62   :  { %414 = vmatmul.mubr.bf16.vlgmr.msra.gmra.mxu0 %v5040_v0  ;;  %455 = vmatmul.mubr.bf16.vlgmr.msra.gmra.mxu1 %v5040_v0  ;;  %v3733_v0 = vld [vmem:[#allocation7 + $0x8] ss:$16 sps:$4 sm:$0xff]  }
  0x63   :  { %808 = vmatpush1.bf16.msra.mxu0 %v3643_v35  ;;  %849 = vmatpush1.bf16.msra.mxu1 %v3645_v36  ;;  %5353 = vst [vmem:[#allocation37_spill] sm:$0xff] %v3733_v0 }
  0x64   :  { %809 = vmatprep.subr.bf16.mxu0 %v3649_v37  ;;  %850 = vmatprep.subr.bf16.mxu1 %v3653_v38 }
  0x67   :  { %810 = vmatpush1.bf16.msra.mxu0 %v3655_v39  ;;  %851 = vmatpush1.bf16.msra.mxu1 %v3657_v40 }
  0x68   :  { %811 = vmatprep.subr.bf16.mxu0 %v3661_v41  ;;  %852 = vmatprep.subr.bf16.mxu1 %v3663_v42 }
  0x6b   :  { %812 = vmatpush1.bf16.msra.mxu0 %v3669_v43  ;;  %853 = vmatpush1.bf16.msra.mxu1 %v3671_v44 }
  0x6c   :  { %813 = vmatprep.subr.bf16.mxu0 %v3673_v45  ;;  %854 = vmatprep.subr.bf16.mxu1 %v3675_v46 }
  0x6f   :  { %814 = vmatpush1.bf16.msra.mxu0 %v3681_v47  ;;  %855 = vmatpush1.bf16.msra.mxu1 %v3683_v48 }
  0x70   :  { %815 = vmatprep.subr.bf16.mxu0 %v3685_v49  ;;  %856 = vmatprep.subr.bf16.mxu1 %v3687_v50 }
  0x73   :  { %816 = vmatpush1.bf16.msra.mxu0 %v3693_v51  ;;  %857 = vmatpush1.bf16.msra.mxu1 %v3695_v52 }
  0x74   :  { %817 = vmatprep.subr.bf16.mxu0 %v3703_v53  ;;  %858 = vmatprep.subr.bf16.mxu1 %v3705_v54  ;;  %v220_v54 = vld [vmem:[#allocation2 + $0x18] sm:$0xff] }
  0x77   :  { %818 = vmatpush1.bf16.msra.mxu0 %v3707_v55  ;;  %859 = vmatpush1.bf16.msra.mxu1 %v3709_v56  ;;  %v3795_v56 = vld [vmem:[#allocation7 + $0x144] ss:$16 sps:$4 sm:$0xff]   ;;  %v3811_v55 = vld [vmem:[#allocation7 + $0x12c] ss:$16 sps:$4 sm:$0xff]  }
  0x78   :  { %819 = vmatprep.subr.bf16.mxu0 %v3715_v57  ;;  %860 = vmatprep.subr.bf16.mxu1 %v3717_v58  ;;  %v3739_v58 = vld [vmem:[#allocation7 + $0x1e4] ss:$16 sps:$4 sm:$0xff]   ;;  %v3745_v57 = vld [vmem:[#allocation7 + $0x1e8] ss:$16 sps:$4 sm:$0xff]   ;;  %5374 = vst [vmem:[#allocation58_spill] sm:$0xff] %v3795_v56  ;;  %5379 = vst [vmem:[#allocation63_spill] sm:$0xff] %v3811_v55 }
  0x79   :  { %5354 = vst [vmem:[#allocation38_spill] sm:$0xff] %v3739_v58  ;;  %5357 = vst [vmem:[#allocation41_spill] sm:$0xff] %v3745_v57 }
  0x7b   :  { %820 = vmatpush1.bf16.msra.mxu0 %v3719_v59  ;;  %861 = vmatpush1.bf16.msra.mxu1 %v3721_v60  ;;  %v3741_v59 = vld [vmem:[#allocation7 + $0x1ec] ss:$16 sps:$4 sm:$0xff]   ;;  %v3743_v60 = vld [vmem:[#allocation7 + $0x1e0] ss:$16 sps:$4 sm:$0xff]  }
  0x7c   :  { %821 = vmatprep.subr.bf16.mxu0 %v3727_v61  ;;  %862 = vmatprep.subr.bf16.mxu1 %v3729_v62  ;;  %5355 = vst [vmem:[#allocation39_spill] sm:$0xff] %v3741_v59  ;;  %5356 = vst [vmem:[#allocation40_spill] sm:$0xff] %v3743_v60  ;;  %v3751_v62 = vld [vmem:[#allocation7 + $0x1c4] ss:$16 sps:$4 sm:$0xff]   ;;  %v3757_v61 = vld [vmem:[#allocation7 + $0x1c8] ss:$16 sps:$4 sm:$0xff]  }
  0x7d   :  { %5358 = vst [vmem:[#allocation42_spill] sm:$0xff] %v3751_v62  ;;  %5361 = vst [vmem:[#allocation45_spill] sm:$0xff] %v3757_v61 }
  0x7f   :  { %822 = vmatpush1.bf16.msra.mxu0 %v3731_v63  ;;  %863 = vmatpush1.bf16.msra.mxu1 %v3733_v0  ;;  %v3753_v63 = vld [vmem:[#allocation7 + $0x1cc] ss:$16 sps:$4 sm:$0xff]   ;;  %v3755_v0 = vld [vmem:[#allocation7 + $0x1c0] ss:$16 sps:$4 sm:$0xff]  }
  0x80   :  { %823 = vmatprep.subr.bf16.mxu0 %v3739_v58  ;;  %864 = vmatprep.subr.bf16.mxu1 %v3741_v59  ;;  %5359 = vst [vmem:[#allocation43_spill] sm:$0xff] %v3753_v63  ;;  %5360 = vst [vmem:[#allocation44_spill] sm:$0xff] %v3755_v0  ;;  %v3763_v59 = vld [vmem:[#allocation7 + $0x1a4] ss:$16 sps:$4 sm:$0xff]   ;;  %v3769_v58 = vld [vmem:[#allocation7 + $0x1a8] ss:$16 sps:$4 sm:$0xff]  }
  0x81   :  { %5362 = vst [vmem:[#allocation46_spill] sm:$0xff] %v3763_v59  ;;  %5365 = vst [vmem:[#allocation49_spill] sm:$0xff] %v3769_v58 }
  0x83   :  { %824 = vmatpush2.bf16.msra.mxu0 %v3743_v60  ;;  %865 = vmatpush2.bf16.msra.mxu1 %v3745_v57  ;;  %v3765_v60 = vld [vmem:[#allocation7 + $0x1ac] ss:$16 sps:$4 sm:$0xff]   ;;  %v3767_v57 = vld [vmem:[#allocation7 + $0x1a0] ss:$16 sps:$4 sm:$0xff]  }
  0x84   :  { %825 = vmatprep.subr.bf16.mxu0 %v3751_v62  ;;  %866 = vmatprep.subr.bf16.mxu1 %v3753_v63  ;;  %5363 = vst [vmem:[#allocation47_spill] sm:$0xff] %v3765_v60  ;;  %5364 = vst [vmem:[#allocation48_spill] sm:$0xff] %v3767_v57  ;;  %v3775_v63 = vld [vmem:[#allocation7 + $0x184] ss:$16 sps:$4 sm:$0xff]   ;;  %v3781_v62 = vld [vmem:[#allocation7 + $0x188] ss:$16 sps:$4 sm:$0xff]  }
  0x85   :  { %5366 = vst [vmem:[#allocation50_spill] sm:$0xff] %v3775_v63  ;;  %5369 = vst [vmem:[#allocation53_spill] sm:$0xff] %v3781_v62 }
  0x87   :  { %826 = vmatpush2.bf16.msra.mxu0 %v3755_v0  ;;  %867 = vmatpush2.bf16.msra.mxu1 %v3757_v61  ;;  %v3777_v0 = vld [vmem:[#allocation7 + $0x18c] ss:$16 sps:$4 sm:$0xff]   ;;  %v3779_v61 = vld [vmem:[#allocation7 + $0x180] ss:$16 sps:$4 sm:$0xff]  }
  0x88   :  { %827 = vmatprep.subr.bf16.mxu0 %v3763_v59  ;;  %868 = vmatprep.subr.bf16.mxu1 %v3765_v60  ;;  %5367 = vst [vmem:[#allocation51_spill] sm:$0xff] %v3777_v0  ;;  %5368 = vst [vmem:[#allocation52_spill] sm:$0xff] %v3779_v61  ;;  %v3787_v60 = vld [vmem:[#allocation7 + $0x164] ss:$16 sps:$4 sm:$0xff]   ;;  %v3793_v59 = vld [vmem:[#allocation7 + $0x168] ss:$16 sps:$4 sm:$0xff]  }
  0x89   :  { %5370 = vst [vmem:[#allocation54_spill] sm:$0xff] %v3787_v60  ;;  %5373 = vst [vmem:[#allocation57_spill] sm:$0xff] %v3793_v59 }
  0x8b   :  { %828 = vmatpush2.bf16.msra.mxu0 %v3767_v57  ;;  %869 = vmatpush2.bf16.msra.mxu1 %v3769_v58  ;;  %v3789_v57 = vld [vmem:[#allocation7 + $0x16c] ss:$16 sps:$4 sm:$0xff]   ;;  %v3791_v58 = vld [vmem:[#allocation7 + $0x160] ss:$16 sps:$4 sm:$0xff]  }
  0x8c   :  { %829 = vmatprep.subr.bf16.mxu0 %v3775_v63  ;;  %870 = vmatprep.subr.bf16.mxu1 %v3777_v0  ;;  %5371 = vst [vmem:[#allocation55_spill] sm:$0xff] %v3789_v57  ;;  %5372 = vst [vmem:[#allocation56_spill] sm:$0xff] %v3791_v58  ;;  %v3799_v63 = vld [vmem:[#allocation7 + $0x14c] ss:$16 sps:$4 sm:$0xff]   ;;  %v3809_v0 = vld [vmem:[#allocation7 + $0x124] ss:$16 sps:$4 sm:$0xff]  }
  0x8d   :  { %5375 = vst [vmem:[#allocation59_spill] sm:$0xff] %v3799_v63  ;;  %5378 = vst [vmem:[#allocation62_spill] sm:$0xff] %v3809_v0 }
  0x8f   :  { %830 = vmatpush2.bf16.msra.mxu0 %v3779_v61  ;;  %871 = vmatpush2.bf16.msra.mxu1 %v3781_v62  ;;  %v3803_v62 = vld [vmem:[#allocation7 + $0x140] ss:$16 sps:$4 sm:$0xff]   ;;  %v3805_v61 = vld [vmem:[#allocation7 + $0x148] ss:$16 sps:$4 sm:$0xff]  }
  0x90   :  { %831 = vmatprep.subr.bf16.mxu0 %v3787_v60  ;;  %872 = vmatprep.subr.bf16.mxu1 %v3789_v57  ;;  %5376 = vst [vmem:[#allocation60_spill] sm:$0xff] %v3803_v62  ;;  %5377 = vst [vmem:[#allocation61_spill] sm:$0xff] %v3805_v61  ;;  %v3467_v60 = vmov 0.0|0.0  }
  0x91   :  { %839 = vmatprep.mubr.bf16.mxu0 %v3467_v60  ;;  %880 = vmatprep.mubr.bf16.mxu1 %v3467_v60  ;;  %v3827_v60 = vld [vmem:[#allocation7 + $0x100] ss:$16 sps:$4 sm:$0xff]  }
  0x92   :  { %5384 = vst [vmem:[#allocation68_spill] sm:$0xff] %v3827_v60 }
  0x93   :  { %832 = vmatpush2.bf16.msra.mxu0 %v3791_v58  ;;  %873 = vmatpush2.bf16.msra.mxu1 %v3793_v59  ;;  %v3815_v59 = vld [vmem:[#allocation7 + $0x120] ss:$16 sps:$4 sm:$0xff]   ;;  %v3817_v58 = vld [vmem:[#allocation7 + $0x128] ss:$16 sps:$4 sm:$0xff]  }
  0x94   :  { %833 = vmatprep.subr.bf16.mxu0 %v3795_v56  ;;  %874 = vmatprep.subr.bf16.mxu1 %v3799_v63  ;;  %5380 = vst [vmem:[#allocation64_spill] sm:$0xff] %v3815_v59  ;;  %5381 = vst [vmem:[#allocation65_spill] sm:$0xff] %v3817_v58  ;;  %v3821_v63 = vld [vmem:[#allocation7 + $0x104] ss:$16 sps:$4 sm:$0xff]   ;;  %v3823_v56 = vld [vmem:[#allocation7 + $0x10c] ss:$16 sps:$4 sm:$0xff]  }
  0x95   :  { %5382 = vst [vmem:[#allocation66_spill] sm:$0xff] %v3821_v63  ;;  %5383 = vst [vmem:[#allocation67_spill] sm:$0xff] %v3823_v56 }
  0x97   :  { %834 = vmatpush2.bf16.msra.mxu0 %v3803_v62  ;;  %875 = vmatpush2.bf16.msra.mxu1 %v3805_v61  ;;  %v3829_v62 = vld [vmem:[#allocation7 + $0x108] ss:$16 sps:$4 sm:$0xff]  }
  0x98   :  { %835 = vmatprep.subr.bf16.mxu0 %v3809_v0  ;;  %876 = vmatprep.subr.bf16.mxu1 %v3811_v55  ;;  %5385 = vst [vmem:[#allocation69_spill] sm:$0xff] %v3829_v62  ;;  %v217_v55 = vld [vmem:[#allocation2] sm:$0xff] }
  0x9b   :  { %836 = vmatpush2.bf16.msra.mxu0 %v3815_v59  ;;  %877 = vmatpush2.bf16.msra.mxu1 %v3817_v58  ;;  %v218_v58 = vld [vmem:[#allocation2 + $0x8] sm:$0xff] }
  0x9c   :  { %837 = vmatprep.subr.bf16.mxu0 %v3821_v63  ;;  %878 = vmatprep.subr.bf16.mxu1 %v3823_v56 }
  0x9f   :  { %838 = vmatpush2.bf16.msra.mxu0 %v3827_v60  ;;  %879 = vmatpush2.bf16.msra.mxu1 %v3829_v62 }
  0xa0   :  { %912 = vmatprep.subr.bf16.mxu0 %v3545_v1  ;;  %953 = vmatprep.subr.bf16.mxu1 %v3547_v2  ;;  %v219_v2 = vld [vmem:[#allocation2 + $0x10] sm:$0xff] }
 0x122   :  { %v415_v59 = vpop.f32.mrf.mxu0  ;;  %v456_v0 = vpop.f32.mrf.mxu1 }
 0x123   :  { %v463_v61 = vadd.f32 %v415_v59, %v217_v55  ;;  %v465_v1 = vadd.f32 %v456_v0, %v219_v2  ;;  %v5386_v2 = vmov 0  }
 0x124   :  { %v417_v57 = vpop.f32.mrf.mxu0  ;;  %v458_v53 = vpop.f32.mrf.mxu1 }
 0x125   :  { %v467_v52 = vmul.f32 0.5, %v463_v61  ;;  %v464_v63 = vadd.f32 %v417_v57, %v218_v58  ;;  %v466_v50 = vadd.f32 %v458_v53, %v220_v54  ;;  %v469_v48 = vmul.f32 0.5, %v465_v1  ;;  %v5412_v58 = vld [vmem:[#allocation43_spill] sm:$0xff] }
 0x126   :  { %v419_v51 = vpop.f32.mrf.mxu0  ;;  %v460_v56 = vpop.f32.mrf.mxu1 }
 0x127   :  { %2975 = vtanh.f32 %v467_v52  ;;  %v468_v60 = vmul.f32 0.5, %v464_v63  ;;  %v5414_v63 = vld [vmem:[#allocation45_spill] sm:$0xff] }
 0x128   :  { %v420_v62 = vpop.f32.mrf.mxu0  ;;  %v461_v49 = vpop.f32.mrf.mxu1 }
 0x129   :  { %2977 = vtanh.f32 %v468_v60  ;;  %v5413_v62 = vld [vmem:[#allocation44_spill] sm:$0xff]  ;;  %v5415_v60 = vld [vmem:[#allocation46_spill] sm:$0xff] }
 0x12a   :  { %2979 = vtanh.f32 %v466_v50 }
 0x12b   :  { %2981 = vtanh.f32 %v469_v48  ;;  %v5411_v48 = vld [vmem:[#allocation42_spill] sm:$0xff] }
 0x134   :  { %v2976_v47 = vpop.eup %2975 }
 0x135   :  { %v473_v46 = vadd.f32 1.0, %v2976_v47  ;;  %v5410_v47 = vld [vmem:[#allocation41_spill] sm:$0xff] }
 0x136   :  { %v2978_v55 = vpop.eup %2977 }
 0x137   :  { %v476_v59 = vmul.f32 0.5, %v473_v46  ;;  %v474_v45 = vadd.f32 1.0, %v2978_v55  ;;  %v2980_v61 = vpop.eup %2979  ;;  %v5409_v46 = vld [vmem:[#allocation40_spill] sm:$0xff]  ;;  %v5416_v55 = vld [vmem:[#allocation47_spill] sm:$0xff] }
 0x138   :  { %v2982_v49 = vpop.eup %2981 }
 0x139   :  { %v477_v57 = vmul.f32 0.5, %v474_v45  ;;  %v481_v56 = vmul.f32 %v2980_v61, %v476_v59  ;;  %v475_v53 = vadd.f32 1.0, %v2982_v49  ;;  %v5408_v45 = vld [vmem:[#allocation39_spill] sm:$0xff]  ;;  %v5417_v59 = vld [vmem:[#allocation48_spill] sm:$0xff]  ;;  %v5418_v61 = vld [vmem:[#allocation49_spill] sm:$0xff] }
 0x13a   :  { %v5422_v49 = vld [vmem:[#allocation53_spill] sm:$0xff] }
 0x13b   :  { %v480_v51 = vmul.f32 0.0, %v477_v57  ;;  %v478_v50 = vmul.f32 0.5, %v475_v53  ;;  %v5419_v57 = vld [vmem:[#allocation50_spill] sm:$0xff] }
 0x13c   :  { %v5423_v53 = vld [vmem:[#allocation54_spill] sm:$0xff] }
 0x13d   :  { %v3837_v52 = vadd.f32 %v481_v56, %v480_v51  ;;  %v5420_v51 = vld [vmem:[#allocation51_spill] sm:$0xff]  ;;  %v5421_v56 = vld [vmem:[#allocation52_spill] sm:$0xff] }
 0x13f   :  { %2983 = vtanh.f32 %v3837_v52 }
 0x14c   :  { %v2984_v54 = vpop.eup %2983 }
 0x14d   :  { %v484_v0 = vmul.f32 %v2984_v54, %v478_v50  ;;  %v5424_v50 = vld [vmem:[#allocation55_spill] sm:$0xff]  ;;  %v5425_v54 = vld [vmem:[#allocation56_spill] sm:$0xff] }
 0x14f   :  { %v485_v1 = vpack.c.bf16 %v484_v0, %v484_v0  ;;  %v5426_v0 = vld [vmem:[#allocation57_spill] sm:$0xff] }
 0x151   :  { %840 = vmatmul.mubr.bf16.vlgmr.msra.gmra.mxu0 %v485_v1  ;;  %881 = vmatmul.mubr.bf16.vlgmr.msra.gmra.mxu1 %v485_v1 }
 0x152   :  { %913 = vmatpush1.bf16.msra.mxu0 %v3550_v3  ;;  %954 = vmatpush1.bf16.msra.mxu1 %v3552_v4  ;;  %v5387_v3 = vld [vmem:[#allocation18_spill] sm:$0xff]  ;;  %v5388_v4 = vld [vmem:[#allocation19_spill] sm:$0xff] }
 0x153   :  { %914 = vmatprep.subr.bf16.mxu0 %v3555_v5  ;;  %955 = vmatprep.subr.bf16.mxu1 %v3559_v6  ;;  %v5389_v5 = vld [vmem:[#allocation20_spill] sm:$0xff]  ;;  %v5390_v6 = vld [vmem:[#allocation21_spill] sm:$0xff] }
 0x154   :  { %944 = vmatprep.mubr.bf16.mxu0 %v5386_v2  ;;  %985 = vmatprep.mubr.bf16.mxu1 %v5386_v2 }
 0x156   :  { %915 = vmatpush1.bf16.msra.mxu0 %v3561_v7  ;;  %956 = vmatpush1.bf16.msra.mxu1 %v3564_v8  ;;  %v5391_v7 = vld [vmem:[#allocation22_spill] sm:$0xff]  ;;  %v5392_v8 = vld [vmem:[#allocation23_spill] sm:$0xff] }
 0x157   :  { %916 = vmatprep.subr.bf16.mxu0 %v3567_v9  ;;  %957 = vmatprep.subr.bf16.mxu1 %v3569_v10  ;;  %v5393_v9 = vld [vmem:[#allocation24_spill] sm:$0xff]  ;;  %v5394_v10 = vld [vmem:[#allocation25_spill] sm:$0xff] }
 0x15a   :  { %917 = vmatpush1.bf16.msra.mxu0 %v3571_v11  ;;  %958 = vmatpush1.bf16.msra.mxu1 %v3573_v12  ;;  %v5395_v11 = vld [vmem:[#allocation26_spill] sm:$0xff]  ;;  %v5396_v12 = vld [vmem:[#allocation27_spill] sm:$0xff] }
 0x15b   :  { %918 = vmatprep.subr.bf16.mxu0 %v3577_v13  ;;  %959 = vmatprep.subr.bf16.mxu1 %v3581_v14  ;;  %v5397_v13 = vld [vmem:[#allocation28_spill] sm:$0xff]  ;;  %v5398_v14 = vld [vmem:[#allocation29_spill] sm:$0xff] }
 0x15e   :  { %919 = vmatpush1.bf16.msra.mxu0 %v3583_v15  ;;  %960 = vmatpush1.bf16.msra.mxu1 %v3587_v16  ;;  %v5399_v15 = vld [vmem:[#allocation30_spill] sm:$0xff]  ;;  %v5400_v16 = vld [vmem:[#allocation31_spill] sm:$0xff] }
 0x15f   :  { %920 = vmatprep.subr.bf16.mxu0 %v3589_v17  ;;  %961 = vmatprep.subr.bf16.mxu1 %v3593_v18  ;;  %v5401_v17 = vld [vmem:[#allocation32_spill] sm:$0xff]  ;;  %v5402_v18 = vld [vmem:[#allocation33_spill] sm:$0xff] }
 0x162   :  { %921 = vmatpush1.bf16.msra.mxu0 %v3595_v19  ;;  %962 = vmatpush1.bf16.msra.mxu1 %v3597_v20  ;;  %v5403_v19 = vld [vmem:[#allocation34_spill] sm:$0xff]  ;;  %v5404_v20 = vld [vmem:[#allocation35_spill] sm:$0xff] }
 0x163   :  { %922 = vmatprep.subr.bf16.mxu0 %v3601_v21  ;;  %963 = vmatprep.subr.bf16.mxu1 %v3605_v22  ;;  %v5405_v21 = vld [vmem:[#allocation36_spill] sm:$0xff]  ;;  %v5406_v22 = vld [vmem:[#allocation37_spill] sm:$0xff] }
 0x166   :  { %923 = vmatpush1.bf16.msra.mxu0 %v3607_v23  ;;  %964 = vmatpush1.bf16.msra.mxu1 %v3611_v24  ;;  %v5407_v23 = vld [vmem:[#allocation38_spill] sm:$0xff] }
 0x167   :  { %924 = vmatprep.subr.bf16.mxu0 %v3613_v25  ;;  %965 = vmatprep.subr.bf16.mxu1 %v3617_v26 }
 0x16a   :  { %925 = vmatpush1.bf16.msra.mxu0 %v3619_v27  ;;  %966 = vmatpush1.bf16.msra.mxu1 %v3621_v28 }
 0x16b   :  { %926 = vmatprep.subr.bf16.mxu0 %v3625_v29  ;;  %967 = vmatprep.subr.bf16.mxu1 %v3629_v30 }
 0x16e   :  { %927 = vmatpush1.bf16.msra.mxu0 %v3631_v31  ;;  %968 = vmatpush1.bf16.msra.mxu1 %v3635_v32 }
 0x16f   :  { %1018 = vmatprep.subr.bf16.mxu0 %v3637_v33  ;;  %1059 = vmatprep.subr.bf16.mxu1 %v3641_v34 }
 0x171   :  { %945 = vmatmul.mubr.bf16.vlgmr.msra.gmra.mxu0 %v485_v1  ;;  %986 = vmatmul.mubr.bf16.vlgmr.msra.gmra.mxu1 %v485_v1  ;;  %v5427_v1 = vld [vmem:[#allocation58_spill] sm:$0xff] }
 0x172   :  { %1019 = vmatpush1.bf16.msra.mxu0 %v3643_v35  ;;  %1060 = vmatpush1.bf16.msra.mxu1 %v3645_v36 }
 0x173   :  { %1020 = vmatprep.subr.bf16.mxu0 %v3649_v37  ;;  %1061 = vmatprep.subr.bf16.mxu1 %v3653_v38 }
 0x176   :  { %1021 = vmatpush1.bf16.msra.mxu0 %v3655_v39  ;;  %1062 = vmatpush1.bf16.msra.mxu1 %v3657_v40 }
 0x177   :  { %1022 = vmatprep.subr.bf16.mxu0 %v3661_v41  ;;  %1063 = vmatprep.subr.bf16.mxu1 %v3663_v42 }
 0x17a   :  { %1023 = vmatpush1.bf16.msra.mxu0 %v3669_v43  ;;  %1064 = vmatpush1.bf16.msra.mxu1 %v3671_v44 }
 0x17b   :  { %1024 = vmatprep.subr.bf16.mxu0 %v5387_v3  ;;  %1065 = vmatprep.subr.bf16.mxu1 %v5388_v4 }
 0x17e   :  { %1025 = vmatpush1.bf16.msra.mxu0 %v5389_v5  ;;  %1066 = vmatpush1.bf16.msra.mxu1 %v5390_v6 }
 0x17f   :  { %1026 = vmatprep.subr.bf16.mxu0 %v5391_v7  ;;  %1067 = vmatprep.subr.bf16.mxu1 %v5392_v8 }
 0x182   :  { %1027 = vmatpush1.bf16.msra.mxu0 %v5393_v9  ;;  %1068 = vmatpush1.bf16.msra.mxu1 %v5394_v10 }
 0x183   :  { %1028 = vmatprep.subr.bf16.mxu0 %v5395_v11  ;;  %1069 = vmatprep.subr.bf16.mxu1 %v5396_v12 }
 0x186   :  { %1029 = vmatpush1.bf16.msra.mxu0 %v5397_v13  ;;  %1070 = vmatpush1.bf16.msra.mxu1 %v5398_v14 }
 0x187   :  { %1030 = vmatprep.subr.bf16.mxu0 %v5399_v15  ;;  %1071 = vmatprep.subr.bf16.mxu1 %v5400_v16 }
 0x18a   :  { %1031 = vmatpush1.bf16.msra.mxu0 %v5401_v17  ;;  %1072 = vmatpush1.bf16.msra.mxu1 %v5402_v18 }
 0x18b   :  { %1032 = vmatprep.subr.bf16.mxu0 %v5403_v19  ;;  %1073 = vmatprep.subr.bf16.mxu1 %v5404_v20 }
 0x18e   :  { %1033 = vmatpush1.bf16.msra.mxu0 %v5405_v21  ;;  %1074 = vmatpush1.bf16.msra.mxu1 %v5406_v22 }
 0x18f   :  { %1034 = vmatprep.subr.bf16.mxu0 %v5407_v23  ;;  %1075 = vmatprep.subr.bf16.mxu1 %v5408_v45 }
 0x192   :  { %1035 = vmatpush2.bf16.msra.mxu0 %v5409_v46  ;;  %1076 = vmatpush2.bf16.msra.mxu1 %v5410_v47 }
 0x193   :  { %1036 = vmatprep.subr.bf16.mxu0 %v5411_v48  ;;  %1077 = vmatprep.subr.bf16.mxu1 %v5412_v58 }
 0x196   :  { %1037 = vmatpush2.bf16.msra.mxu0 %v5413_v62  ;;  %1078 = vmatpush2.bf16.msra.mxu1 %v5414_v63 }
 0x197   :  { %1038 = vmatprep.subr.bf16.mxu0 %v5415_v60  ;;  %1079 = vmatprep.subr.bf16.mxu1 %v5416_v55 }
 0x19a   :  { %1039 = vmatpush2.bf16.msra.mxu0 %v5417_v59  ;;  %1080 = vmatpush2.bf16.msra.mxu1 %v5418_v61  ;;  %v5428_v59 = vld [vmem:[#allocation59_spill] sm:$0xff]  ;;  %v5429_v61 = vld [vmem:[#allocation60_spill] sm:$0xff] }
 0x19b   :  { %1040 = vmatprep.subr.bf16.mxu0 %v5419_v57  ;;  %1081 = vmatprep.subr.bf16.mxu1 %v5420_v51  ;;  %v5430_v57 = vld [vmem:[#allocation61_spill] sm:$0xff]  ;;  %v5431_v51 = vld [vmem:[#allocation62_spill] sm:$0xff] }
 0x19e   :  { %1041 = vmatpush2.bf16.msra.mxu0 %v5421_v56  ;;  %1082 = vmatpush2.bf16.msra.mxu1 %v5422_v49  ;;  %v5432_v56 = vld [vmem:[#allocation63_spill] sm:$0xff]  ;;  %v5433_v49 = vld [vmem:[#allocation64_spill] sm:$0xff] }
 0x19f   :  { %1042 = vmatprep.subr.bf16.mxu0 %v5423_v53  ;;  %1083 = vmatprep.subr.bf16.mxu1 %v5424_v50  ;;  %v5434_v53 = vld [vmem:[#allocation65_spill] sm:$0xff]  ;;  %v5435_v50 = vld [vmem:[#allocation66_spill] sm:$0xff] }
 0x1a2   :  { %1043 = vmatpush2.bf16.msra.mxu0 %v5425_v54  ;;  %1084 = vmatpush2.bf16.msra.mxu1 %v5426_v0  ;;  %v5436_v54 = vld [vmem:[#allocation67_spill] sm:$0xff]  ;;  %v5437_v0 = vld [vmem:[#allocation68_spill] sm:$0xff] }
 0x1a3   :  { %1044 = vmatprep.subr.bf16.mxu0 %v5427_v1  ;;  %1085 = vmatprep.subr.bf16.mxu1 %v5428_v59  ;;  %v5438_v1 = vld [vmem:[#allocation69_spill] sm:$0xff]  ;;  %v5439_v59 = vld [vmem:[#allocation16_spill] sm:$0xff] }
 0x1a6   :  { %1045 = vmatpush2.bf16.msra.mxu0 %v5429_v61  ;;  %1086 = vmatpush2.bf16.msra.mxu1 %v5430_v57  ;;  %v5440_v61 = vld [vmem:[#allocation17_spill] sm:$0xff]  ;;  %v197_v57 = vlaneseq }
 0x1a7   :  { %1046 = vmatprep.subr.bf16.mxu0 %v5431_v51  ;;  %1087 = vmatprep.subr.bf16.mxu1 %v5432_v56 }
 0x1a8   :  { %v198_v51 = vshrl.u32 %v197_v57, 7 }
 0x1aa   :  { %1047 = vmatpush2.bf16.msra.mxu0 %v5433_v49  ;;  %1088 = vmatpush2.bf16.msra.mxu1 %v5434_v53  ;;  %v199_v55 = vsub.s32 0, %v198_v51  ;;  %v195_v49 = vld [vmem:[%s5034_s3] sm:$0xf]  ;;  %v203_v53 = vsub.s32 1, %v198_v51  ;;  %v207_v47 = vsub.s32 2, %v198_v51 }
 0x1ab   :  { %1048 = vmatprep.subr.bf16.mxu0 %v5435_v50  ;;  %1089 = vmatprep.subr.bf16.mxu1 %v5436_v54  ;;  %v211_v54 = vsub.s32 3, %v198_v51 }
 0x1ac   :  { %v3941_v56 = vrot.slane %v195_v49, %v199_v55  ;;  %v3943_v50 = vrot.slane %v195_v49, %v203_v53  ;;  %v3950_v23 = vrot.slane %v195_v49, %v207_v47  ;;  %v908_v47 = vld [vmem:[#allocation2 + $0x20] sm:$0xff] }
 0x1ad   :  { %v3947_v62 = vrot.slane %v195_v49, %v211_v54  ;;  %v909_v49 = vld [vmem:[#allocation2 + $0x28] sm:$0xff] }
 0x1ae   :  { %1049 = vmatpush2.bf16.msra.mxu0 %v5437_v0  ;;  %1090 = vmatpush2.bf16.msra.mxu1 %v5438_v1  ;;  %5441 = vst [vmem:[#allocation18_spill] sm:$0xff] %v3941_v56  ;;  %5442 = vst [vmem:[#allocation19_spill] sm:$0xff] %v3943_v50 }
 0x1af   :  { %1123 = vmatprep.subr.bf16.mxu0 %v5439_v59  ;;  %1164 = vmatprep.subr.bf16.mxu1 %v5440_v61  ;;  %5443 = vst [vmem:[#allocation20_spill] sm:$0xff] %v3947_v62  ;;  %5444 = vst [vmem:[#allocation21_spill] sm:$0xff] %v3950_v23 }
 0x211   :  { %v841_v0 = vpop.f32.mrf.mxu0  ;;  %v882_v60 = vpop.f32.mrf.mxu1 }
 0x212   :  { %v842_v1 = vadd.f32 %v841_v0, %v3941_v56  ;;  %v883_v0 = vadd.f32 %v882_v60, %v3950_v23 }
 0x213   :  { %v843_v59 = vpop.f32.mrf.mxu0  ;;  %v884_v63 = vpop.f32.mrf.mxu1 }
 0x214   :  { %v889_v61 = vmul.f32 0.5, %v842_v1  ;;  %v844_v57 = vadd.f32 %v843_v59, %v3943_v50  ;;  %v885_v45 = vadd.f32 %v884_v63, %v3947_v62  ;;  %v891_v1 = vmul.f32 0.5, %v883_v0  ;;  %v910_v62 = vld [vmem:[#allocation2 + $0x30] sm:$0xff] }
 0x215   :  { %v845_v58 = vpop.f32.mrf.mxu0  ;;  %v886_v48 = vpop.f32.mrf.mxu1 }
 0x216   :  { %2985 = vtanh.f32 %v889_v61  ;;  %v890_v55 = vmul.f32 0.5, %v844_v57 }
 0x217   :  { %v846_v46 = vpop.f32.mrf.mxu0  ;;  %v887_v53 = vpop.f32.mrf.mxu1 }
 0x218   :  { %2987 = vtanh.f32 %v890_v55 }
 0x219   :  { %2989 = vtanh.f32 %v885_v45 }
 0x21a   :  { %2991 = vtanh.f32 %v891_v1  ;;  %v911_v1 = vld [vmem:[#allocation2 + $0x38] sm:$0xff] }
 0x223   :  { %v2986_v56 = vpop.eup %2985 }
 0x224   :  { %v895_v59 = vadd.f32 1.0, %v2986_v56 }
 0x225   :  { %v2988_v54 = vpop.eup %2987 }
 0x226   :  { %v898_v50 = vmul.f32 0.5, %v895_v59  ;;  %v896_v48 = vadd.f32 1.0, %v2988_v54  ;;  %v2990_v51 = vpop.eup %2989 }
 0x227   :  { %v2992_v55 = vpop.eup %2991 }
 0x228   :  { %v899_v58 = vmul.f32 0.5, %v896_v48  ;;  %v903_v46 = vmul.f32 %v2990_v51, %v898_v50  ;;  %v897_v23 = vadd.f32 1.0, %v2992_v55 }
 0x22a   :  { %v902_v61 = vmul.f32 0.0, %v899_v58 }
 0x22c   :  { %v3953_v57 = vadd.f32 %v903_v46, %v902_v61  ;;  %v900_v46 = vmul.f32 0.5, %v897_v23 }
 0x22e   :  { %5445 = vst [vmem:[#allocation22_spill] sm:$0xff] %v3953_v57  ;;  %2993 = vtanh.f32 %v3953_v57 }
 0x231   :  { %v946_v63 = vpop.f32.mrf.mxu0  ;;  %v987_v45 = vpop.f32.mrf.mxu1 }
 0x232   :  { %v994_v60 = vadd.f32 %v946_v63, %v908_v47  ;;  %v996_v63 = vadd.f32 %v987_v45, %v910_v62 }
 0x233   :  { %v948_v53 = vpop.f32.mrf.mxu0  ;;  %v989_v56 = vpop.f32.mrf.mxu1 }
 0x234   :  { %v998_v0 = vmul.f32 0.5, %v994_v60  ;;  %v995_v59 = vadd.f32 %v948_v53, %v909_v49  ;;  %v997_v61 = vadd.f32 %v989_v56, %v911_v1  ;;  %v1000_v49 = vmul.f32 0.5, %v996_v63  ;;  %v3977_v63 = vld [vmem:[#allocation5 + $0xc8] ss:$16 sps:$4 sm:$0xff]  }
 0x235   :  { %v950_v54 = vpop.f32.mrf.mxu0  ;;  %v991_v48 = vpop.f32.mrf.mxu1 }
 0x236   :  { %2995 = vtanh.f32 %v998_v0  ;;  %v999_v50 = vmul.f32 0.5, %v995_v59 }
 0x237   :  { %v951_v58 = vpop.f32.mrf.mxu0  ;;  %v992_v51 = vpop.f32.mrf.mxu1 }
 0x238   :  { %2997 = vtanh.f32 %v999_v50  ;;  %v3960_v51 = vld [vmem:[#allocation5 + $0xe0] ss:$16 sps:$4 sm:$0xff]  }
 0x239   :  { %2999 = vtanh.f32 %v997_v61  ;;  %v3963_v61 = vld [vmem:[#allocation5 + $0xe8] ss:$16 sps:$4 sm:$0xff]  }
 0x23a   :  { %3001 = vtanh.f32 %v1000_v49  ;;  %v3980_v49 = vld [vmem:[#allocation5 + $0xa4] ss:$16 sps:$4 sm:$0xff]  }
 0x23b   :  { %v2994_v57 = vpop.eup %2993 }
 0x23c   :  { %v906_v47 = vmul.f32 %v2994_v57, %v900_v46  ;;  %v3969_v46 = vld [vmem:[#allocation5 + $0xcc] ss:$16 sps:$4 sm:$0xff]  }
 0x23e   :  { %v1017_v22 = vpack.c.bf16 %v906_v47, %v906_v47  ;;  %v3974_v47 = vld [vmem:[#allocation5 + $0xc0] ss:$16 sps:$4 sm:$0xff]  }
 0x240   :  { %1050 = vmatprep.mubr.bf16.mxu0 %v1017_v22  ;;  %1091 = vmatprep.mubr.bf16.mxu1 %v1017_v22 }
 0x243   :  { %v2996_v60 = vpop.eup %2995 }
 0x244   :  { %v1004_v53 = vadd.f32 1.0, %v2996_v60  ;;  %v3983_v60 = vld [vmem:[#allocation5 + $0xac] ss:$16 sps:$4 sm:$0xff]  }
 0x245   :  { %v2998_v54 = vpop.eup %2997 }
 0x246   :  { %v1007_v55 = vmul.f32 0.5, %v1004_v53  ;;  %v1005_v0 = vadd.f32 1.0, %v2998_v54  ;;  %v3000_v48 = vpop.eup %2999  ;;  %v3986_v53 = vld [vmem:[#allocation5 + $0xa0] ss:$16 sps:$4 sm:$0xff]   ;;  %v3989_v54 = vld [vmem:[#allocation5 + $0xa8] ss:$16 sps:$4 sm:$0xff]  }
 0x247   :  { %v3002_v62 = vpop.eup %3001 }
 0x248   :  { %v1008_v59 = vmul.f32 0.5, %v1005_v0  ;;  %v1012_v23 = vmul.f32 %v3000_v48, %v1007_v55  ;;  %v1006_v57 = vadd.f32 1.0, %v3002_v62  ;;  %v3992_v55 = vld [vmem:[#allocation5 + $0x84] ss:$16 sps:$4 sm:$0xff]   ;;  %v3995_v0 = vld [vmem:[#allocation5 + $0x8c] ss:$16 sps:$4 sm:$0xff]  }
 0x249   :  { %v4001_v48 = vld [vmem:[#allocation5 + $0x88] ss:$16 sps:$4 sm:$0xff]   ;;  %v4010_v62 = vld [vmem:[#allocation5 + $0x60] ss:$16 sps:$4 sm:$0xff]  }
 0x24a   :  { %v1011_v56 = vmul.f32 %v1008_v59, %v3837_v52  ;;  %v1009_v45 = vmul.f32 0.5, %v1006_v57  ;;  %v3966_v52 = vld [vmem:[#allocation5 + $0xc4] ss:$16 sps:$4 sm:$0xff]   ;;  %v3998_v59 = vld [vmem:[#allocation5 + $0x80] ss:$16 sps:$4 sm:$0xff]  }
 0x24b   :  { %v4013_v57 = vld [vmem:[#allocation5 + $0x68] ss:$16 sps:$4 sm:$0xff]  }
 0x24c   :  { %v3957_v1 = vadd.f32 %v1012_v23, %v1011_v56  ;;  %v4004_v56 = vld [vmem:[#allocation5 + $0x64] ss:$16 sps:$4 sm:$0xff]   ;;  %v4007_v23 = vld [vmem:[#allocation5 + $0x6c] ss:$16 sps:$4 sm:$0xff]  }
 0x24e   :  { %3003 = vtanh.f32 %v3957_v1 }
 0x25b   :  { %v3004_v22 = vpop.eup %3003 }
 0x25c   :  { %v1015_v50 = vmul.f32 %v3004_v22, %v1009_v45  ;;  %v4016_v45 = vld [vmem:[#allocation5 + $0x44] ss:$16 sps:$4 sm:$0xff]   ;;  %v4019_v22 = vld [vmem:[#allocation5 + $0x4c] ss:$16 sps:$4 sm:$0xff]  }
 0x25e   :  { %v1016_v58 = vpack.c.bf16 %v1015_v50, %v1015_v50  ;;  %v4022_v50 = vld [vmem:[#allocation5 + $0x40] ss:$16 sps:$4 sm:$0xff]  }
 0x260   :  { %1051 = vmatmul.mubr.bf16.vlgmr.msra.gmra.mxu0 %v1016_v58  ;;  %1092 = vmatmul.mubr.bf16.vlgmr.msra.gmra.mxu1 %v1016_v58 }
 0x261   :  { %1124 = vmatpush1.bf16.msra.mxu0 %v3960_v51  ;;  %1165 = vmatpush1.bf16.msra.mxu1 %v3963_v61 }
 0x262   :  { %1125 = vmatprep.subr.bf16.mxu0 %v3966_v52  ;;  %1166 = vmatprep.subr.bf16.mxu1 %v3969_v46 }
 0x263   :  { %1155 = vmatprep.mubr.bf16.mxu0 %v5386_v2  ;;  %1196 = vmatprep.mubr.bf16.mxu1 %v5386_v2 }
 0x265   :  { %1126 = vmatpush1.bf16.msra.mxu0 %v3974_v47  ;;  %1167 = vmatpush1.bf16.msra.mxu1 %v3977_v63 }
 0x266   :  { %1127 = vmatprep.subr.bf16.mxu0 %v3980_v49  ;;  %1168 = vmatprep.subr.bf16.mxu1 %v3983_v60 }
 0x269   :  { %1128 = vmatpush1.bf16.msra.mxu0 %v3986_v53  ;;  %1169 = vmatpush1.bf16.msra.mxu1 %v3989_v54 }
 0x26a   :  { %1129 = vmatprep.subr.bf16.mxu0 %v3992_v55  ;;  %1170 = vmatprep.subr.bf16.mxu1 %v3995_v0 }
 0x26d   :  { %1130 = vmatpush1.bf16.msra.mxu0 %v3998_v59  ;;  %1171 = vmatpush1.bf16.msra.mxu1 %v4001_v48 }
 0x26e   :  { %1131 = vmatprep.subr.bf16.mxu0 %v4004_v56  ;;  %1172 = vmatprep.subr.bf16.mxu1 %v4007_v23 }
 0x271   :  { %1132 = vmatpush1.bf16.msra.mxu0 %v4010_v62  ;;  %1173 = vmatpush1.bf16.msra.mxu1 %v4013_v57 }
 0x272   :  { %1133 = vmatprep.subr.bf16.mxu0 %v4016_v45  ;;  %1174 = vmatprep.subr.bf16.mxu1 %v4019_v22 }
 0x275   :  { %1134 = vmatpush1.bf16.msra.mxu0 %v4022_v50  ;;  %1175 = vmatpush1.bf16.msra.mxu1 %v3611_v24  ;;  %v5446_v24 = vld [vmem:[#allocation37_spill] sm:$0xff] }
 0x276   :  { %1135 = vmatprep.subr.bf16.mxu0 %v3613_v25  ;;  %1176 = vmatprep.subr.bf16.mxu1 %v3617_v26  ;;  %v5447_v25 = vld [vmem:[#allocation38_spill] sm:$0xff]  ;;  %v5448_v26 = vld [vmem:[#allocation39_spill] sm:$0xff] }
 0x279   :  { %1136 = vmatpush1.bf16.msra.mxu0 %v3619_v27  ;;  %1177 = vmatpush1.bf16.msra.mxu1 %v3621_v28  ;;  %v5449_v27 = vld [vmem:[#allocation40_spill] sm:$0xff]  ;;  %v5450_v28 = vld [vmem:[#allocation41_spill] sm:$0xff] }
 0x27a   :  { %1137 = vmatprep.subr.bf16.mxu0 %v3625_v29  ;;  %1178 = vmatprep.subr.bf16.mxu1 %v3629_v30  ;;  %v5451_v29 = vld [vmem:[#allocation42_spill] sm:$0xff]  ;;  %v5452_v30 = vld [vmem:[#allocation43_spill] sm:$0xff] }
 0x27d   :  { %1138 = vmatpush1.bf16.msra.mxu0 %v3631_v31  ;;  %1179 = vmatpush1.bf16.msra.mxu1 %v3635_v32  ;;  %v5453_v31 = vld [vmem:[#allocation44_spill] sm:$0xff]  ;;  %v5454_v32 = vld [vmem:[#allocation45_spill] sm:$0xff] }
 0x27e   :  { %1229 = vmatprep.subr.bf16.mxu0 %v3637_v33  ;;  %1270 = vmatprep.subr.bf16.mxu1 %v3641_v34  ;;  %v5455_v33 = vld [vmem:[#allocation46_spill] sm:$0xff]  ;;  %v5456_v34 = vld [vmem:[#allocation47_spill] sm:$0xff] }
 0x280   :  { %1156 = vmatmul.mubr.bf16.vlgmr.msra.gmra.mxu0 %v1016_v58  ;;  %1197 = vmatmul.mubr.bf16.vlgmr.msra.gmra.mxu1 %v1016_v58 }
 0x281   :  { %1230 = vmatpush1.bf16.msra.mxu0 %v3643_v35  ;;  %1271 = vmatpush1.bf16.msra.mxu1 %v3645_v36  ;;  %v5457_v35 = vld [vmem:[#allocation48_spill] sm:$0xff]  ;;  %v5458_v36 = vld [vmem:[#allocation49_spill] sm:$0xff] }
 0x282   :  { %1231 = vmatprep.subr.bf16.mxu0 %v3649_v37  ;;  %1272 = vmatprep.subr.bf16.mxu1 %v3653_v38  ;;  %v5459_v37 = vld [vmem:[#allocation50_spill] sm:$0xff]  ;;  %v5460_v38 = vld [vmem:[#allocation51_spill] sm:$0xff] }
 0x285   :  { %1232 = vmatpush1.bf16.msra.mxu0 %v3655_v39  ;;  %1273 = vmatpush1.bf16.msra.mxu1 %v3657_v40  ;;  %v5461_v39 = vld [vmem:[#allocation52_spill] sm:$0xff]  ;;  %v5462_v40 = vld [vmem:[#allocation53_spill] sm:$0xff] }
 0x286   :  { %1233 = vmatprep.subr.bf16.mxu0 %v3661_v41  ;;  %1274 = vmatprep.subr.bf16.mxu1 %v3663_v42  ;;  %v5463_v41 = vld [vmem:[#allocation54_spill] sm:$0xff]  ;;  %v5464_v42 = vld [vmem:[#allocation55_spill] sm:$0xff] }
 0x289   :  { %1234 = vmatpush1.bf16.msra.mxu0 %v3669_v43  ;;  %1275 = vmatpush1.bf16.msra.mxu1 %v3671_v44  ;;  %v5465_v43 = vld [vmem:[#allocation56_spill] sm:$0xff]  ;;  %v5466_v44 = vld [vmem:[#allocation57_spill] sm:$0xff] }
 0x28a   :  { %1235 = vmatprep.subr.bf16.mxu0 %v5387_v3  ;;  %1276 = vmatprep.subr.bf16.mxu1 %v5388_v4  ;;  %v5467_v3 = vld [vmem:[#allocation58_spill] sm:$0xff]  ;;  %v5468_v4 = vld [vmem:[#allocation59_spill] sm:$0xff] }
 0x28d   :  { %1236 = vmatpush1.bf16.msra.mxu0 %v5389_v5  ;;  %1277 = vmatpush1.bf16.msra.mxu1 %v5390_v6  ;;  %v5469_v5 = vld [vmem:[#allocation60_spill] sm:$0xff]  ;;  %v5470_v6 = vld [vmem:[#allocation61_spill] sm:$0xff] }
 0x28e   :  { %1237 = vmatprep.subr.bf16.mxu0 %v5391_v7  ;;  %1278 = vmatprep.subr.bf16.mxu1 %v5392_v8  ;;  %v5471_v7 = vld [vmem:[#allocation62_spill] sm:$0xff]  ;;  %v5472_v8 = vld [vmem:[#allocation63_spill] sm:$0xff] }
 0x291   :  { %1238 = vmatpush1.bf16.msra.mxu0 %v5393_v9  ;;  %1279 = vmatpush1.bf16.msra.mxu1 %v5394_v10  ;;  %v5473_v9 = vld [vmem:[#allocation64_spill] sm:$0xff]  ;;  %v5474_v10 = vld [vmem:[#allocation65_spill] sm:$0xff] }
 0x292   :  { %1239 = vmatprep.subr.bf16.mxu0 %v5395_v11  ;;  %1280 = vmatprep.subr.bf16.mxu1 %v5396_v12  ;;  %v5475_v11 = vld [vmem:[#allocation66_spill] sm:$0xff]  ;;  %v5476_v12 = vld [vmem:[#allocation67_spill] sm:$0xff] }
 0x295   :  { %1240 = vmatpush1.bf16.msra.mxu0 %v5397_v13  ;;  %1281 = vmatpush1.bf16.msra.mxu1 %v5398_v14  ;;  %v5477_v13 = vld [vmem:[#allocation68_spill] sm:$0xff]  ;;  %v5478_v14 = vld [vmem:[#allocation69_spill] sm:$0xff] }
 0x296   :  { %1241 = vmatprep.subr.bf16.mxu0 %v5399_v15  ;;  %1282 = vmatprep.subr.bf16.mxu1 %v5400_v16  ;;  %v4098_v15 = vld [vmem:[#allocation5 + $0xe4] ss:$16 sps:$4 sm:$0xff]   ;;  %v4101_v16 = vld [vmem:[#allocation5 + $0xec] ss:$16 sps:$4 sm:$0xff]  }
 0x297   :  { %5479 = vst [vmem:[#allocation23_spill] sm:$0xff] %v4098_v15  ;;  %5480 = vst [vmem:[#allocation24_spill] sm:$0xff] %v4101_v16 }
 0x299   :  { %1242 = vmatpush1.bf16.msra.mxu0 %v5401_v17  ;;  %1283 = vmatpush1.bf16.msra.mxu1 %v5402_v18 }
 0x29a   :  { %1243 = vmatprep.subr.bf16.mxu0 %v5403_v19  ;;  %1284 = vmatprep.subr.bf16.mxu1 %v5404_v20  ;;  %v5481_v19 = vld [vmem:[#allocation18_spill] sm:$0xff] }
 0x29d   :  { %1244 = vmatpush1.bf16.msra.mxu0 %v5405_v21  ;;  %1285 = vmatpush1.bf16.msra.mxu1 %v5446_v24 }
 0x29e   :  { %1245 = vmatprep.subr.bf16.mxu0 %v5447_v25  ;;  %1286 = vmatprep.subr.bf16.mxu1 %v5448_v26  ;;  %v5482_v25 = vld [vmem:[#allocation19_spill] sm:$0xff] }
 0x2a1   :  { %1246 = vmatpush2.bf16.msra.mxu0 %v5449_v27  ;;  %1287 = vmatpush2.bf16.msra.mxu1 %v5450_v28 }
 0x2a2   :  { %1247 = vmatprep.subr.bf16.mxu0 %v5451_v29  ;;  %1288 = vmatprep.subr.bf16.mxu1 %v5452_v30 }
 0x2a5   :  { %1248 = vmatpush2.bf16.msra.mxu0 %v5453_v31  ;;  %1289 = vmatpush2.bf16.msra.mxu1 %v5454_v32  ;;  %v5483_v32 = vld [vmem:[#allocation20_spill] sm:$0xff] }
 0x2a6   :  { %1249 = vmatprep.subr.bf16.mxu0 %v5455_v33  ;;  %1290 = vmatprep.subr.bf16.mxu1 %v5456_v34  ;;  %v5484_v34 = vld [vmem:[#allocation21_spill] sm:$0xff] }
 0x2a9   :  { %1250 = vmatpush2.bf16.msra.mxu0 %v5457_v35  ;;  %1291 = vmatpush2.bf16.msra.mxu1 %v5458_v36 }
 0x2aa   :  { %1251 = vmatprep.subr.bf16.mxu0 %v5459_v37  ;;  %1292 = vmatprep.subr.bf16.mxu1 %v5460_v38 }
 0x2ad   :  { %1252 = vmatpush2.bf16.msra.mxu0 %v5461_v39  ;;  %1293 = vmatpush2.bf16.msra.mxu1 %v5462_v40 }
 0x2ae   :  { %1253 = vmatprep.subr.bf16.mxu0 %v5463_v41  ;;  %1294 = vmatprep.subr.bf16.mxu1 %v5464_v42 }
 0x2b1   :  { %1254 = vmatpush2.bf16.msra.mxu0 %v5465_v43  ;;  %1295 = vmatpush2.bf16.msra.mxu1 %v5466_v44  ;;  %v5485_v44 = vld [vmem:[#allocation22_spill] sm:$0xff] }
 0x2b2   :  { %1255 = vmatprep.subr.bf16.mxu0 %v5467_v3  ;;  %1296 = vmatprep.subr.bf16.mxu1 %v5468_v4 }
 0x2b5   :  { %1256 = vmatpush2.bf16.msra.mxu0 %v5469_v5  ;;  %1297 = vmatpush2.bf16.msra.mxu1 %v5470_v6  ;;  %v1119_v6 = vld [vmem:[#allocation2 + $0x40] sm:$0xff] }
 0x2b6   :  { %1257 = vmatprep.subr.bf16.mxu0 %v5471_v7  ;;  %1298 = vmatprep.subr.bf16.mxu1 %v5472_v8 }
 0x2b9   :  { %1258 = vmatpush2.bf16.msra.mxu0 %v5473_v9  ;;  %1299 = vmatpush2.bf16.msra.mxu1 %v5474_v10  ;;  %v1120_v9 = vld [vmem:[#allocation2 + $0x48] sm:$0xff] }
 0x2ba   :  { %1259 = vmatprep.subr.bf16.mxu0 %v5475_v11  ;;  %1300 = vmatprep.subr.bf16.mxu1 %v5476_v12 }
 0x2bd   :  { %1260 = vmatpush2.bf16.msra.mxu0 %v5477_v13  ;;  %1301 = vmatpush2.bf16.msra.mxu1 %v5478_v14 }
 0x2be   :  { %1334 = vmatprep.subr.bf16.mxu0 %v4098_v15  ;;  %1375 = vmatprep.subr.bf16.mxu1 %v4101_v16 }
 0x320   :  { %v1052_v17 = vpop.f32.mrf.mxu0  ;;  %v1093_v18 = vpop.f32.mrf.mxu1 }
 0x321   :  { %v1053_v20 = vadd.f32 %v1052_v17, %v5481_v19  ;;  %v1094_v35 = vadd.f32 %v1093_v18, %v5484_v34  ;;  %v1122_v18 = vld [vmem:[#allocation2 + $0x58] sm:$0xff] }
 0x322   :  { %v1054_v21 = vpop.f32.mrf.mxu0  ;;  %v1095_v58 = vpop.f32.mrf.mxu1 }
 0x323   :  { %v1100_v24 = vmul.f32 0.5, %v1053_v20  ;;  %v1055_v26 = vadd.f32 %v1054_v21, %v5482_v25  ;;  %v1096_v33 = vadd.f32 %v1095_v58, %v5483_v32  ;;  %v1102_v36 = vmul.f32 0.5, %v1094_v35 }
 0x324   :  { %v1056_v27 = vpop.f32.mrf.mxu0  ;;  %v1097_v28 = vpop.f32.mrf.mxu1 }
 0x325   :  { %3005 = vtanh.f32 %v1100_v24  ;;  %v1101_v29 = vmul.f32 0.5, %v1055_v26 }
 0x326   :  { %v1057_v30 = vpop.f32.mrf.mxu0  ;;  %v1098_v31 = vpop.f32.mrf.mxu1 }
 0x327   :  { %3007 = vtanh.f32 %v1101_v29  ;;  %v1121_v31 = vld [vmem:[#allocation2 + $0x50] sm:$0xff] }
 0x328   :  { %3009 = vtanh.f32 %v1096_v33 }
 0x329   :  { %3011 = vtanh.f32 %v1102_v36 }
 0x332   :  { %v3006_v37 = vpop.eup %3005 }
 0x333   :  { %v1106_v38 = vadd.f32 1.0, %v3006_v37 }
 0x334   :  { %v3008_v39 = vpop.eup %3007 }
 0x335   :  { %v1109_v40 = vmul.f32 0.5, %v1106_v38  ;;  %v1107_v41 = vadd.f32 1.0, %v3008_v39  ;;  %v3010_v43 = vpop.eup %3009 }
 0x336   :  { %v3012_v11 = vpop.eup %3011 }
 0x337   :  { %v1110_v42 = vmul.f32 0.5, %v1107_v41  ;;  %v1114_v4 = vmul.f32 %v3010_v43, %v1109_v40  ;;  %v1108_v58 = vadd.f32 1.0, %v3012_v11 }
 0x339   :  { %v1113_v3 = vmul.f32 %v1110_v42, %v5485_v44  ;;  %v1111_v29 = vmul.f32 0.5, %v1108_v58  ;;  %v4160_v58 = vld [vmem:[#allocation5] ss:$16 sps:$4 sm:$0xff]  }
 0x33b   :  { %v4109_v5 = vadd.f32 %v1114_v4, %v1113_v3 }
 0x33d   :  { %3013 = vtanh.f32 %v4109_v5 }
 0x340   :  { %v1157_v7 = vpop.f32.mrf.mxu0  ;;  %v1198_v8 = vpop.f32.mrf.mxu1 }
 0x341   :  { %v1205_v10 = vadd.f32 %v1157_v7, %v1119_v6  ;;  %v1207_v35 = vadd.f32 %v1198_v8, %v1121_v31  ;;  %v4181_v31 = vld [vmem:[#allocation7 + $0xcc] ss:$16 sps:$4 sm:$0xff]  }
 0x342   :  { %v1159_v12 = vpop.f32.mrf.mxu0  ;;  %v1200_v13 = vpop.f32.mrf.mxu1 }
 0x343   :  { %v1209_v14 = vmul.f32 0.5, %v1205_v10  ;;  %v1206_v17 = vadd.f32 %v1159_v12, %v1120_v9  ;;  %v1208_v28 = vadd.f32 %v1200_v13, %v1122_v18  ;;  %v1211_v37 = vmul.f32 0.5, %v1207_v35  ;;  %v4142_v13 = vld [vmem:[#allocation5 + $0x24] ss:$16 sps:$4 sm:$0xff]   ;;  %v4151_v18 = vld [vmem:[#allocation5 + $0x28] ss:$16 sps:$4 sm:$0xff]  }
 0x344   :  { %v1161_v20 = vpop.f32.mrf.mxu0  ;;  %v1202_v21 = vpop.f32.mrf.mxu1  ;;  %v4187_v35 = vld [vmem:[#allocation7 + $0xc8] ss:$16 sps:$4 sm:$0xff]  }
 0x345   :  { %3015 = vtanh.f32 %v1209_v14  ;;  %v1210_v24 = vmul.f32 0.5, %v1206_v17  ;;  %v4145_v14 = vld [vmem:[#allocation5 + $0x2c] ss:$16 sps:$4 sm:$0xff]   ;;  %v4148_v17 = vld [vmem:[#allocation5 + $0x20] ss:$16 sps:$4 sm:$0xff]  }
 0x346   :  { %v1162_v26 = vpop.f32.mrf.mxu0  ;;  %v1203_v27 = vpop.f32.mrf.mxu1  ;;  %v4154_v20 = vld [vmem:[#allocation5 + $0x4] ss:$16 sps:$4 sm:$0xff]   ;;  %v4157_v21 = vld [vmem:[#allocation5 + $0xc] ss:$16 sps:$4 sm:$0xff]  }
 0x347   :  { %3017 = vtanh.f32 %v1210_v24  ;;  %v4163_v24 = vld [vmem:[#allocation5 + $0x8] ss:$16 sps:$4 sm:$0xff]   ;;  %v4166_v26 = vld [vmem:[#allocation7 + $0xe4] ss:$16 sps:$4 sm:$0xff]   ;;  %v4169_v27 = vld [vmem:[#allocation7 + $0xec] ss:$16 sps:$4 sm:$0xff]  }
 0x348   :  { %3019 = vtanh.f32 %v1208_v28  ;;  %v4172_v28 = vld [vmem:[#allocation7 + $0xe0] ss:$16 sps:$4 sm:$0xff]  }
 0x349   :  { %3021 = vtanh.f32 %v1211_v37  ;;  %v4193_v37 = vld [vmem:[#allocation7 + $0xac] ss:$16 sps:$4 sm:$0xff]  }
 0x34a   :  { %v3014_v30 = vpop.eup %3013 }
 0x34b   :  { %v1117_v33 = vmul.f32 %v3014_v30, %v1111_v29  ;;  %v4175_v29 = vld [vmem:[#allocation7 + $0xe8] ss:$16 sps:$4 sm:$0xff]   ;;  %v4178_v30 = vld [vmem:[#allocation7 + $0xc4] ss:$16 sps:$4 sm:$0xff]  }
 0x34d   :  { %v1228_v36 = vpack.c.bf16 %v1117_v33, %v1117_v33  ;;  %v4184_v33 = vld [vmem:[#allocation7 + $0xc0] ss:$16 sps:$4 sm:$0xff]  }
 0x34f   :  { %1261 = vmatprep.mubr.bf16.mxu0 %v1228_v36  ;;  %1302 = vmatprep.mubr.bf16.mxu1 %v1228_v36  ;;  %v4190_v36 = vld [vmem:[#allocation7 + $0xa4] ss:$16 sps:$4 sm:$0xff]  }
 0x352   :  { %v3016_v38 = vpop.eup %3015 }
 0x353   :  { %v1215_v39 = vadd.f32 1.0, %v3016_v38  ;;  %v4196_v38 = vld [vmem:[#allocation7 + $0xa0] ss:$16 sps:$4 sm:$0xff]  }
 0x354   :  { %v3018_v40 = vpop.eup %3017  ;;  %5486 = vst [vmem:[#allocation25_spill] sm:$0xff] %v4196_v38 }
 0x355   :  { %v1218_v41 = vmul.f32 0.5, %v1215_v39  ;;  %v1216_v42 = vadd.f32 1.0, %v3018_v40  ;;  %v3020_v44 = vpop.eup %3019  ;;  %v4199_v39 = vld [vmem:[#allocation7 + $0xa8] ss:$16 sps:$4 sm:$0xff]   ;;  %v4202_v40 = vld [vmem:[#allocation7 + $0x84] ss:$16 sps:$4 sm:$0xff]  }
 0x356   :  { %v3022_v7 = vpop.eup %3021  ;;  %5487 = vst [vmem:[#allocation26_spill] sm:$0xff] %v4199_v39  ;;  %5488 = vst [vmem:[#allocation27_spill] sm:$0xff] %v4202_v40 }
 0x357   :  { %v1219_v43 = vmul.f32 0.5, %v1216_v42  ;;  %v1223_v4 = vmul.f32 %v3020_v44, %v1218_v41  ;;  %v1217_v8 = vadd.f32 1.0, %v3022_v7  ;;  %v4205_v41 = vld [vmem:[#allocation7 + $0x8c] ss:$16 sps:$4 sm:$0xff]   ;;  %v4208_v42 = vld [vmem:[#allocation7 + $0x80] ss:$16 sps:$4 sm:$0xff]  }
 0x358   :  { %5489 = vst [vmem:[#allocation28_spill] sm:$0xff] %v4205_v41  ;;  %5490 = vst [vmem:[#allocation29_spill] sm:$0xff] %v4208_v42  ;;  %v4214_v44 = vld [vmem:[#allocation7 + $0x64] ss:$16 sps:$4 sm:$0xff]   ;;  %v4223_v7 = vld [vmem:[#allocation7 + $0x68] ss:$16 sps:$4 sm:$0xff]  }
 0x359   :  { %v1222_v3 = vmul.f32 %v1219_v43, %v3957_v1  ;;  %v1220_v9 = vmul.f32 0.5, %v1217_v8  ;;  %v4139_v1 = vld [vmem:[#allocation5 + $0x48] ss:$16 sps:$4 sm:$0xff]   ;;  %5492 = vst [vmem:[#allocation31_spill] sm:$0xff] %v4214_v44  ;;  %5495 = vst [vmem:[#allocation34_spill] sm:$0xff] %v4223_v7 }
 0x35a   :  { %v4211_v43 = vld [vmem:[#allocation7 + $0x88] ss:$16 sps:$4 sm:$0xff]   ;;  %v4226_v8 = vld [vmem:[#allocation7 + $0x44] ss:$16 sps:$4 sm:$0xff]  }
 0x35b   :  { %v4113_v6 = vadd.f32 %v1223_v4, %v1222_v3  ;;  %5491 = vst [vmem:[#allocation30_spill] sm:$0xff] %v4211_v43  ;;  %v4217_v3 = vld [vmem:[#allocation7 + $0x6c] ss:$16 sps:$4 sm:$0xff]   ;;  %v4220_v4 = vld [vmem:[#allocation7 + $0x60] ss:$16 sps:$4 sm:$0xff]   ;;  %5496 = vst [vmem:[#allocation35_spill] sm:$0xff] %v4226_v8 }
 0x35c   :  { %5493 = vst [vmem:[#allocation32_spill] sm:$0xff] %v4217_v3  ;;  %5494 = vst [vmem:[#allocation33_spill] sm:$0xff] %v4220_v4 }
 0x35d   :  { %3023 = vtanh.f32 %v4113_v6 }
 0x36a   :  { %v3024_v10 = vpop.eup %3023 }
 0x36b   :  { %v1226_v11 = vmul.f32 %v3024_v10, %v1220_v9  ;;  %v4229_v9 = vld [vmem:[#allocation7 + $0x4c] ss:$16 sps:$4 sm:$0xff]   ;;  %v4232_v10 = vld [vmem:[#allocation7 + $0x40] ss:$16 sps:$4 sm:$0xff]  }
 0x36c   :  { %5497 = vst [vmem:[#allocation36_spill] sm:$0xff] %v4229_v9  ;;  %5498 = vst [vmem:[#allocation16_spill] sm:$0xff] %v4232_v10 }
 0x36d   :  { %v1227_v12 = vpack.c.bf16 %v1226_v11, %v1226_v11  ;;  %v4235_v11 = vld [vmem:[#allocation7 + $0x48] ss:$16 sps:$4 sm:$0xff]  }
 0x36e   :  { %5499 = vst [vmem:[#allocation17_spill] sm:$0xff] %v4235_v11 }
 0x36f   :  { %1262 = vmatmul.mubr.bf16.vlgmr.msra.gmra.mxu0 %v1227_v12  ;;  %1303 = vmatmul.mubr.bf16.vlgmr.msra.gmra.mxu1 %v1227_v12 }
 0x370   :  { %1335 = vmatpush1.bf16.msra.mxu0 %v3960_v51  ;;  %1376 = vmatpush1.bf16.msra.mxu1 %v3963_v61 }
 0x371   :  { %1336 = vmatprep.subr.bf16.mxu0 %v3966_v52  ;;  %1377 = vmatprep.subr.bf16.mxu1 %v3969_v46 }
 0x372   :  { %1366 = vmatprep.mubr.bf16.mxu0 %v5386_v2  ;;  %1407 = vmatprep.mubr.bf16.mxu1 %v5386_v2 }
 0x374   :  { %1337 = vmatpush1.bf16.msra.mxu0 %v3974_v47  ;;  %1378 = vmatpush1.bf16.msra.mxu1 %v3977_v63 }
 0x375   :  { %1338 = vmatprep.subr.bf16.mxu0 %v3980_v49  ;;  %1379 = vmatprep.subr.bf16.mxu1 %v3983_v60 }
 0x378   :  { %1339 = vmatpush1.bf16.msra.mxu0 %v3986_v53  ;;  %1380 = vmatpush1.bf16.msra.mxu1 %v3989_v54 }
 0x379   :  { %1340 = vmatprep.subr.bf16.mxu0 %v3992_v55  ;;  %1381 = vmatprep.subr.bf16.mxu1 %v3995_v0 }
 0x37c   :  { %1341 = vmatpush1.bf16.msra.mxu0 %v3998_v59  ;;  %1382 = vmatpush1.bf16.msra.mxu1 %v4001_v48 }
 0x37d   :  { %1342 = vmatprep.subr.bf16.mxu0 %v4004_v56  ;;  %1383 = vmatprep.subr.bf16.mxu1 %v4007_v23 }
 0x380   :  { %1343 = vmatpush1.bf16.msra.mxu0 %v4010_v62  ;;  %1384 = vmatpush1.bf16.msra.mxu1 %v4013_v57 }
 0x381   :  { %1344 = vmatprep.subr.bf16.mxu0 %v4016_v45  ;;  %1385 = vmatprep.subr.bf16.mxu1 %v4019_v22 }
 0x384   :  { %1345 = vmatpush1.bf16.msra.mxu0 %v4022_v50  ;;  %1386 = vmatpush1.bf16.msra.mxu1 %v4139_v1 }
 0x385   :  { %1346 = vmatprep.subr.bf16.mxu0 %v4142_v13  ;;  %1387 = vmatprep.subr.bf16.mxu1 %v4145_v14 }
 0x388   :  { %1347 = vmatpush1.bf16.msra.mxu0 %v4148_v17  ;;  %1388 = vmatpush1.bf16.msra.mxu1 %v4151_v18 }
 0x389   :  { %1348 = vmatprep.subr.bf16.mxu0 %v4154_v20  ;;  %1389 = vmatprep.subr.bf16.mxu1 %v4157_v21 }
 0x38c   :  { %1349 = vmatpush1.bf16.msra.mxu0 %v4160_v58  ;;  %1390 = vmatpush1.bf16.msra.mxu1 %v4163_v24 }
 0x38d   :  { %1440 = vmatprep.subr.bf16.mxu0 %v4166_v26  ;;  %1481 = vmatprep.subr.bf16.mxu1 %v4169_v27 }
 0x38f   :  { %1367 = vmatmul.mubr.bf16.vlgmr.msra.gmra.mxu0 %v1227_v12  ;;  %1408 = vmatmul.mubr.bf16.vlgmr.msra.gmra.mxu1 %v1227_v12  ;;  %v4238_v12 = vld [vmem:[#allocation7 + $0x24] ss:$16 sps:$4 sm:$0xff]  }
 0x390   :  { %1441 = vmatpush1.bf16.msra.mxu0 %v4172_v28  ;;  %1482 = vmatpush1.bf16.msra.mxu1 %v4175_v29  ;;  %5500 = vst [vmem:[#allocation37_spill] sm:$0xff] %v4238_v12 }
 0x391   :  { %1442 = vmatprep.subr.bf16.mxu0 %v4178_v30  ;;  %1483 = vmatprep.subr.bf16.mxu1 %v4181_v31 }
 0x394   :  { %1443 = vmatpush1.bf16.msra.mxu0 %v4184_v33  ;;  %1484 = vmatpush1.bf16.msra.mxu1 %v4187_v35 }
 0x395   :  { %1444 = vmatprep.subr.bf16.mxu0 %v4190_v36  ;;  %1485 = vmatprep.subr.bf16.mxu1 %v4193_v37 }
 0x398   :  { %1445 = vmatpush1.bf16.msra.mxu0 %v4196_v38  ;;  %1486 = vmatpush1.bf16.msra.mxu1 %v4199_v39 }
 0x399   :  { %1446 = vmatprep.subr.bf16.mxu0 %v4202_v40  ;;  %1487 = vmatprep.subr.bf16.mxu1 %v4205_v41 }
 0x39c   :  { %1447 = vmatpush1.bf16.msra.mxu0 %v4208_v42  ;;  %1488 = vmatpush1.bf16.msra.mxu1 %v4211_v43 }
 0x39d   :  { %1448 = vmatprep.subr.bf16.mxu0 %v4214_v44  ;;  %1489 = vmatprep.subr.bf16.mxu1 %v4217_v3 }
 0x3a0   :  { %1449 = vmatpush1.bf16.msra.mxu0 %v4220_v4  ;;  %1490 = vmatpush1.bf16.msra.mxu1 %v4223_v7  ;;  %v4241_v7 = vld [vmem:[#allocation7 + $0x2c] ss:$16 sps:$4 sm:$0xff]  }
 0x3a1   :  { %1450 = vmatprep.subr.bf16.mxu0 %v4226_v8  ;;  %1491 = vmatprep.subr.bf16.mxu1 %v4229_v9  ;;  %5501 = vst [vmem:[#allocation38_spill] sm:$0xff] %v4241_v7  ;;  %v4244_v8 = vld [vmem:[#allocation7 + $0x20] ss:$16 sps:$4 sm:$0xff]   ;;  %v4247_v9 = vld [vmem:[#allocation7 + $0x28] ss:$16 sps:$4 sm:$0xff]  }
 0x3a2   :  { %5502 = vst [vmem:[#allocation39_spill] sm:$0xff] %v4244_v8  ;;  %5503 = vst [vmem:[#allocation40_spill] sm:$0xff] %v4247_v9 }
 0x3a4   :  { %1451 = vmatpush1.bf16.msra.mxu0 %v4232_v10  ;;  %1492 = vmatpush1.bf16.msra.mxu1 %v4235_v11  ;;  %v4250_v10 = vld [vmem:[#allocation7 + $0x4] ss:$16 sps:$4 sm:$0xff]   ;;  %v4253_v11 = vld [vmem:[#allocation7 + $0xc] ss:$16 sps:$4 sm:$0xff]  }
 0x3a5   :  { %1452 = vmatprep.subr.bf16.mxu0 %v4238_v12  ;;  %1493 = vmatprep.subr.bf16.mxu1 %v4241_v7  ;;  %5504 = vst [vmem:[#allocation41_spill] sm:$0xff] %v4250_v10  ;;  %5505 = vst [vmem:[#allocation42_spill] sm:$0xff] %v4253_v11  ;;  %v4256_v12 = vld [vmem:[#allocation7] ss:$16 sps:$4 sm:$0xff]   ;;  %v4259_v7 = vld [vmem:[#allocation7 + $0x8] ss:$16 sps:$4 sm:$0xff]  }
 0x3a6   :  { %5506 = vst [vmem:[#allocation43_spill] sm:$0xff] %v4256_v12  ;;  %5507 = vst [vmem:[#allocation44_spill] sm:$0xff] %v4259_v7 }
 0x3a8   :  { %1453 = vmatpush1.bf16.msra.mxu0 %v4244_v8  ;;  %1494 = vmatpush1.bf16.msra.mxu1 %v4247_v9  ;;  %v4262_v8 = vld [vmem:[#allocation7 + $0x1e4] ss:$16 sps:$4 sm:$0xff]   ;;  %v4265_v9 = vld [vmem:[#allocation7 + $0x1ec] ss:$16 sps:$4 sm:$0xff]  }
 0x3a9   :  { %1454 = vmatprep.subr.bf16.mxu0 %v4250_v10  ;;  %1495 = vmatprep.subr.bf16.mxu1 %v4253_v11  ;;  %5508 = vst [vmem:[#allocation45_spill] sm:$0xff] %v4262_v8  ;;  %5509 = vst [vmem:[#allocation46_spill] sm:$0xff] %v4265_v9  ;;  %v4268_v10 = vld [vmem:[#allocation7 + $0x1e0] ss:$16 sps:$4 sm:$0xff]   ;;  %v4271_v11 = vld [vmem:[#allocation7 + $0x1e8] ss:$16 sps:$4 sm:$0xff]  }
 0x3aa   :  { %5510 = vst [vmem:[#allocation47_spill] sm:$0xff] %v4268_v10  ;;  %5511 = vst [vmem:[#allocation48_spill] sm:$0xff] %v4271_v11 }
 0x3ac   :  { %1455 = vmatpush1.bf16.msra.mxu0 %v4256_v12  ;;  %1496 = vmatpush1.bf16.msra.mxu1 %v4259_v7  ;;  %v4274_v12 = vld [vmem:[#allocation7 + $0x1c4] ss:$16 sps:$4 sm:$0xff]   ;;  %v4277_v7 = vld [vmem:[#allocation7 + $0x1cc] ss:$16 sps:$4 sm:$0xff]  }
 0x3ad   :  { %1456 = vmatprep.subr.bf16.mxu0 %v4262_v8  ;;  %1497 = vmatprep.subr.bf16.mxu1 %v4265_v9  ;;  %5512 = vst [vmem:[#allocation49_spill] sm:$0xff] %v4274_v12  ;;  %5513 = vst [vmem:[#allocation50_spill] sm:$0xff] %v4277_v7  ;;  %v4280_v8 = vld [vmem:[#allocation7 + $0x1c0] ss:$16 sps:$4 sm:$0xff]   ;;  %v4283_v9 = vld [vmem:[#allocation7 + $0x1c8] ss:$16 sps:$4 sm:$0xff]  }
 0x3ae   :  { %5514 = vst [vmem:[#allocation51_spill] sm:$0xff] %v4280_v8  ;;  %5515 = vst [vmem:[#allocation52_spill] sm:$0xff] %v4283_v9 }
 0x3b0   :  { %1457 = vmatpush2.bf16.msra.mxu0 %v4268_v10  ;;  %1498 = vmatpush2.bf16.msra.mxu1 %v4271_v11  ;;  %v4286_v10 = vld [vmem:[#allocation7 + $0x1a4] ss:$16 sps:$4 sm:$0xff]   ;;  %v4289_v11 = vld [vmem:[#allocation7 + $0x1ac] ss:$16 sps:$4 sm:$0xff]  }
 0x3b1   :  { %1458 = vmatprep.subr.bf16.mxu0 %v4274_v12  ;;  %1499 = vmatprep.subr.bf16.mxu1 %v4277_v7  ;;  %5516 = vst [vmem:[#allocation53_spill] sm:$0xff] %v4286_v10  ;;  %5517 = vst [vmem:[#allocation54_spill] sm:$0xff] %v4289_v11  ;;  %v4292_v12 = vld [vmem:[#allocation7 + $0x1a0] ss:$16 sps:$4 sm:$0xff]   ;;  %v4295_v7 = vld [vmem:[#allocation7 + $0x1a8] ss:$16 sps:$4 sm:$0xff]  }
 0x3b2   :  { %5518 = vst [vmem:[#allocation55_spill] sm:$0xff] %v4292_v12  ;;  %5519 = vst [vmem:[#allocation56_spill] sm:$0xff] %v4295_v7 }
 0x3b4   :  { %1459 = vmatpush2.bf16.msra.mxu0 %v4280_v8  ;;  %1500 = vmatpush2.bf16.msra.mxu1 %v4283_v9  ;;  %v4298_v8 = vld [vmem:[#allocation7 + $0x184] ss:$16 sps:$4 sm:$0xff]   ;;  %v4301_v9 = vld [vmem:[#allocation7 + $0x18c] ss:$16 sps:$4 sm:$0xff]  }
 0x3b5   :  { %1460 = vmatprep.subr.bf16.mxu0 %v4286_v10  ;;  %1501 = vmatprep.subr.bf16.mxu1 %v4289_v11  ;;  %5520 = vst [vmem:[#allocation57_spill] sm:$0xff] %v4298_v8  ;;  %5521 = vst [vmem:[#allocation58_spill] sm:$0xff] %v4301_v9  ;;  %v4304_v10 = vld [vmem:[#allocation7 + $0x180] ss:$16 sps:$4 sm:$0xff]   ;;  %v4307_v11 = vld [vmem:[#allocation7 + $0x188] ss:$16 sps:$4 sm:$0xff]  }
 0x3b6   :  { %5522 = vst [vmem:[#allocation59_spill] sm:$0xff] %v4304_v10  ;;  %5523 = vst [vmem:[#allocation60_spill] sm:$0xff] %v4307_v11 }
 0x3b8   :  { %1461 = vmatpush2.bf16.msra.mxu0 %v4292_v12  ;;  %1502 = vmatpush2.bf16.msra.mxu1 %v4295_v7  ;;  %v4310_v12 = vld [vmem:[#allocation7 + $0x164] ss:$16 sps:$4 sm:$0xff]   ;;  %v4313_v7 = vld [vmem:[#allocation7 + $0x16c] ss:$16 sps:$4 sm:$0xff]  }
 0x3b9   :  { %1462 = vmatprep.subr.bf16.mxu0 %v4298_v8  ;;  %1503 = vmatprep.subr.bf16.mxu1 %v4301_v9  ;;  %5524 = vst [vmem:[#allocation61_spill] sm:$0xff] %v4310_v12  ;;  %5525 = vst [vmem:[#allocation62_spill] sm:$0xff] %v4313_v7  ;;  %v4316_v8 = vld [vmem:[#allocation7 + $0x160] ss:$16 sps:$4 sm:$0xff]   ;;  %v4319_v9 = vld [vmem:[#allocation7 + $0x168] ss:$16 sps:$4 sm:$0xff]  }
 0x3ba   :  { %5526 = vst [vmem:[#allocation63_spill] sm:$0xff] %v4316_v8  ;;  %5527 = vst [vmem:[#allocation64_spill] sm:$0xff] %v4319_v9 }
 0x3bc   :  { %1463 = vmatpush2.bf16.msra.mxu0 %v4304_v10  ;;  %1504 = vmatpush2.bf16.msra.mxu1 %v4307_v11  ;;  %v4322_v10 = vld [vmem:[#allocation7 + $0x144] ss:$16 sps:$4 sm:$0xff]   ;;  %v4325_v11 = vld [vmem:[#allocation7 + $0x14c] ss:$16 sps:$4 sm:$0xff]  }
 0x3bd   :  { %1464 = vmatprep.subr.bf16.mxu0 %v4310_v12  ;;  %1505 = vmatprep.subr.bf16.mxu1 %v4313_v7  ;;  %5528 = vst [vmem:[#allocation65_spill] sm:$0xff] %v4322_v10  ;;  %5529 = vst [vmem:[#allocation66_spill] sm:$0xff] %v4325_v11  ;;  %v4328_v12 = vld [vmem:[#allocation7 + $0x140] ss:$16 sps:$4 sm:$0xff]   ;;  %v4331_v7 = vld [vmem:[#allocation7 + $0x148] ss:$16 sps:$4 sm:$0xff]  }
 0x3be   :  { %5530 = vst [vmem:[#allocation67_spill] sm:$0xff] %v4328_v12  ;;  %5531 = vst [vmem:[#allocation68_spill] sm:$0xff] %v4331_v7 }
 0x3c0   :  { %1465 = vmatpush2.bf16.msra.mxu0 %v4316_v8  ;;  %1506 = vmatpush2.bf16.msra.mxu1 %v4319_v9  ;;  %v4334_v8 = vld [vmem:[#allocation7 + $0x124] ss:$16 sps:$4 sm:$0xff]   ;;  %v4337_v9 = vld [vmem:[#allocation7 + $0x12c] ss:$16 sps:$4 sm:$0xff]  }
 0x3c1   :  { %1466 = vmatprep.subr.bf16.mxu0 %v4322_v10  ;;  %1507 = vmatprep.subr.bf16.mxu1 %v4325_v11  ;;  %5532 = vst [vmem:[#allocation69_spill] sm:$0xff] %v4334_v8  ;;  %5533 = vst [vmem:[#allocation22_spill] sm:$0xff] %v4337_v9  ;;  %v4340_v10 = vld [vmem:[#allocation7 + $0x120] ss:$16 sps:$4 sm:$0xff]   ;;  %v4343_v11 = vld [vmem:[#allocation7 + $0x128] ss:$16 sps:$4 sm:$0xff]  }
 0x3c2   :  { %5534 = vst [vmem:[#allocation70_spill] sm:$0xff] %v4340_v10  ;;  %5535 = vst [vmem:[#allocation71_spill] sm:$0xff] %v4343_v11 }
 0x3c4   :  { %1467 = vmatpush2.bf16.msra.mxu0 %v4328_v12  ;;  %1508 = vmatpush2.bf16.msra.mxu1 %v4331_v7  ;;  %v4346_v12 = vld [vmem:[#allocation7 + $0x104] ss:$16 sps:$4 sm:$0xff]   ;;  %v4349_v7 = vld [vmem:[#allocation7 + $0x10c] ss:$16 sps:$4 sm:$0xff]  }
 0x3c5   :  { %1468 = vmatprep.subr.bf16.mxu0 %v4334_v8  ;;  %1509 = vmatprep.subr.bf16.mxu1 %v4337_v9  ;;  %5536 = vst [vmem:[#allocation72_spill] sm:$0xff] %v4346_v12  ;;  %5537 = vst [vmem:[#allocation73_spill] sm:$0xff] %v4349_v7  ;;  %v4352_v8 = vld [vmem:[#allocation7 + $0x100] ss:$16 sps:$4 sm:$0xff]   ;;  %v4355_v9 = vld [vmem:[#allocation7 + $0x108] ss:$16 sps:$4 sm:$0xff]  }
 0x3c6   :  { %5538 = vst [vmem:[#allocation74_spill] sm:$0xff] %v4352_v8  ;;  %5539 = vst [vmem:[#allocation75_spill] sm:$0xff] %v4355_v9 }
 0x3c8   :  { %1469 = vmatpush2.bf16.msra.mxu0 %v4340_v10  ;;  %1510 = vmatpush2.bf16.msra.mxu1 %v4343_v11 }
 0x3c9   :  { %1470 = vmatprep.subr.bf16.mxu0 %v4346_v12  ;;  %1511 = vmatprep.subr.bf16.mxu1 %v4349_v7 }
 0x3cc   :  { %1471 = vmatpush2.bf16.msra.mxu0 %v4352_v8  ;;  %1512 = vmatpush2.bf16.msra.mxu1 %v4355_v9 }
 0x3cd   :  { %1545 = vmatprep.subr.bf16.mxu0 %v4098_v15  ;;  %1586 = vmatprep.subr.bf16.mxu1 %v4101_v16 }
 0x42f   :  { %v1263_v11 = vpop.f32.mrf.mxu0  ;;  %v1304_v10 = vpop.f32.mrf.mxu1 }
 0x430   :  { %v1264_v12 = vadd.f32 %v1263_v11, %v5481_v19  ;;  %v1305_v16 = vadd.f32 %v1304_v10, %v5484_v34 }
 0x431   :  { %v1265_v4 = vpop.f32.mrf.mxu0  ;;  %v1306_v3 = vpop.f32.mrf.mxu1 }
 0x432   :  { %v1311_v44 = vmul.f32 0.5, %v1264_v12  ;;  %v1266_v7 = vadd.f32 %v1265_v4, %v5482_v25  ;;  %v1307_v15 = vadd.f32 %v1306_v3, %v5483_v32  ;;  %v1313_v9 = vmul.f32 0.5, %v1305_v16 }
 0x433   :  { %v1267_v43 = vpop.f32.mrf.mxu0  ;;  %v1308_v42 = vpop.f32.mrf.mxu1 }
 0x434   :  { %3025 = vtanh.f32 %v1311_v44  ;;  %v1312_v8 = vmul.f32 0.5, %v1266_v7  ;;  %v1331_v7 = vld [vmem:[#allocation2 + $0x68] sm:$0xff] }
 0x435   :  { %v1268_v41 = vpop.f32.mrf.mxu0  ;;  %v1309_v40 = vpop.f32.mrf.mxu1 }
 0x436   :  { %3027 = vtanh.f32 %v1312_v8  ;;  %v1330_v40 = vld [vmem:[#allocation2 + $0x60] sm:$0xff] }
 0x437   :  { %3029 = vtanh.f32 %v1307_v15 }
 0x438   :  { %3031 = vtanh.f32 %v1313_v9 }
 0x441   :  { %v3026_v39 = vpop.eup %3025 }
 0x442   :  { %v1317_v11 = vadd.f32 1.0, %v3026_v39 }
 0x443   :  { %v3028_v19 = vpop.eup %3027 }
 0x444   :  { %v1320_v38 = vmul.f32 0.5, %v1317_v11  ;;  %v1318_v12 = vadd.f32 1.0, %v3028_v19  ;;  %v3030_v43 = vpop.eup %3029  ;;  %v1333_v19 = vld [vmem:[#allocation2 + $0x78] sm:$0xff] }
 0x445   :  { %v3032_v8 = vpop.eup %3031 }
 0x446   :  { %v1321_v4 = vmul.f32 0.5, %v1318_v12  ;;  %v1325_v44 = vmul.f32 %v3030_v43, %v1320_v38  ;;  %v1319_v32 = vadd.f32 1.0, %v3032_v8 }
 0x448   :  { %v1324_v42 = vmul.f32 %v1321_v4, %v4109_v5 }
 0x44a   :  { %v4365_v41 = vadd.f32 %v1325_v44, %v1324_v42  ;;  %v1322_v42 = vmul.f32 0.5, %v1319_v32 }
 0x44c   :  { %5540 = vst [vmem:[#allocation76_spill] sm:$0xff] %v4365_v41  ;;  %3033 = vtanh.f32 %v4365_v41  ;;  %v1332_v41 = vld [vmem:[#allocation2 + $0x70] sm:$0xff] }
 0x44f   :  { %v1368_v15 = vpop.f32.mrf.mxu0  ;;  %v1409_v3 = vpop.f32.mrf.mxu1 }
 0x450   :  { %v1416_v16 = vadd.f32 %v1368_v15, %v1330_v40  ;;  %v1418_v15 = vadd.f32 %v1409_v3, %v1332_v41 }
 0x451   :  { %v1370_v39 = vpop.f32.mrf.mxu0  ;;  %v1411_v10 = vpop.f32.mrf.mxu1 }
 0x452   :  { %v1420_v11 = vmul.f32 0.5, %v1416_v16  ;;  %v1417_v9 = vadd.f32 %v1370_v39, %v1331_v7  ;;  %v1419_v43 = vadd.f32 %v1411_v10, %v1333_v19  ;;  %v1422_v7 = vmul.f32 0.5, %v1418_v15  ;;  %v5567_v15 = vld [vmem:[#allocation49_spill] sm:$0xff] }
 0x453   :  { %v1372_v12 = vpop.f32.mrf.mxu0  ;;  %v1413_v34 = vpop.f32.mrf.mxu1 }
 0x454   :  { %3035 = vtanh.f32 %v1420_v11  ;;  %v1421_v5 = vmul.f32 0.5, %v1417_v9 }
 0x455   :  { %v1373_v38 = vpop.f32.mrf.mxu0  ;;  %v1414_v4 = vpop.f32.mrf.mxu1 }
 0x456   :  { %3037 = vtanh.f32 %v1421_v5 }
 0x457   :  { %3039 = vtanh.f32 %v1419_v43  ;;  %v5563_v43 = vld [vmem:[#allocation45_spill] sm:$0xff] }
 0x458   :  { %3041 = vtanh.f32 %v1422_v7  ;;  %v5568_v7 = vld [vmem:[#allocation50_spill] sm:$0xff] }
 0x459   :  { %v3034_v44 = vpop.eup %3033 }
 0x45a   :  { %v1328_v40 = vmul.f32 %v3034_v44, %v1322_v42  ;;  %v5564_v42 = vld [vmem:[#allocation46_spill] sm:$0xff]  ;;  %v5565_v44 = vld [vmem:[#allocation47_spill] sm:$0xff] }
 0x45c   :  { %v1439_v25 = vpack.c.bf16 %v1328_v40, %v1328_v40  ;;  %v5566_v40 = vld [vmem:[#allocation48_spill] sm:$0xff] }
 0x45e   :  { %1472 = vmatprep.mubr.bf16.mxu0 %v1439_v25  ;;  %1513 = vmatprep.mubr.bf16.mxu1 %v1439_v25 }
 0x461   :  { %v3036_v16 = vpop.eup %3035 }
 0x462   :  { %v1426_v39 = vadd.f32 1.0, %v3036_v16  ;;  %v5569_v16 = vld [vmem:[#allocation51_spill] sm:$0xff] }
 0x463   :  { %v3038_v34 = vpop.eup %3037 }
 0x464   :  { %v1429_v8 = vmul.f32 0.5, %v1426_v39  ;;  %v1427_v11 = vadd.f32 1.0, %v3038_v34  ;;  %v3040_v12 = vpop.eup %3039  ;;  %v5570_v39 = vld [vmem:[#allocation52_spill] sm:$0xff]  ;;  %v5571_v34 = vld [vmem:[#allocation53_spill] sm:$0xff] }
 0x465   :  { %v3042_v41 = vpop.eup %3041 }
 0x466   :  { %v1430_v9 = vmul.f32 0.5, %v1427_v11  ;;  %v1434_v32 = vmul.f32 %v3040_v12, %v1429_v8  ;;  %v1428_v3 = vadd.f32 1.0, %v3042_v41  ;;  %v5572_v8 = vld [vmem:[#allocation54_spill] sm:$0xff]  ;;  %v5573_v11 = vld [vmem:[#allocation55_spill] sm:$0xff]  ;;  %v5575_v12 = vld [vmem:[#allocation57_spill] sm:$0xff] }
 0x467   :  { %v5578_v41 = vld [vmem:[#allocation60_spill] sm:$0xff] }
 0x468   :  { %v1433_v10 = vmul.f32 %v1430_v9, %v4113_v6  ;;  %v1431_v5 = vmul.f32 0.5, %v1428_v3  ;;  %v5562_v6 = vld [vmem:[#allocation44_spill] sm:$0xff]  ;;  %v5579_v3 = vld [vmem:[#allocation61_spill] sm:$0xff] }
 0x469   :  { %v5574_v9 = vld [vmem:[#allocation56_spill] sm:$0xff] }
 0x46a   :  { %v4369_v19 = vadd.f32 %v1434_v32, %v1433_v10  ;;  %v5576_v10 = vld [vmem:[#allocation58_spill] sm:$0xff]  ;;  %v5577_v32 = vld [vmem:[#allocation59_spill] sm:$0xff] }
 0x46c   :  { %3043 = vtanh.f32 %v4369_v19 }
 0x479   :  { %v3044_v25 = vpop.eup %3043 }
 0x47a   :  { %v1437_v38 = vmul.f32 %v3044_v25, %v1431_v5  ;;  %v5580_v5 = vld [vmem:[#allocation62_spill] sm:$0xff]  ;;  %v5581_v25 = vld [vmem:[#allocation63_spill] sm:$0xff] }
 0x47c   :  { %v1438_v4 = vpack.c.bf16 %v1437_v38, %v1437_v38  ;;  %v5582_v38 = vld [vmem:[#allocation64_spill] sm:$0xff] }
 0x47e   :  { %1473 = vmatmul.mubr.bf16.vlgmr.msra.gmra.mxu0 %v1438_v4  ;;  %1514 = vmatmul.mubr.bf16.vlgmr.msra.gmra.mxu1 %v1438_v4 }
 0x47f   :  { %1546 = vmatpush1.bf16.msra.mxu0 %v3960_v51  ;;  %1587 = vmatpush1.bf16.msra.mxu1 %v3963_v61  ;;  %v5541_v51 = vld [vmem:[#allocation25_spill] sm:$0xff]  ;;  %v5542_v61 = vld [vmem:[#allocation26_spill] sm:$0xff] }
 0x480   :  { %1547 = vmatprep.subr.bf16.mxu0 %v3966_v52  ;;  %1588 = vmatprep.subr.bf16.mxu1 %v3969_v46  ;;  %v5543_v52 = vld [vmem:[#allocation27_spill] sm:$0xff]  ;;  %v5544_v46 = vld [vmem:[#allocation28_spill] sm:$0xff] }
 0x481   :  { %1577 = vmatprep.mubr.bf16.mxu0 %v5386_v2  ;;  %1618 = vmatprep.mubr.bf16.mxu1 %v5386_v2 }
 0x483   :  { %1548 = vmatpush1.bf16.msra.mxu0 %v3974_v47  ;;  %1589 = vmatpush1.bf16.msra.mxu1 %v3977_v63  ;;  %v5545_v47 = vld [vmem:[#allocation29_spill] sm:$0xff]  ;;  %v5546_v63 = vld [vmem:[#allocation30_spill] sm:$0xff] }
 0x484   :  { %1549 = vmatprep.subr.bf16.mxu0 %v3980_v49  ;;  %1590 = vmatprep.subr.bf16.mxu1 %v3983_v60  ;;  %v5547_v49 = vld [vmem:[#allocation31_spill] sm:$0xff]  ;;  %v5548_v60 = vld [vmem:[#allocation32_spill] sm:$0xff] }
 0x487   :  { %1550 = vmatpush1.bf16.msra.mxu0 %v3986_v53  ;;  %1591 = vmatpush1.bf16.msra.mxu1 %v3989_v54  ;;  %v5549_v53 = vld [vmem:[#allocation33_spill] sm:$0xff]  ;;  %v5550_v54 = vld [vmem:[#allocation34_spill] sm:$0xff] }
 0x488   :  { %1551 = vmatprep.subr.bf16.mxu0 %v3992_v55  ;;  %1592 = vmatprep.subr.bf16.mxu1 %v3995_v0  ;;  %v5551_v55 = vld [vmem:[#allocation35_spill] sm:$0xff]  ;;  %v5552_v0 = vld [vmem:[#allocation36_spill] sm:$0xff] }
 0x48b   :  { %1552 = vmatpush1.bf16.msra.mxu0 %v3998_v59  ;;  %1593 = vmatpush1.bf16.msra.mxu1 %v4001_v48  ;;  %v5553_v59 = vld [vmem:[#allocation16_spill] sm:$0xff]  ;;  %v5554_v48 = vld [vmem:[#allocation17_spill] sm:$0xff] }
 0x48c   :  { %1553 = vmatprep.subr.bf16.mxu0 %v4004_v56  ;;  %1594 = vmatprep.subr.bf16.mxu1 %v4007_v23  ;;  %v5555_v56 = vld [vmem:[#allocation37_spill] sm:$0xff]  ;;  %v5556_v23 = vld [vmem:[#allocation38_spill] sm:$0xff] }
 0x48f   :  { %1554 = vmatpush1.bf16.msra.mxu0 %v4010_v62  ;;  %1595 = vmatpush1.bf16.msra.mxu1 %v4013_v57  ;;  %v5557_v62 = vld [vmem:[#allocation39_spill] sm:$0xff]  ;;  %v5558_v57 = vld [vmem:[#allocation40_spill] sm:$0xff] }
 0x490   :  { %1555 = vmatprep.subr.bf16.mxu0 %v4016_v45  ;;  %1596 = vmatprep.subr.bf16.mxu1 %v4019_v22  ;;  %v5559_v45 = vld [vmem:[#allocation41_spill] sm:$0xff]  ;;  %v5560_v22 = vld [vmem:[#allocation42_spill] sm:$0xff] }
 0x493   :  { %1556 = vmatpush1.bf16.msra.mxu0 %v4022_v50  ;;  %1597 = vmatpush1.bf16.msra.mxu1 %v4139_v1  ;;  %v5561_v50 = vld [vmem:[#allocation43_spill] sm:$0xff] }
 0x494   :  { %1557 = vmatprep.subr.bf16.mxu0 %v4142_v13  ;;  %1598 = vmatprep.subr.bf16.mxu1 %v4145_v14 }
 0x497   :  { %1558 = vmatpush1.bf16.msra.mxu0 %v4148_v17  ;;  %1599 = vmatpush1.bf16.msra.mxu1 %v4151_v18 }
 0x498   :  { %1559 = vmatprep.subr.bf16.mxu0 %v4154_v20  ;;  %1600 = vmatprep.subr.bf16.mxu1 %v4157_v21 }
 0x49b   :  { %1560 = vmatpush1.bf16.msra.mxu0 %v4160_v58  ;;  %1601 = vmatpush1.bf16.msra.mxu1 %v4163_v24 }
 0x49c   :  { %1651 = vmatprep.subr.bf16.mxu0 %v4166_v26  ;;  %1692 = vmatprep.subr.bf16.mxu1 %v4169_v27 }
 0x49e   :  { %1578 = vmatmul.mubr.bf16.vlgmr.msra.gmra.mxu0 %v1438_v4  ;;  %1619 = vmatmul.mubr.bf16.vlgmr.msra.gmra.mxu1 %v1438_v4  ;;  %v5583_v4 = vld [vmem:[#allocation65_spill] sm:$0xff] }
 0x49f   :  { %1652 = vmatpush1.bf16.msra.mxu0 %v4172_v28  ;;  %1693 = vmatpush1.bf16.msra.mxu1 %v4175_v29 }
 0x4a0   :  { %1653 = vmatprep.subr.bf16.mxu0 %v4178_v30  ;;  %1694 = vmatprep.subr.bf16.mxu1 %v4181_v31 }
 0x4a3   :  { %1654 = vmatpush1.bf16.msra.mxu0 %v4184_v33  ;;  %1695 = vmatpush1.bf16.msra.mxu1 %v4187_v35 }
 0x4a4   :  { %1655 = vmatprep.subr.bf16.mxu0 %v4190_v36  ;;  %1696 = vmatprep.subr.bf16.mxu1 %v4193_v37 }
 0x4a7   :  { %1656 = vmatpush1.bf16.msra.mxu0 %v5541_v51  ;;  %1697 = vmatpush1.bf16.msra.mxu1 %v5542_v61 }
 0x4a8   :  { %1657 = vmatprep.subr.bf16.mxu0 %v5543_v52  ;;  %1698 = vmatprep.subr.bf16.mxu1 %v5544_v46 }
 0x4ab   :  { %1658 = vmatpush1.bf16.msra.mxu0 %v5545_v47  ;;  %1699 = vmatpush1.bf16.msra.mxu1 %v5546_v63 }
 0x4ac   :  { %1659 = vmatprep.subr.bf16.mxu0 %v5547_v49  ;;  %1700 = vmatprep.subr.bf16.mxu1 %v5548_v60 }
 0x4af   :  { %1660 = vmatpush1.bf16.msra.mxu0 %v5549_v53  ;;  %1701 = vmatpush1.bf16.msra.mxu1 %v5550_v54 }
 0x4b0   :  { %1661 = vmatprep.subr.bf16.mxu0 %v5551_v55  ;;  %1702 = vmatprep.subr.bf16.mxu1 %v5552_v0 }
 0x4b3   :  { %1662 = vmatpush1.bf16.msra.mxu0 %v5553_v59  ;;  %1703 = vmatpush1.bf16.msra.mxu1 %v5554_v48 }
 0x4b4   :  { %1663 = vmatprep.subr.bf16.mxu0 %v5555_v56  ;;  %1704 = vmatprep.subr.bf16.mxu1 %v5556_v23 }
 0x4b7   :  { %1664 = vmatpush1.bf16.msra.mxu0 %v5557_v62  ;;  %1705 = vmatpush1.bf16.msra.mxu1 %v5558_v57 }
 0x4b8   :  { %1665 = vmatprep.subr.bf16.mxu0 %v5559_v45  ;;  %1706 = vmatprep.subr.bf16.mxu1 %v5560_v22 }
 0x4bb   :  { %1666 = vmatpush1.bf16.msra.mxu0 %v5561_v50  ;;  %1707 = vmatpush1.bf16.msra.mxu1 %v5562_v6 }
 0x4bc   :  { %1667 = vmatprep.subr.bf16.mxu0 %v5563_v43  ;;  %1708 = vmatprep.subr.bf16.mxu1 %v5564_v42 }
 0x4bf   :  { %1668 = vmatpush2.bf16.msra.mxu0 %v5565_v44  ;;  %1709 = vmatpush2.bf16.msra.mxu1 %v5566_v40 }
 0x4c0   :  { %1669 = vmatprep.subr.bf16.mxu0 %v5567_v15  ;;  %1710 = vmatprep.subr.bf16.mxu1 %v5568_v7 }
 0x4c3   :  { %1670 = vmatpush2.bf16.msra.mxu0 %v5569_v16  ;;  %1711 = vmatpush2.bf16.msra.mxu1 %v5570_v39 }
 0x4c4   :  { %1671 = vmatprep.subr.bf16.mxu0 %v5571_v34  ;;  %1712 = vmatprep.subr.bf16.mxu1 %v5572_v8  ;;  %v5597_v8 = vld [vmem:[#allocation18_spill] sm:$0xff] }
 0x4c7   :  { %1672 = vmatpush2.bf16.msra.mxu0 %v5573_v11  ;;  %1713 = vmatpush2.bf16.msra.mxu1 %v5574_v9  ;;  %v5584_v11 = vld [vmem:[#allocation66_spill] sm:$0xff]  ;;  %v5585_v9 = vld [vmem:[#allocation67_spill] sm:$0xff] }
 0x4c8   :  { %1673 = vmatprep.subr.bf16.mxu0 %v5575_v12  ;;  %1714 = vmatprep.subr.bf16.mxu1 %v5576_v10  ;;  %v5586_v12 = vld [vmem:[#allocation68_spill] sm:$0xff]  ;;  %v5587_v10 = vld [vmem:[#allocation69_spill] sm:$0xff] }
 0x4cb   :  { %1674 = vmatpush2.bf16.msra.mxu0 %v5577_v32  ;;  %1715 = vmatpush2.bf16.msra.mxu1 %v5578_v41  ;;  %v5588_v32 = vld [vmem:[#allocation22_spill] sm:$0xff] }
 0x4cc   :  { %1675 = vmatprep.subr.bf16.mxu0 %v5579_v3  ;;  %1716 = vmatprep.subr.bf16.mxu1 %v5580_v5  ;;  %v5589_v41 = vld [vmem:[#allocation70_spill] sm:$0xff]  ;;  %v5590_v3 = vld [vmem:[#allocation71_spill] sm:$0xff]  ;;  %v5591_v5 = vld [vmem:[#allocation72_spill] sm:$0xff] }
 0x4cf   :  { %1676 = vmatpush2.bf16.msra.mxu0 %v5581_v25  ;;  %1717 = vmatpush2.bf16.msra.mxu1 %v5582_v38  ;;  %v5592_v25 = vld [vmem:[#allocation73_spill] sm:$0xff]  ;;  %v5593_v38 = vld [vmem:[#allocation74_spill] sm:$0xff] }
 0x4d0   :  { %1677 = vmatprep.subr.bf16.mxu0 %v5583_v4  ;;  %1718 = vmatprep.subr.bf16.mxu1 %v5584_v11  ;;  %v5594_v4 = vld [vmem:[#allocation75_spill] sm:$0xff] }
 0x4d1   :  { %v5595_v11 = vld [vmem:[#allocation23_spill] sm:$0xff] }
 0x4d3   :  { %1678 = vmatpush2.bf16.msra.mxu0 %v5585_v9  ;;  %1719 = vmatpush2.bf16.msra.mxu1 %v5586_v12  ;;  %v5596_v9 = vld [vmem:[#allocation24_spill] sm:$0xff] }
 0x4d4   :  { %1679 = vmatprep.subr.bf16.mxu0 %v5587_v10  ;;  %1720 = vmatprep.subr.bf16.mxu1 %v5588_v32 }
 0x4d7   :  { %1680 = vmatpush2.bf16.msra.mxu0 %v5589_v41  ;;  %1721 = vmatpush2.bf16.msra.mxu1 %v5590_v3  ;;  %v5598_v3 = vld [vmem:[#allocation19_spill] sm:$0xff] }
 0x4d8   :  { %1681 = vmatprep.subr.bf16.mxu0 %v5591_v5  ;;  %1722 = vmatprep.subr.bf16.mxu1 %v5592_v25 }
 0x4db   :  { %1682 = vmatpush2.bf16.msra.mxu0 %v5593_v38  ;;  %1723 = vmatpush2.bf16.msra.mxu1 %v5594_v4  ;;  %v5599_v4 = vld [vmem:[#allocation20_spill] sm:$0xff] }
 0x4dc   :  { %1756 = vmatprep.subr.bf16.mxu0 %v5595_v11  ;;  %1797 = vmatprep.subr.bf16.mxu1 %v5596_v9  ;;  %v5600_v9 = vld [vmem:[#allocation21_spill] sm:$0xff] }
 0x53e   :  { %v1474_v12 = vpop.f32.mrf.mxu0  ;;  %v1515_v10 = vpop.f32.mrf.mxu1 }
 0x53f   :  { %v1475_v32 = vadd.f32 %v1474_v12, %v5597_v8  ;;  %v1516_v40 = vadd.f32 %v1515_v10, %v5600_v9  ;;  %v1542_v10 = vld [vmem:[#allocation2 + $0x88] sm:$0xff] }
 0x540   :  { %v1476_v34 = vpop.f32.mrf.mxu0  ;;  %v1517_v41 = vpop.f32.mrf.mxu1 }
 0x541   :  { %v1522_v39 = vmul.f32 0.5, %v1475_v32  ;;  %v1477_v16 = vadd.f32 %v1476_v34, %v5598_v3  ;;  %v1518_v11 = vadd.f32 %v1517_v41, %v5599_v4  ;;  %v1524_v44 = vmul.f32 0.5, %v1516_v40 }
 0x542   :  { %v1478_v5 = vpop.f32.mrf.mxu0  ;;  %v1519_v7 = vpop.f32.mrf.mxu1 }
 0x543   :  { %3045 = vtanh.f32 %v1522_v39  ;;  %v1523_v25 = vmul.f32 0.5, %v1477_v16  ;;  %v5601_v7 = vld [vmem:[#allocation76_spill] sm:$0xff] }
 0x544   :  { %v1479_v38 = vpop.f32.mrf.mxu0  ;;  %v1520_v15 = vpop.f32.mrf.mxu1 }
 0x545   :  { %3047 = vtanh.f32 %v1523_v25  ;;  %v1541_v15 = vld [vmem:[#allocation2 + $0x80] sm:$0xff] }
 0x546   :  { %3049 = vtanh.f32 %v1518_v11 }
 0x547   :  { %3051 = vtanh.f32 %v1524_v44 }
 0x550   :  { %v3046_v42 = vpop.eup %3045 }
 0x551   :  { %v1528_v12 = vadd.f32 1.0, %v3046_v42 }
 0x552   :  { %v3048_v8 = vpop.eup %3047 }
 0x553   :  { %v1531_v43 = vmul.f32 0.5, %v1528_v12  ;;  %v1529_v32 = vadd.f32 1.0, %v3048_v8  ;;  %v3050_v5 = vpop.eup %3049  ;;  %v1544_v8 = vld [vmem:[#allocation2 + $0x98] sm:$0xff] }
 0x554   :  { %v3052_v11 = vpop.eup %3051 }
 0x555   :  { %v1532_v34 = vmul.f32 0.5, %v1529_v32  ;;  %v1536_v16 = vmul.f32 %v3050_v5, %v1531_v43  ;;  %v1530_v3 = vadd.f32 1.0, %v3052_v11 }
 0x557   :  { %v1535_v39 = vmul.f32 %v1532_v34, %v5601_v7 }
 0x559   :  { %v4475_v38 = vadd.f32 %v1536_v16, %v1535_v39  ;;  %v1533_v39 = vmul.f32 0.5, %v1530_v3 }
 0x55b   :  { %5602 = vst [vmem:[#allocation25_spill] sm:$0xff] %v4475_v38  ;;  %3053 = vtanh.f32 %v4475_v38  ;;  %v1543_v38 = vld [vmem:[#allocation2 + $0x90] sm:$0xff] }
 0x55e   :  { %v1579_v41 = vpop.f32.mrf.mxu0  ;;  %v1620_v25 = vpop.f32.mrf.mxu1 }
 0x55f   :  { %v1627_v40 = vadd.f32 %v1579_v41, %v1541_v15  ;;  %v1629_v41 = vadd.f32 %v1620_v25, %v1543_v38 }
 0x560   :  { %v1581_v42 = vpop.f32.mrf.mxu0  ;;  %v1622_v9 = vpop.f32.mrf.mxu1 }
 0x561   :  { %v1631_v12 = vmul.f32 0.5, %v1627_v40  ;;  %v1628_v44 = vadd.f32 %v1581_v42, %v1542_v10  ;;  %v1630_v7 = vadd.f32 %v1622_v9, %v1544_v8  ;;  %v1633_v10 = vmul.f32 0.5, %v1629_v41  ;;  %v4499_v41 = vld [vmem:[#allocation5 + $0xc8] ss:$16 sps:$4 sm:$0xff]  }
 0x562   :  { %v1583_v32 = vpop.f32.mrf.mxu0  ;;  %v1624_v4 = vpop.f32.mrf.mxu1 }
 0x563   :  { %3055 = vtanh.f32 %v1631_v12  ;;  %v1632_v43 = vmul.f32 0.5, %v1628_v44 }
 0x564   :  { %v1584_v34 = vpop.f32.mrf.mxu0  ;;  %v1625_v5 = vpop.f32.mrf.mxu1 }
 0x565   :  { %3057 = vtanh.f32 %v1632_v43 }
 0x566   :  { %3059 = vtanh.f32 %v1630_v7  ;;  %v4482_v7 = vld [vmem:[#allocation5 + $0xe0] ss:$16 sps:$4 sm:$0xff]  }
 0x567   :  { %3061 = vtanh.f32 %v1633_v10  ;;  %v4502_v10 = vld [vmem:[#allocation5 + $0xa4] ss:$16 sps:$4 sm:$0xff]  }
 0x568   :  { %v3054_v16 = vpop.eup %3053 }
 0x569   :  { %v1539_v15 = vmul.f32 %v3054_v16, %v1533_v39  ;;  %v4485_v39 = vld [vmem:[#allocation5 + $0xe8] ss:$16 sps:$4 sm:$0xff]   ;;  %v4491_v16 = vld [vmem:[#allocation5 + $0xcc] ss:$16 sps:$4 sm:$0xff]  }
 0x56b   :  { %v1650_v6 = vpack.c.bf16 %v1539_v15, %v1539_v15  ;;  %v4496_v15 = vld [vmem:[#allocation5 + $0xc0] ss:$16 sps:$4 sm:$0xff]  }
 0x56d   :  { %1683 = vmatprep.mubr.bf16.mxu0 %v1650_v6  ;;  %1724 = vmatprep.mubr.bf16.mxu1 %v1650_v6 }
 0x570   :  { %v3056_v40 = vpop.eup %3055 }
 0x571   :  { %v1637_v42 = vadd.f32 1.0, %v3056_v40  ;;  %v4505_v40 = vld [vmem:[#allocation5 + $0xac] ss:$16 sps:$4 sm:$0xff]  }
 0x572   :  { %v3058_v4 = vpop.eup %3057 }
 0x573   :  { %v1640_v11 = vmul.f32 0.5, %v1637_v42  ;;  %v1638_v12 = vadd.f32 1.0, %v3058_v4  ;;  %v3060_v32 = vpop.eup %3059  ;;  %v4508_v42 = vld [vmem:[#allocation5 + $0xa0] ss:$16 sps:$4 sm:$0xff]   ;;  %v4511_v4 = vld [vmem:[#allocation5 + $0xa8] ss:$16 sps:$4 sm:$0xff]  }
 0x574   :  { %v3062_v38 = vpop.eup %3061 }
 0x575   :  { %v1641_v44 = vmul.f32 0.5, %v1638_v12  ;;  %v1645_v3 = vmul.f32 %v3060_v32, %v1640_v11  ;;  %v1639_v25 = vadd.f32 1.0, %v3062_v38  ;;  %v4514_v11 = vld [vmem:[#allocation5 + $0x84] ss:$16 sps:$4 sm:$0xff]   ;;  %v4517_v12 = vld [vmem:[#allocation5 + $0x8c] ss:$16 sps:$4 sm:$0xff]  }
 0x576   :  { %v4523_v32 = vld [vmem:[#allocation5 + $0x88] ss:$16 sps:$4 sm:$0xff]   ;;  %v4532_v38 = vld [vmem:[#allocation5 + $0x60] ss:$16 sps:$4 sm:$0xff]  }
 0x577   :  { %v1644_v9 = vmul.f32 %v1641_v44, %v4369_v19  ;;  %v1642_v43 = vmul.f32 0.5, %v1639_v25  ;;  %v4488_v19 = vld [vmem:[#allocation5 + $0xc4] ss:$16 sps:$4 sm:$0xff]   ;;  %v4520_v44 = vld [vmem:[#allocation5 + $0x80] ss:$16 sps:$4 sm:$0xff]  }
 0x578   :  { %v4535_v25 = vld [vmem:[#allocation5 + $0x68] ss:$16 sps:$4 sm:$0xff]  }
 0x579   :  { %v4479_v8 = vadd.f32 %v1645_v3, %v1644_v9  ;;  %v4526_v9 = vld [vmem:[#allocation5 + $0x64] ss:$16 sps:$4 sm:$0xff]   ;;  %v4529_v3 = vld [vmem:[#allocation5 + $0x6c] ss:$16 sps:$4 sm:$0xff]  }
 0x57b   :  { %3063 = vtanh.f32 %v4479_v8 }
 0x588   :  { %v3064_v6 = vpop.eup %3063 }
 0x589   :  { %v1648_v34 = vmul.f32 %v3064_v6, %v1642_v43  ;;  %v4538_v43 = vld [vmem:[#allocation5 + $0x44] ss:$16 sps:$4 sm:$0xff]   ;;  %v4541_v6 = vld [vmem:[#allocation5 + $0x4c] ss:$16 sps:$4 sm:$0xff]  }
 0x58b   :  { %v1649_v5 = vpack.c.bf16 %v1648_v34, %v1648_v34  ;;  %v4544_v34 = vld [vmem:[#allocation5 + $0x40] ss:$16 sps:$4 sm:$0xff]  }
 0x58d   :  { %1684 = vmatmul.mubr.bf16.vlgmr.msra.gmra.mxu0 %v1649_v5  ;;  %1725 = vmatmul.mubr.bf16.vlgmr.msra.gmra.mxu1 %v1649_v5 }
 0x58e   :  { %1757 = vmatpush1.bf16.msra.mxu0 %v4482_v7  ;;  %1798 = vmatpush1.bf16.msra.mxu1 %v4485_v39 }
 0x58f   :  { %1758 = vmatprep.subr.bf16.mxu0 %v4488_v19  ;;  %1799 = vmatprep.subr.bf16.mxu1 %v4491_v16 }
 0x590   :  { %1788 = vmatprep.mubr.bf16.mxu0 %v5386_v2  ;;  %1829 = vmatprep.mubr.bf16.mxu1 %v5386_v2 }
 0x592   :  { %1759 = vmatpush1.bf16.msra.mxu0 %v4496_v15  ;;  %1800 = vmatpush1.bf16.msra.mxu1 %v4499_v41 }
 0x593   :  { %1760 = vmatprep.subr.bf16.mxu0 %v4502_v10  ;;  %1801 = vmatprep.subr.bf16.mxu1 %v4505_v40 }
 0x596   :  { %1761 = vmatpush1.bf16.msra.mxu0 %v4508_v42  ;;  %1802 = vmatpush1.bf16.msra.mxu1 %v4511_v4 }
 0x597   :  { %1762 = vmatprep.subr.bf16.mxu0 %v4514_v11  ;;  %1803 = vmatprep.subr.bf16.mxu1 %v4517_v12 }
 0x59a   :  { %1763 = vmatpush1.bf16.msra.mxu0 %v4520_v44  ;;  %1804 = vmatpush1.bf16.msra.mxu1 %v4523_v32 }
 0x59b   :  { %1764 = vmatprep.subr.bf16.mxu0 %v4526_v9  ;;  %1805 = vmatprep.subr.bf16.mxu1 %v4529_v3 }
 0x59e   :  { %1765 = vmatpush1.bf16.msra.mxu0 %v4532_v38  ;;  %1806 = vmatpush1.bf16.msra.mxu1 %v4535_v25 }
 0x59f   :  { %1766 = vmatprep.subr.bf16.mxu0 %v4538_v43  ;;  %1807 = vmatprep.subr.bf16.mxu1 %v4541_v6 }
 0x5a2   :  { %1767 = vmatpush1.bf16.msra.mxu0 %v4544_v34  ;;  %1808 = vmatpush1.bf16.msra.mxu1 %v4139_v1  ;;  %v5603_v1 = vld [vmem:[#allocation44_spill] sm:$0xff] }
 0x5a3   :  { %1768 = vmatprep.subr.bf16.mxu0 %v4142_v13  ;;  %1809 = vmatprep.subr.bf16.mxu1 %v4145_v14  ;;  %v5604_v13 = vld [vmem:[#allocation45_spill] sm:$0xff]  ;;  %v5605_v14 = vld [vmem:[#allocation46_spill] sm:$0xff] }
 0x5a6   :  { %1769 = vmatpush1.bf16.msra.mxu0 %v4148_v17  ;;  %1810 = vmatpush1.bf16.msra.mxu1 %v4151_v18  ;;  %v5606_v17 = vld [vmem:[#allocation47_spill] sm:$0xff]  ;;  %v5607_v18 = vld [vmem:[#allocation48_spill] sm:$0xff] }
 0x5a7   :  { %1770 = vmatprep.subr.bf16.mxu0 %v4154_v20  ;;  %1811 = vmatprep.subr.bf16.mxu1 %v4157_v21  ;;  %v5608_v20 = vld [vmem:[#allocation49_spill] sm:$0xff]  ;;  %v5609_v21 = vld [vmem:[#allocation50_spill] sm:$0xff] }
 0x5aa   :  { %1771 = vmatpush1.bf16.msra.mxu0 %v4160_v58  ;;  %1812 = vmatpush1.bf16.msra.mxu1 %v4163_v24  ;;  %v5610_v58 = vld [vmem:[#allocation51_spill] sm:$0xff]  ;;  %v5611_v24 = vld [vmem:[#allocation52_spill] sm:$0xff] }
 0x5ab   :  { %1862 = vmatprep.subr.bf16.mxu0 %v4166_v26  ;;  %1903 = vmatprep.subr.bf16.mxu1 %v4169_v27  ;;  %v5612_v26 = vld [vmem:[#allocation53_spill] sm:$0xff]  ;;  %v5613_v27 = vld [vmem:[#allocation54_spill] sm:$0xff] }
 0x5ad   :  { %1789 = vmatmul.mubr.bf16.vlgmr.msra.gmra.mxu0 %v1649_v5  ;;  %1830 = vmatmul.mubr.bf16.vlgmr.msra.gmra.mxu1 %v1649_v5 }
 0x5ae   :  { %1863 = vmatpush1.bf16.msra.mxu0 %v4172_v28  ;;  %1904 = vmatpush1.bf16.msra.mxu1 %v4175_v29  ;;  %v5614_v28 = vld [vmem:[#allocation55_spill] sm:$0xff]  ;;  %v5615_v29 = vld [vmem:[#allocation56_spill] sm:$0xff] }
 0x5af   :  { %1864 = vmatprep.subr.bf16.mxu0 %v4178_v30  ;;  %1905 = vmatprep.subr.bf16.mxu1 %v4181_v31  ;;  %v5616_v30 = vld [vmem:[#allocation57_spill] sm:$0xff]  ;;  %v5617_v31 = vld [vmem:[#allocation58_spill] sm:$0xff] }
 0x5b2   :  { %1865 = vmatpush1.bf16.msra.mxu0 %v4184_v33  ;;  %1906 = vmatpush1.bf16.msra.mxu1 %v4187_v35  ;;  %v5618_v33 = vld [vmem:[#allocation59_spill] sm:$0xff]  ;;  %v5619_v35 = vld [vmem:[#allocation60_spill] sm:$0xff] }
 0x5b3   :  { %1866 = vmatprep.subr.bf16.mxu0 %v4190_v36  ;;  %1907 = vmatprep.subr.bf16.mxu1 %v4193_v37  ;;  %v5620_v36 = vld [vmem:[#allocation61_spill] sm:$0xff]  ;;  %v5621_v37 = vld [vmem:[#allocation62_spill] sm:$0xff] }
 0x5b6   :  { %1867 = vmatpush1.bf16.msra.mxu0 %v5541_v51  ;;  %1908 = vmatpush1.bf16.msra.mxu1 %v5542_v61  ;;  %v5622_v51 = vld [vmem:[#allocation63_spill] sm:$0xff]  ;;  %v5623_v61 = vld [vmem:[#allocation64_spill] sm:$0xff] }
 0x5b7   :  { %1868 = vmatprep.subr.bf16.mxu0 %v5543_v52  ;;  %1909 = vmatprep.subr.bf16.mxu1 %v5544_v46  ;;  %v5624_v52 = vld [vmem:[#allocation65_spill] sm:$0xff]  ;;  %v5625_v46 = vld [vmem:[#allocation66_spill] sm:$0xff] }
 0x5ba   :  { %1869 = vmatpush1.bf16.msra.mxu0 %v5545_v47  ;;  %1910 = vmatpush1.bf16.msra.mxu1 %v5546_v63  ;;  %v5626_v47 = vld [vmem:[#allocation67_spill] sm:$0xff]  ;;  %v5627_v63 = vld [vmem:[#allocation68_spill] sm:$0xff] }
 0x5bb   :  { %1870 = vmatprep.subr.bf16.mxu0 %v5547_v49  ;;  %1911 = vmatprep.subr.bf16.mxu1 %v5548_v60  ;;  %v5628_v49 = vld [vmem:[#allocation69_spill] sm:$0xff]  ;;  %v5629_v60 = vld [vmem:[#allocation22_spill] sm:$0xff] }
 0x5be   :  { %1871 = vmatpush1.bf16.msra.mxu0 %v5549_v53  ;;  %1912 = vmatpush1.bf16.msra.mxu1 %v5550_v54  ;;  %v5630_v53 = vld [vmem:[#allocation70_spill] sm:$0xff]  ;;  %v5631_v54 = vld [vmem:[#allocation71_spill] sm:$0xff] }
 0x5bf   :  { %1872 = vmatprep.subr.bf16.mxu0 %v5551_v55  ;;  %1913 = vmatprep.subr.bf16.mxu1 %v5552_v0  ;;  %v5632_v55 = vld [vmem:[#allocation72_spill] sm:$0xff]  ;;  %v5633_v0 = vld [vmem:[#allocation73_spill] sm:$0xff] }
 0x5c2   :  { %1873 = vmatpush1.bf16.msra.mxu0 %v5553_v59  ;;  %1914 = vmatpush1.bf16.msra.mxu1 %v5554_v48  ;;  %v5634_v59 = vld [vmem:[#allocation74_spill] sm:$0xff]  ;;  %v5635_v48 = vld [vmem:[#allocation75_spill] sm:$0xff] }
 0x5c3   :  { %1874 = vmatprep.subr.bf16.mxu0 %v5555_v56  ;;  %1915 = vmatprep.subr.bf16.mxu1 %v5556_v23  ;;  %v4620_v56 = vld [vmem:[#allocation5 + $0xe4] ss:$16 sps:$4 sm:$0xff]   ;;  %v4623_v23 = vld [vmem:[#allocation5 + $0xec] ss:$16 sps:$4 sm:$0xff]  }
 0x5c6   :  { %1875 = vmatpush1.bf16.msra.mxu0 %v5557_v62  ;;  %1916 = vmatpush1.bf16.msra.mxu1 %v5558_v57 }
 0x5c7   :  { %1876 = vmatprep.subr.bf16.mxu0 %v5559_v45  ;;  %1917 = vmatprep.subr.bf16.mxu1 %v5560_v22  ;;  %v5636_v45 = vld [vmem:[#allocation18_spill] sm:$0xff] }
 0x5ca   :  { %1877 = vmatpush1.bf16.msra.mxu0 %v5561_v50  ;;  %1918 = vmatpush1.bf16.msra.mxu1 %v5603_v1 }
 0x5cb   :  { %1878 = vmatprep.subr.bf16.mxu0 %v5604_v13  ;;  %1919 = vmatprep.subr.bf16.mxu1 %v5605_v14  ;;  %v5637_v13 = vld [vmem:[#allocation19_spill] sm:$0xff] }
 0x5ce   :  { %1879 = vmatpush2.bf16.msra.mxu0 %v5606_v17  ;;  %1920 = vmatpush2.bf16.msra.mxu1 %v5607_v18 }
 0x5cf   :  { %1880 = vmatprep.subr.bf16.mxu0 %v5608_v20  ;;  %1921 = vmatprep.subr.bf16.mxu1 %v5609_v21 }
 0x5d2   :  { %1881 = vmatpush2.bf16.msra.mxu0 %v5610_v58  ;;  %1922 = vmatpush2.bf16.msra.mxu1 %v5611_v24  ;;  %v5638_v24 = vld [vmem:[#allocation20_spill] sm:$0xff] }
 0x5d3   :  { %1882 = vmatprep.subr.bf16.mxu0 %v5612_v26  ;;  %1923 = vmatprep.subr.bf16.mxu1 %v5613_v27  ;;  %v5639_v27 = vld [vmem:[#allocation21_spill] sm:$0xff] }
 0x5d6   :  { %1883 = vmatpush2.bf16.msra.mxu0 %v5614_v28  ;;  %1924 = vmatpush2.bf16.msra.mxu1 %v5615_v29 }
 0x5d7   :  { %1884 = vmatprep.subr.bf16.mxu0 %v5616_v30  ;;  %1925 = vmatprep.subr.bf16.mxu1 %v5617_v31 }
 0x5da   :  { %1885 = vmatpush2.bf16.msra.mxu0 %v5618_v33  ;;  %1926 = vmatpush2.bf16.msra.mxu1 %v5619_v35 }
 0x5db   :  { %1886 = vmatprep.subr.bf16.mxu0 %v5620_v36  ;;  %1927 = vmatprep.subr.bf16.mxu1 %v5621_v37 }
 0x5de   :  { %1887 = vmatpush2.bf16.msra.mxu0 %v5622_v51  ;;  %1928 = vmatpush2.bf16.msra.mxu1 %v5623_v61  ;;  %v5640_v61 = vld [vmem:[#allocation25_spill] sm:$0xff] }
 0x5df   :  { %1888 = vmatprep.subr.bf16.mxu0 %v5624_v52  ;;  %1929 = vmatprep.subr.bf16.mxu1 %v5625_v46 }
 0x5e2   :  { %1889 = vmatpush2.bf16.msra.mxu0 %v5626_v47  ;;  %1930 = vmatpush2.bf16.msra.mxu1 %v5627_v63  ;;  %v1752_v63 = vld [vmem:[#allocation2 + $0xa0] sm:$0xff] }
 0x5e3   :  { %1890 = vmatprep.subr.bf16.mxu0 %v5628_v49  ;;  %1931 = vmatprep.subr.bf16.mxu1 %v5629_v60 }
 0x5e6   :  { %1891 = vmatpush2.bf16.msra.mxu0 %v5630_v53  ;;  %1932 = vmatpush2.bf16.msra.mxu1 %v5631_v54  ;;  %v1753_v53 = vld [vmem:[#allocation2 + $0xa8] sm:$0xff] }
 0x5e7   :  { %1892 = vmatprep.subr.bf16.mxu0 %v5632_v55  ;;  %1933 = vmatprep.subr.bf16.mxu1 %v5633_v0 }
 0x5ea   :  { %1893 = vmatpush2.bf16.msra.mxu0 %v5634_v59  ;;  %1934 = vmatpush2.bf16.msra.mxu1 %v5635_v48 }
 0x5eb   :  { %1967 = vmatprep.subr.bf16.mxu0 %v4620_v56  ;;  %2008 = vmatprep.subr.bf16.mxu1 %v4623_v23 }
 0x64d   :  { %v1685_v62 = vpop.f32.mrf.mxu0  ;;  %v1726_v57 = vpop.f32.mrf.mxu1 }
 0x64e   :  { %v1686_v22 = vadd.f32 %v1685_v62, %v5636_v45  ;;  %v1727_v28 = vadd.f32 %v1726_v57, %v5639_v27  ;;  %v1755_v57 = vld [vmem:[#allocation2 + $0xb8] sm:$0xff] }
 0x64f   :  { %v1687_v50 = vpop.f32.mrf.mxu0  ;;  %v1728_v5 = vpop.f32.mrf.mxu1 }
 0x650   :  { %v1733_v1 = vmul.f32 0.5, %v1686_v22  ;;  %v1688_v14 = vadd.f32 %v1687_v50, %v5637_v13  ;;  %v1729_v26 = vadd.f32 %v1728_v5, %v5638_v24  ;;  %v1735_v29 = vmul.f32 0.5, %v1727_v28 }
 0x651   :  { %v1689_v17 = vpop.f32.mrf.mxu0  ;;  %v1730_v18 = vpop.f32.mrf.mxu1 }
 0x652   :  { %3065 = vtanh.f32 %v1733_v1  ;;  %v1734_v20 = vmul.f32 0.5, %v1688_v14 }
 0x653   :  { %v1690_v21 = vpop.f32.mrf.mxu0  ;;  %v1731_v58 = vpop.f32.mrf.mxu1 }
 0x654   :  { %3067 = vtanh.f32 %v1734_v20  ;;  %v1754_v58 = vld [vmem:[#allocation2 + $0xb0] sm:$0xff] }
 0x655   :  { %3069 = vtanh.f32 %v1729_v26 }
 0x656   :  { %3071 = vtanh.f32 %v1735_v29 }
 0x65f   :  { %v3066_v30 = vpop.eup %3065 }
 0x660   :  { %v1739_v31 = vadd.f32 1.0, %v3066_v30 }
 0x661   :  { %v3068_v33 = vpop.eup %3067 }
 0x662   :  { %v1742_v35 = vmul.f32 0.5, %v1739_v31  ;;  %v1740_v36 = vadd.f32 1.0, %v3068_v33  ;;  %v3070_v51 = vpop.eup %3069 }
 0x663   :  { %v3072_v55 = vpop.eup %3071 }
 0x664   :  { %v1743_v37 = vmul.f32 0.5, %v1740_v36  ;;  %v1747_v46 = vmul.f32 %v3070_v51, %v1742_v35  ;;  %v1741_v5 = vadd.f32 1.0, %v3072_v55 }
 0x666   :  { %v1746_v52 = vmul.f32 %v1743_v37, %v5640_v61  ;;  %v1744_v20 = vmul.f32 0.5, %v1741_v5  ;;  %v4682_v5 = vld [vmem:[#allocation5] ss:$16 sps:$4 sm:$0xff]  }
 0x668   :  { %v4631_v47 = vadd.f32 %v1747_v46, %v1746_v52 }
 0x66a   :  { %3073 = vtanh.f32 %v4631_v47 }
 0x66d   :  { %v1790_v49 = vpop.f32.mrf.mxu0  ;;  %v1831_v60 = vpop.f32.mrf.mxu1 }
 0x66e   :  { %v1838_v54 = vadd.f32 %v1790_v49, %v1752_v63  ;;  %v1840_v28 = vadd.f32 %v1831_v60, %v1754_v58  ;;  %v4703_v58 = vld [vmem:[#allocation7 + $0xcc] ss:$16 sps:$4 sm:$0xff]  }
 0x66f   :  { %v1792_v0 = vpop.f32.mrf.mxu0  ;;  %v1833_v59 = vpop.f32.mrf.mxu1 }
 0x670   :  { %v1842_v48 = vmul.f32 0.5, %v1838_v54  ;;  %v1839_v62 = vadd.f32 %v1792_v0, %v1753_v53  ;;  %v1841_v18 = vadd.f32 %v1833_v59, %v1755_v57  ;;  %v1844_v30 = vmul.f32 0.5, %v1840_v28  ;;  %v4664_v59 = vld [vmem:[#allocation5 + $0x24] ss:$16 sps:$4 sm:$0xff]   ;;  %v4673_v57 = vld [vmem:[#allocation5 + $0x28] ss:$16 sps:$4 sm:$0xff]  }
 0x671   :  { %v1794_v22 = vpop.f32.mrf.mxu0  ;;  %v1835_v50 = vpop.f32.mrf.mxu1  ;;  %v4709_v28 = vld [vmem:[#allocation7 + $0xc8] ss:$16 sps:$4 sm:$0xff]  }
 0x672   :  { %3075 = vtanh.f32 %v1842_v48  ;;  %v1843_v1 = vmul.f32 0.5, %v1839_v62  ;;  %v4667_v48 = vld [vmem:[#allocation5 + $0x2c] ss:$16 sps:$4 sm:$0xff]   ;;  %v4670_v62 = vld [vmem:[#allocation5 + $0x20] ss:$16 sps:$4 sm:$0xff]  }
 0x673   :  { %v1795_v14 = vpop.f32.mrf.mxu0  ;;  %v1836_v17 = vpop.f32.mrf.mxu1  ;;  %v4676_v22 = vld [vmem:[#allocation5 + $0x4] ss:$16 sps:$4 sm:$0xff]   ;;  %v4679_v50 = vld [vmem:[#allocation5 + $0xc] ss:$16 sps:$4 sm:$0xff]  }
 0x674   :  { %3077 = vtanh.f32 %v1843_v1  ;;  %v4685_v1 = vld [vmem:[#allocation5 + $0x8] ss:$16 sps:$4 sm:$0xff]   ;;  %v4688_v14 = vld [vmem:[#allocation7 + $0xe4] ss:$16 sps:$4 sm:$0xff]   ;;  %v4691_v17 = vld [vmem:[#allocation7 + $0xec] ss:$16 sps:$4 sm:$0xff]  }
 0x675   :  { %3079 = vtanh.f32 %v1841_v18  ;;  %v4694_v18 = vld [vmem:[#allocation7 + $0xe0] ss:$16 sps:$4 sm:$0xff]  }
 0x676   :  { %3081 = vtanh.f32 %v1844_v30  ;;  %v4715_v30 = vld [vmem:[#allocation7 + $0xac] ss:$16 sps:$4 sm:$0xff]  }
 0x677   :  { %v3074_v21 = vpop.eup %3073 }
 0x678   :  { %v1750_v26 = vmul.f32 %v3074_v21, %v1744_v20  ;;  %v4697_v20 = vld [vmem:[#allocation7 + $0xe8] ss:$16 sps:$4 sm:$0xff]   ;;  %v4700_v21 = vld [vmem:[#allocation7 + $0xc4] ss:$16 sps:$4 sm:$0xff]  }
 0x67a   :  { %v1861_v29 = vpack.c.bf16 %v1750_v26, %v1750_v26  ;;  %v4706_v26 = vld [vmem:[#allocation7 + $0xc0] ss:$16 sps:$4 sm:$0xff]  }
 0x67c   :  { %1894 = vmatprep.mubr.bf16.mxu0 %v1861_v29  ;;  %1935 = vmatprep.mubr.bf16.mxu1 %v1861_v29  ;;  %v4712_v29 = vld [vmem:[#allocation7 + $0xa4] ss:$16 sps:$4 sm:$0xff]  }
 0x67f   :  { %v3076_v31 = vpop.eup %3075 }
 0x680   :  { %v1848_v33 = vadd.f32 1.0, %v3076_v31  ;;  %v4718_v31 = vld [vmem:[#allocation7 + $0xa0] ss:$16 sps:$4 sm:$0xff]  }
 0x681   :  { %v3078_v35 = vpop.eup %3077  ;;  %5641 = vst [vmem:[#allocation26_spill] sm:$0xff] %v4718_v31 }
 0x682   :  { %v1851_v36 = vmul.f32 0.5, %v1848_v33  ;;  %v1849_v37 = vadd.f32 1.0, %v3078_v35  ;;  %v3080_v61 = vpop.eup %3079  ;;  %v4721_v33 = vld [vmem:[#allocation7 + $0xa8] ss:$16 sps:$4 sm:$0xff]   ;;  %v4724_v35 = vld [vmem:[#allocation7 + $0x84] ss:$16 sps:$4 sm:$0xff]  }
 0x683   :  { %v3082_v49 = vpop.eup %3081  ;;  %5642 = vst [vmem:[#allocation27_spill] sm:$0xff] %v4721_v33  ;;  %5643 = vst [vmem:[#allocation28_spill] sm:$0xff] %v4724_v35 }
 0x684   :  { %v1852_v51 = vmul.f32 0.5, %v1849_v37  ;;  %v1856_v46 = vmul.f32 %v3080_v61, %v1851_v36  ;;  %v1850_v60 = vadd.f32 1.0, %v3082_v49  ;;  %v4727_v36 = vld [vmem:[#allocation7 + $0x8c] ss:$16 sps:$4 sm:$0xff]   ;;  %v4730_v37 = vld [vmem:[#allocation7 + $0x80] ss:$16 sps:$4 sm:$0xff]  }
 0x685   :  { %5644 = vst [vmem:[#allocation29_spill] sm:$0xff] %v4727_v36  ;;  %5645 = vst [vmem:[#allocation30_spill] sm:$0xff] %v4730_v37  ;;  %v4736_v61 = vld [vmem:[#allocation7 + $0x64] ss:$16 sps:$4 sm:$0xff]   ;;  %v4745_v49 = vld [vmem:[#allocation7 + $0x68] ss:$16 sps:$4 sm:$0xff]  }
 0x686   :  { %v1855_v52 = vmul.f32 %v1852_v51, %v4479_v8  ;;  %v1853_v53 = vmul.f32 0.5, %v1850_v60  ;;  %v4661_v8 = vld [vmem:[#allocation5 + $0x48] ss:$16 sps:$4 sm:$0xff]   ;;  %5647 = vst [vmem:[#allocation32_spill] sm:$0xff] %v4736_v61  ;;  %5650 = vst [vmem:[#allocation35_spill] sm:$0xff] %v4745_v49 }
 0x687   :  { %v4733_v51 = vld [vmem:[#allocation7 + $0x88] ss:$16 sps:$4 sm:$0xff]   ;;  %v4748_v60 = vld [vmem:[#allocation7 + $0x44] ss:$16 sps:$4 sm:$0xff]  }
 0x688   :  { %v4635_v63 = vadd.f32 %v1856_v46, %v1855_v52  ;;  %5646 = vst [vmem:[#allocation31_spill] sm:$0xff] %v4733_v51  ;;  %v4739_v52 = vld [vmem:[#allocation7 + $0x6c] ss:$16 sps:$4 sm:$0xff]   ;;  %v4742_v46 = vld [vmem:[#allocation7 + $0x60] ss:$16 sps:$4 sm:$0xff]   ;;  %5651 = vst [vmem:[#allocation36_spill] sm:$0xff] %v4748_v60 }
 0x689   :  { %5648 = vst [vmem:[#allocation33_spill] sm:$0xff] %v4739_v52  ;;  %5649 = vst [vmem:[#allocation34_spill] sm:$0xff] %v4742_v46 }
 0x68a   :  { %3083 = vtanh.f32 %v4635_v63 }
 0x697   :  { %v3084_v54 = vpop.eup %3083 }
 0x698   :  { %v1859_v55 = vmul.f32 %v3084_v54, %v1853_v53  ;;  %v4751_v53 = vld [vmem:[#allocation7 + $0x4c] ss:$16 sps:$4 sm:$0xff]   ;;  %v4754_v54 = vld [vmem:[#allocation7 + $0x40] ss:$16 sps:$4 sm:$0xff]  }
 0x699   :  { %5652 = vst [vmem:[#allocation16_spill] sm:$0xff] %v4751_v53  ;;  %5653 = vst [vmem:[#allocation17_spill] sm:$0xff] %v4754_v54 }
 0x69a   :  { %v1860_v0 = vpack.c.bf16 %v1859_v55, %v1859_v55  ;;  %v4757_v55 = vld [vmem:[#allocation7 + $0x48] ss:$16 sps:$4 sm:$0xff]  }
 0x69b   :  { %5654 = vst [vmem:[#allocation37_spill] sm:$0xff] %v4757_v55 }
 0x69c   :  { %1895 = vmatmul.mubr.bf16.vlgmr.msra.gmra.mxu0 %v1860_v0  ;;  %1936 = vmatmul.mubr.bf16.vlgmr.msra.gmra.mxu1 %v1860_v0 }
 0x69d   :  { %1968 = vmatpush1.bf16.msra.mxu0 %v4482_v7  ;;  %2009 = vmatpush1.bf16.msra.mxu1 %v4485_v39 }
 0x69e   :  { %1969 = vmatprep.subr.bf16.mxu0 %v4488_v19  ;;  %2010 = vmatprep.subr.bf16.mxu1 %v4491_v16 }
 0x69f   :  { %1999 = vmatprep.mubr.bf16.mxu0 %v5386_v2  ;;  %2040 = vmatprep.mubr.bf16.mxu1 %v5386_v2 }
 0x6a1   :  { %1970 = vmatpush1.bf16.msra.mxu0 %v4496_v15  ;;  %2011 = vmatpush1.bf16.msra.mxu1 %v4499_v41 }
 0x6a2   :  { %1971 = vmatprep.subr.bf16.mxu0 %v4502_v10  ;;  %2012 = vmatprep.subr.bf16.mxu1 %v4505_v40 }
 0x6a5   :  { %1972 = vmatpush1.bf16.msra.mxu0 %v4508_v42  ;;  %2013 = vmatpush1.bf16.msra.mxu1 %v4511_v4 }
 0x6a6   :  { %1973 = vmatprep.subr.bf16.mxu0 %v4514_v11  ;;  %2014 = vmatprep.subr.bf16.mxu1 %v4517_v12 }
 0x6a9   :  { %1974 = vmatpush1.bf16.msra.mxu0 %v4520_v44  ;;  %2015 = vmatpush1.bf16.msra.mxu1 %v4523_v32 }
 0x6aa   :  { %1975 = vmatprep.subr.bf16.mxu0 %v4526_v9  ;;  %2016 = vmatprep.subr.bf16.mxu1 %v4529_v3 }
 0x6ad   :  { %1976 = vmatpush1.bf16.msra.mxu0 %v4532_v38  ;;  %2017 = vmatpush1.bf16.msra.mxu1 %v4535_v25 }
 0x6ae   :  { %1977 = vmatprep.subr.bf16.mxu0 %v4538_v43  ;;  %2018 = vmatprep.subr.bf16.mxu1 %v4541_v6 }
 0x6b1   :  { %1978 = vmatpush1.bf16.msra.mxu0 %v4544_v34  ;;  %2019 = vmatpush1.bf16.msra.mxu1 %v4661_v8 }
 0x6b2   :  { %1979 = vmatprep.subr.bf16.mxu0 %v4664_v59  ;;  %2020 = vmatprep.subr.bf16.mxu1 %v4667_v48 }
 0x6b5   :  { %1980 = vmatpush1.bf16.msra.mxu0 %v4670_v62  ;;  %2021 = vmatpush1.bf16.msra.mxu1 %v4673_v57 }
 0x6b6   :  { %1981 = vmatprep.subr.bf16.mxu0 %v4676_v22  ;;  %2022 = vmatprep.subr.bf16.mxu1 %v4679_v50 }
 0x6b9   :  { %1982 = vmatpush1.bf16.msra.mxu0 %v4682_v5  ;;  %2023 = vmatpush1.bf16.msra.mxu1 %v4685_v1 }
 0x6ba   :  { %2073 = vmatprep.subr.bf16.mxu0 %v4688_v14  ;;  %2114 = vmatprep.subr.bf16.mxu1 %v4691_v17 }
 0x6bc   :  { %2000 = vmatmul.mubr.bf16.vlgmr.msra.gmra.mxu0 %v1860_v0  ;;  %2041 = vmatmul.mubr.bf16.vlgmr.msra.gmra.mxu1 %v1860_v0  ;;  %v4760_v0 = vld [vmem:[#allocation7 + $0x24] ss:$16 sps:$4 sm:$0xff]  }
 0x6bd   :  { %2074 = vmatpush1.bf16.msra.mxu0 %v4694_v18  ;;  %2115 = vmatpush1.bf16.msra.mxu1 %v4697_v20  ;;  %5655 = vst [vmem:[#allocation38_spill] sm:$0xff] %v4760_v0 }
 0x6be   :  { %2075 = vmatprep.subr.bf16.mxu0 %v4700_v21  ;;  %2116 = vmatprep.subr.bf16.mxu1 %v4703_v58 }
 0x6c1   :  { %2076 = vmatpush1.bf16.msra.mxu0 %v4706_v26  ;;  %2117 = vmatpush1.bf16.msra.mxu1 %v4709_v28 }
 0x6c2   :  { %2077 = vmatprep.subr.bf16.mxu0 %v4712_v29  ;;  %2118 = vmatprep.subr.bf16.mxu1 %v4715_v30 }
 0x6c5   :  { %2078 = vmatpush1.bf16.msra.mxu0 %v4718_v31  ;;  %2119 = vmatpush1.bf16.msra.mxu1 %v4721_v33 }
 0x6c6   :  { %2079 = vmatprep.subr.bf16.mxu0 %v4724_v35  ;;  %2120 = vmatprep.subr.bf16.mxu1 %v4727_v36 }
 0x6c9   :  { %2080 = vmatpush1.bf16.msra.mxu0 %v4730_v37  ;;  %2121 = vmatpush1.bf16.msra.mxu1 %v4733_v51 }
 0x6ca   :  { %2081 = vmatprep.subr.bf16.mxu0 %v4736_v61  ;;  %2122 = vmatprep.subr.bf16.mxu1 %v4739_v52 }
 0x6cd   :  { %2082 = vmatpush1.bf16.msra.mxu0 %v4742_v46  ;;  %2123 = vmatpush1.bf16.msra.mxu1 %v4745_v49  ;;  %v4763_v49 = vld [vmem:[#allocation7 + $0x2c] ss:$16 sps:$4 sm:$0xff]  }
 0x6ce   :  { %2083 = vmatprep.subr.bf16.mxu0 %v4748_v60  ;;  %2124 = vmatprep.subr.bf16.mxu1 %v4751_v53  ;;  %5656 = vst [vmem:[#allocation39_spill] sm:$0xff] %v4763_v49  ;;  %v4766_v60 = vld [vmem:[#allocation7 + $0x20] ss:$16 sps:$4 sm:$0xff]   ;;  %v4769_v53 = vld [vmem:[#allocation7 + $0x28] ss:$16 sps:$4 sm:$0xff]  }
 0x6cf   :  { %5657 = vst [vmem:[#allocation40_spill] sm:$0xff] %v4766_v60  ;;  %5658 = vst [vmem:[#allocation41_spill] sm:$0xff] %v4769_v53 }
 0x6d1   :  { %2084 = vmatpush1.bf16.msra.mxu0 %v4754_v54  ;;  %2125 = vmatpush1.bf16.msra.mxu1 %v4757_v55  ;;  %v4772_v54 = vld [vmem:[#allocation7 + $0x4] ss:$16 sps:$4 sm:$0xff]   ;;  %v4775_v55 = vld [vmem:[#allocation7 + $0xc] ss:$16 sps:$4 sm:$0xff]  }
 0x6d2   :  { %2085 = vmatprep.subr.bf16.mxu0 %v4760_v0  ;;  %2126 = vmatprep.subr.bf16.mxu1 %v4763_v49  ;;  %5659 = vst [vmem:[#allocation42_spill] sm:$0xff] %v4772_v54  ;;  %5660 = vst [vmem:[#allocation43_spill] sm:$0xff] %v4775_v55  ;;  %v4778_v0 = vld [vmem:[#allocation7] ss:$16 sps:$4 sm:$0xff]   ;;  %v4781_v49 = vld [vmem:[#allocation7 + $0x8] ss:$16 sps:$4 sm:$0xff]  }
 0x6d3   :  { %5661 = vst [vmem:[#allocation23_spill] sm:$0xff] %v4778_v0  ;;  %5662 = vst [vmem:[#allocation24_spill] sm:$0xff] %v4781_v49 }
 0x6d5   :  { %2086 = vmatpush1.bf16.msra.mxu0 %v4766_v60  ;;  %2127 = vmatpush1.bf16.msra.mxu1 %v4769_v53  ;;  %v4784_v60 = vld [vmem:[#allocation7 + $0x1e4] ss:$16 sps:$4 sm:$0xff]   ;;  %v4787_v53 = vld [vmem:[#allocation7 + $0x1ec] ss:$16 sps:$4 sm:$0xff]  }
 0x6d6   :  { %2087 = vmatprep.subr.bf16.mxu0 %v4772_v54  ;;  %2128 = vmatprep.subr.bf16.mxu1 %v4775_v55  ;;  %5663 = vst [vmem:[#allocation76_spill] sm:$0xff] %v4784_v60  ;;  %5664 = vst [vmem:[#allocation44_spill] sm:$0xff] %v4787_v53  ;;  %v4790_v54 = vld [vmem:[#allocation7 + $0x1e0] ss:$16 sps:$4 sm:$0xff]   ;;  %v4793_v55 = vld [vmem:[#allocation7 + $0x1e8] ss:$16 sps:$4 sm:$0xff]  }
 0x6d7   :  { %5665 = vst [vmem:[#allocation45_spill] sm:$0xff] %v4790_v54  ;;  %5666 = vst [vmem:[#allocation46_spill] sm:$0xff] %v4793_v55 }
 0x6d9   :  { %2088 = vmatpush1.bf16.msra.mxu0 %v4778_v0  ;;  %2129 = vmatpush1.bf16.msra.mxu1 %v4781_v49  ;;  %v4796_v0 = vld [vmem:[#allocation7 + $0x1c4] ss:$16 sps:$4 sm:$0xff]   ;;  %v4799_v49 = vld [vmem:[#allocation7 + $0x1cc] ss:$16 sps:$4 sm:$0xff]  }
 0x6da   :  { %2089 = vmatprep.subr.bf16.mxu0 %v4784_v60  ;;  %2130 = vmatprep.subr.bf16.mxu1 %v4787_v53  ;;  %5667 = vst [vmem:[#allocation47_spill] sm:$0xff] %v4796_v0  ;;  %5668 = vst [vmem:[#allocation48_spill] sm:$0xff] %v4799_v49  ;;  %v4802_v60 = vld [vmem:[#allocation7 + $0x1c0] ss:$16 sps:$4 sm:$0xff]   ;;  %v4805_v53 = vld [vmem:[#allocation7 + $0x1c8] ss:$16 sps:$4 sm:$0xff]  }
 0x6db   :  { %5669 = vst [vmem:[#allocation49_spill] sm:$0xff] %v4802_v60  ;;  %5670 = vst [vmem:[#allocation50_spill] sm:$0xff] %v4805_v53 }
 0x6dd   :  { %2090 = vmatpush2.bf16.msra.mxu0 %v4790_v54  ;;  %2131 = vmatpush2.bf16.msra.mxu1 %v4793_v55  ;;  %v4808_v54 = vld [vmem:[#allocation7 + $0x1a4] ss:$16 sps:$4 sm:$0xff]   ;;  %v4811_v55 = vld [vmem:[#allocation7 + $0x1ac] ss:$16 sps:$4 sm:$0xff]  }
 0x6de   :  { %2091 = vmatprep.subr.bf16.mxu0 %v4796_v0  ;;  %2132 = vmatprep.subr.bf16.mxu1 %v4799_v49  ;;  %5671 = vst [vmem:[#allocation51_spill] sm:$0xff] %v4808_v54  ;;  %5672 = vst [vmem:[#allocation52_spill] sm:$0xff] %v4811_v55  ;;  %v4814_v0 = vld [vmem:[#allocation7 + $0x1a0] ss:$16 sps:$4 sm:$0xff]   ;;  %v4817_v49 = vld [vmem:[#allocation7 + $0x1a8] ss:$16 sps:$4 sm:$0xff]  }
 0x6df   :  { %5673 = vst [vmem:[#allocation53_spill] sm:$0xff] %v4814_v0  ;;  %5674 = vst [vmem:[#allocation54_spill] sm:$0xff] %v4817_v49 }
 0x6e1   :  { %2092 = vmatpush2.bf16.msra.mxu0 %v4802_v60  ;;  %2133 = vmatpush2.bf16.msra.mxu1 %v4805_v53  ;;  %v4820_v60 = vld [vmem:[#allocation7 + $0x184] ss:$16 sps:$4 sm:$0xff]   ;;  %v4823_v53 = vld [vmem:[#allocation7 + $0x18c] ss:$16 sps:$4 sm:$0xff]  }
 0x6e2   :  { %2093 = vmatprep.subr.bf16.mxu0 %v4808_v54  ;;  %2134 = vmatprep.subr.bf16.mxu1 %v4811_v55  ;;  %5675 = vst [vmem:[#allocation55_spill] sm:$0xff] %v4820_v60  ;;  %5676 = vst [vmem:[#allocation56_spill] sm:$0xff] %v4823_v53  ;;  %v4826_v54 = vld [vmem:[#allocation7 + $0x180] ss:$16 sps:$4 sm:$0xff]   ;;  %v4829_v55 = vld [vmem:[#allocation7 + $0x188] ss:$16 sps:$4 sm:$0xff]  }
 0x6e3   :  { %5677 = vst [vmem:[#allocation57_spill] sm:$0xff] %v4826_v54  ;;  %5678 = vst [vmem:[#allocation58_spill] sm:$0xff] %v4829_v55 }
 0x6e5   :  { %2094 = vmatpush2.bf16.msra.mxu0 %v4814_v0  ;;  %2135 = vmatpush2.bf16.msra.mxu1 %v4817_v49  ;;  %v4832_v0 = vld [vmem:[#allocation7 + $0x164] ss:$16 sps:$4 sm:$0xff]   ;;  %v4835_v49 = vld [vmem:[#allocation7 + $0x16c] ss:$16 sps:$4 sm:$0xff]  }
 0x6e6   :  { %2095 = vmatprep.subr.bf16.mxu0 %v4820_v60  ;;  %2136 = vmatprep.subr.bf16.mxu1 %v4823_v53  ;;  %5679 = vst [vmem:[#allocation59_spill] sm:$0xff] %v4832_v0  ;;  %5680 = vst [vmem:[#allocation60_spill] sm:$0xff] %v4835_v49  ;;  %v4838_v60 = vld [vmem:[#allocation7 + $0x160] ss:$16 sps:$4 sm:$0xff]   ;;  %v4841_v53 = vld [vmem:[#allocation7 + $0x168] ss:$16 sps:$4 sm:$0xff]  }
 0x6e7   :  { %5681 = vst [vmem:[#allocation61_spill] sm:$0xff] %v4838_v60  ;;  %5682 = vst [vmem:[#allocation62_spill] sm:$0xff] %v4841_v53 }
 0x6e9   :  { %2096 = vmatpush2.bf16.msra.mxu0 %v4826_v54  ;;  %2137 = vmatpush2.bf16.msra.mxu1 %v4829_v55  ;;  %v4844_v54 = vld [vmem:[#allocation7 + $0x144] ss:$16 sps:$4 sm:$0xff]   ;;  %v4847_v55 = vld [vmem:[#allocation7 + $0x14c] ss:$16 sps:$4 sm:$0xff]  }
 0x6ea   :  { %2097 = vmatprep.subr.bf16.mxu0 %v4832_v0  ;;  %2138 = vmatprep.subr.bf16.mxu1 %v4835_v49  ;;  %5683 = vst [vmem:[#allocation63_spill] sm:$0xff] %v4844_v54  ;;  %5684 = vst [vmem:[#allocation64_spill] sm:$0xff] %v4847_v55  ;;  %v4850_v0 = vld [vmem:[#allocation7 + $0x140] ss:$16 sps:$4 sm:$0xff]   ;;  %v4853_v49 = vld [vmem:[#allocation7 + $0x148] ss:$16 sps:$4 sm:$0xff]  }
 0x6eb   :  { %5685 = vst [vmem:[#allocation65_spill] sm:$0xff] %v4850_v0  ;;  %5686 = vst [vmem:[#allocation66_spill] sm:$0xff] %v4853_v49 }
 0x6ed   :  { %2098 = vmatpush2.bf16.msra.mxu0 %v4838_v60  ;;  %2139 = vmatpush2.bf16.msra.mxu1 %v4841_v53  ;;  %v4856_v60 = vld [vmem:[#allocation7 + $0x124] ss:$16 sps:$4 sm:$0xff]   ;;  %v4859_v53 = vld [vmem:[#allocation7 + $0x12c] ss:$16 sps:$4 sm:$0xff]  }
 0x6ee   :  { %2099 = vmatprep.subr.bf16.mxu0 %v4844_v54  ;;  %2140 = vmatprep.subr.bf16.mxu1 %v4847_v55  ;;  %5687 = vst [vmem:[#allocation67_spill] sm:$0xff] %v4856_v60  ;;  %5688 = vst [vmem:[#allocation68_spill] sm:$0xff] %v4859_v53  ;;  %v4862_v54 = vld [vmem:[#allocation7 + $0x120] ss:$16 sps:$4 sm:$0xff]   ;;  %v4865_v55 = vld [vmem:[#allocation7 + $0x128] ss:$16 sps:$4 sm:$0xff]  }
 0x6ef   :  { %5689 = vst [vmem:[#allocation69_spill] sm:$0xff] %v4862_v54  ;;  %5690 = vst [vmem:[#allocation22_spill] sm:$0xff] %v4865_v55 }
 0x6f1   :  { %2100 = vmatpush2.bf16.msra.mxu0 %v4850_v0  ;;  %2141 = vmatpush2.bf16.msra.mxu1 %v4853_v49  ;;  %v4868_v0 = vld [vmem:[#allocation7 + $0x104] ss:$16 sps:$4 sm:$0xff]   ;;  %v4871_v49 = vld [vmem:[#allocation7 + $0x10c] ss:$16 sps:$4 sm:$0xff]  }
 0x6f2   :  { %2101 = vmatprep.subr.bf16.mxu0 %v4856_v60  ;;  %2142 = vmatprep.subr.bf16.mxu1 %v4859_v53  ;;  %5691 = vst [vmem:[#allocation70_spill] sm:$0xff] %v4868_v0  ;;  %5692 = vst [vmem:[#allocation71_spill] sm:$0xff] %v4871_v49  ;;  %v4874_v60 = vld [vmem:[#allocation7 + $0x100] ss:$16 sps:$4 sm:$0xff]   ;;  %v4877_v53 = vld [vmem:[#allocation7 + $0x108] ss:$16 sps:$4 sm:$0xff]  }
 0x6f3   :  { %5693 = vst [vmem:[#allocation72_spill] sm:$0xff] %v4874_v60  ;;  %5694 = vst [vmem:[#allocation73_spill] sm:$0xff] %v4877_v53 }
 0x6f5   :  { %2102 = vmatpush2.bf16.msra.mxu0 %v4862_v54  ;;  %2143 = vmatpush2.bf16.msra.mxu1 %v4865_v55 }
 0x6f6   :  { %2103 = vmatprep.subr.bf16.mxu0 %v4868_v0  ;;  %2144 = vmatprep.subr.bf16.mxu1 %v4871_v49 }
 0x6f9   :  { %2104 = vmatpush2.bf16.msra.mxu0 %v4874_v60  ;;  %2145 = vmatpush2.bf16.msra.mxu1 %v4877_v53 }
 0x6fa   :  { %2178 = vmatprep.subr.bf16.mxu0 %v4620_v56  ;;  %2219 = vmatprep.subr.bf16.mxu1 %v4623_v23 }
 0x75c   :  { %v1896_v55 = vpop.f32.mrf.mxu0  ;;  %v1937_v54 = vpop.f32.mrf.mxu1 }
 0x75d   :  { %v1897_v0 = vadd.f32 %v1896_v55, %v5636_v45  ;;  %v1938_v23 = vadd.f32 %v1937_v54, %v5639_v27 }
 0x75e   :  { %v1898_v46 = vpop.f32.mrf.mxu0  ;;  %v1939_v52 = vpop.f32.mrf.mxu1 }
 0x75f   :  { %v1944_v61 = vmul.f32 0.5, %v1897_v0  ;;  %v1899_v49 = vadd.f32 %v1898_v46, %v5637_v13  ;;  %v1940_v56 = vadd.f32 %v1939_v52, %v5638_v24  ;;  %v1946_v53 = vmul.f32 0.5, %v1938_v23 }
 0x760   :  { %v1900_v51 = vpop.f32.mrf.mxu0  ;;  %v1941_v37 = vpop.f32.mrf.mxu1 }
 0x761   :  { %3085 = vtanh.f32 %v1944_v61  ;;  %v1945_v60 = vmul.f32 0.5, %v1899_v49 }
 0x762   :  { %v1901_v36 = vpop.f32.mrf.mxu0  ;;  %v1942_v35 = vpop.f32.mrf.mxu1 }
 0x763   :  { %3087 = vtanh.f32 %v1945_v60  ;;  %v1963_v35 = vld [vmem:[#allocation2 + $0xc0] sm:$0xff]  ;;  %v1964_v60 = vld [vmem:[#allocation2 + $0xc8] sm:$0xff] }
 0x764   :  { %3089 = vtanh.f32 %v1940_v56 }
 0x765   :  { %3091 = vtanh.f32 %v1946_v53 }
 0x76e   :  { %v3086_v33 = vpop.eup %3085 }
 0x76f   :  { %v1950_v55 = vadd.f32 1.0, %v3086_v33 }
 0x770   :  { %v3088_v45 = vpop.eup %3087 }
 0x771   :  { %v1953_v31 = vmul.f32 0.5, %v1950_v55  ;;  %v1951_v0 = vadd.f32 1.0, %v3088_v45  ;;  %v3090_v51 = vpop.eup %3089  ;;  %v1966_v45 = vld [vmem:[#allocation2 + $0xd8] sm:$0xff] }
 0x772   :  { %v3092_v56 = vpop.eup %3091 }
 0x773   :  { %v1954_v46 = vmul.f32 0.5, %v1951_v0  ;;  %v1958_v61 = vmul.f32 %v3090_v51, %v1953_v31  ;;  %v1952_v24 = vadd.f32 1.0, %v3092_v56 }
 0x775   :  { %v1957_v37 = vmul.f32 %v1954_v46, %v4631_v47 }
 0x777   :  { %v4887_v36 = vadd.f32 %v1958_v61, %v1957_v37  ;;  %v1955_v37 = vmul.f32 0.5, %v1952_v24 }
 0x779   :  { %5695 = vst [vmem:[#allocation74_spill] sm:$0xff] %v4887_v36  ;;  %3093 = vtanh.f32 %v4887_v36  ;;  %v1965_v36 = vld [vmem:[#allocation2 + $0xd0] sm:$0xff] }
 0x77c   :  { %v2001_v52 = vpop.f32.mrf.mxu0  ;;  %v2042_v49 = vpop.f32.mrf.mxu1 }
 0x77d   :  { %v2049_v54 = vadd.f32 %v2001_v52, %v1963_v35  ;;  %v2051_v52 = vadd.f32 %v2042_v49, %v1965_v36 }
 0x77e   :  { %v2003_v33 = vpop.f32.mrf.mxu0  ;;  %v2044_v23 = vpop.f32.mrf.mxu1 }
 0x77f   :  { %v2053_v55 = vmul.f32 0.5, %v2049_v54  ;;  %v2050_v53 = vadd.f32 %v2003_v33, %v1964_v60  ;;  %v2052_v51 = vadd.f32 %v2044_v23, %v1966_v45  ;;  %v2055_v60 = vmul.f32 0.5, %v2051_v52  ;;  %v5742_v52 = vld [vmem:[#allocation67_spill] sm:$0xff] }
 0x780   :  { %v2005_v0 = vpop.f32.mrf.mxu0  ;;  %v2046_v27 = vpop.f32.mrf.mxu1 }
 0x781   :  { %3095 = vtanh.f32 %v2053_v55  ;;  %v2054_v47 = vmul.f32 0.5, %v2050_v53 }
 0x782   :  { %v2006_v31 = vpop.f32.mrf.mxu0  ;;  %v2047_v46 = vpop.f32.mrf.mxu1 }
 0x783   :  { %3097 = vtanh.f32 %v2054_v47 }
 0x784   :  { %3099 = vtanh.f32 %v2052_v51  ;;  %v5738_v51 = vld [vmem:[#allocation63_spill] sm:$0xff] }
 0x785   :  { %3101 = vtanh.f32 %v2055_v60  ;;  %v5743_v60 = vld [vmem:[#allocation68_spill] sm:$0xff] }
 0x786   :  { %v3094_v61 = vpop.eup %3093 }
 0x787   :  { %v1961_v35 = vmul.f32 %v3094_v61, %v1955_v37  ;;  %v5739_v37 = vld [vmem:[#allocation64_spill] sm:$0xff]  ;;  %v5740_v61 = vld [vmem:[#allocation65_spill] sm:$0xff] }
 0x789   :  { %v2072_v13 = vpack.c.bf16 %v1961_v35, %v1961_v35  ;;  %v5741_v35 = vld [vmem:[#allocation66_spill] sm:$0xff] }
 0x78b   :  { %2105 = vmatprep.mubr.bf16.mxu0 %v2072_v13  ;;  %2146 = vmatprep.mubr.bf16.mxu1 %v2072_v13 }
 0x78e   :  { %v3096_v54 = vpop.eup %3095 }
 0x78f   :  { %v2059_v33 = vadd.f32 1.0, %v3096_v54  ;;  %v5744_v54 = vld [vmem:[#allocation69_spill] sm:$0xff] }
 0x790   :  { %v3098_v27 = vpop.eup %3097 }
 0x791   :  { %v2062_v56 = vmul.f32 0.5, %v2059_v33  ;;  %v2060_v55 = vadd.f32 1.0, %v3098_v27  ;;  %v3100_v0 = vpop.eup %3099  ;;  %v5745_v33 = vld [vmem:[#allocation22_spill] sm:$0xff] }
 0x792   :  { %v3102_v36 = vpop.eup %3101  ;;  %v5746_v27 = vld [vmem:[#allocation70_spill] sm:$0xff] }
 0x793   :  { %v2063_v53 = vmul.f32 0.5, %v2060_v55  ;;  %v2067_v24 = vmul.f32 %v3100_v0, %v2062_v56  ;;  %v2061_v49 = vadd.f32 1.0, %v3102_v36  ;;  %v5747_v56 = vld [vmem:[#allocation71_spill] sm:$0xff]  ;;  %v5748_v55 = vld [vmem:[#allocation72_spill] sm:$0xff] }
 0x795   :  { %v2066_v23 = vmul.f32 %v2063_v53, %v4635_v63  ;;  %v2064_v47 = vmul.f32 0.5, %v2061_v49  ;;  %v5718_v63 = vld [vmem:[#allocation76_spill] sm:$0xff]  ;;  %v5749_v53 = vld [vmem:[#allocation73_spill] sm:$0xff] }
 0x797   :  { %v4891_v45 = vadd.f32 %v2067_v24, %v2066_v23  ;;  %v5750_v24 = vld [vmem:[#allocation18_spill] sm:$0xff] }
 0x799   :  { %3103 = vtanh.f32 %v4891_v45 }
 0x7a6   :  { %v3104_v13 = vpop.eup %3103 }
 0x7a7   :  { %v2070_v31 = vmul.f32 %v3104_v13, %v2064_v47 }
 0x7a9   :  { %v2071_v46 = vpack.c.bf16 %v2070_v31, %v2070_v31  ;;  %v5751_v31 = vld [vmem:[#allocation19_spill] sm:$0xff] }
 0x7ab   :  { %2106 = vmatmul.mubr.bf16.vlgmr.msra.gmra.mxu0 %v2071_v46  ;;  %2147 = vmatmul.mubr.bf16.vlgmr.msra.gmra.mxu1 %v2071_v46 }
 0x7ac   :  { %2179 = vmatpush1.bf16.msra.mxu0 %v4482_v7  ;;  %2220 = vmatpush1.bf16.msra.mxu1 %v4485_v39  ;;  %v5697_v7 = vld [vmem:[#allocation27_spill] sm:$0xff]  ;;  %v5698_v39 = vld [vmem:[#allocation28_spill] sm:$0xff] }
 0x7ad   :  { %2180 = vmatprep.subr.bf16.mxu0 %v4488_v19  ;;  %2221 = vmatprep.subr.bf16.mxu1 %v4491_v16  ;;  %v5699_v19 = vld [vmem:[#allocation29_spill] sm:$0xff]  ;;  %v5700_v16 = vld [vmem:[#allocation30_spill] sm:$0xff] }
 0x7ae   :  { %2210 = vmatprep.mubr.bf16.mxu0 %v5386_v2  ;;  %2251 = vmatprep.mubr.bf16.mxu1 %v5386_v2  ;;  %v5696_v2 = vld [vmem:[#allocation26_spill] sm:$0xff] }
 0x7b0   :  { %2181 = vmatpush1.bf16.msra.mxu0 %v4496_v15  ;;  %2222 = vmatpush1.bf16.msra.mxu1 %v4499_v41  ;;  %v5701_v15 = vld [vmem:[#allocation31_spill] sm:$0xff]  ;;  %v5702_v41 = vld [vmem:[#allocation32_spill] sm:$0xff] }
 0x7b1   :  { %2182 = vmatprep.subr.bf16.mxu0 %v4502_v10  ;;  %2223 = vmatprep.subr.bf16.mxu1 %v4505_v40  ;;  %v5703_v10 = vld [vmem:[#allocation33_spill] sm:$0xff]  ;;  %v5704_v40 = vld [vmem:[#allocation34_spill] sm:$0xff] }
 0x7b4   :  { %2183 = vmatpush1.bf16.msra.mxu0 %v4508_v42  ;;  %2224 = vmatpush1.bf16.msra.mxu1 %v4511_v4  ;;  %v5705_v42 = vld [vmem:[#allocation35_spill] sm:$0xff]  ;;  %v5706_v4 = vld [vmem:[#allocation36_spill] sm:$0xff] }
 0x7b5   :  { %2184 = vmatprep.subr.bf16.mxu0 %v4514_v11  ;;  %2225 = vmatprep.subr.bf16.mxu1 %v4517_v12  ;;  %v5707_v11 = vld [vmem:[#allocation16_spill] sm:$0xff]  ;;  %v5708_v12 = vld [vmem:[#allocation17_spill] sm:$0xff] }
 0x7b8   :  { %2185 = vmatpush1.bf16.msra.mxu0 %v4520_v44  ;;  %2226 = vmatpush1.bf16.msra.mxu1 %v4523_v32  ;;  %v5709_v44 = vld [vmem:[#allocation37_spill] sm:$0xff]  ;;  %v5710_v32 = vld [vmem:[#allocation38_spill] sm:$0xff] }
 0x7b9   :  { %2186 = vmatprep.subr.bf16.mxu0 %v4526_v9  ;;  %2227 = vmatprep.subr.bf16.mxu1 %v4529_v3  ;;  %v5711_v9 = vld [vmem:[#allocation39_spill] sm:$0xff]  ;;  %v5712_v3 = vld [vmem:[#allocation40_spill] sm:$0xff] }
 0x7bc   :  { %2187 = vmatpush1.bf16.msra.mxu0 %v4532_v38  ;;  %2228 = vmatpush1.bf16.msra.mxu1 %v4535_v25  ;;  %v5713_v38 = vld [vmem:[#allocation41_spill] sm:$0xff]  ;;  %v5714_v25 = vld [vmem:[#allocation42_spill] sm:$0xff] }
 0x7bd   :  { %2188 = vmatprep.subr.bf16.mxu0 %v4538_v43  ;;  %2229 = vmatprep.subr.bf16.mxu1 %v4541_v6  ;;  %v5715_v43 = vld [vmem:[#allocation43_spill] sm:$0xff] }
 0x7be   :  { %v5716_v6 = vld [vmem:[#allocation23_spill] sm:$0xff] }
 0x7c0   :  { %2189 = vmatpush1.bf16.msra.mxu0 %v4544_v34  ;;  %2230 = vmatpush1.bf16.msra.mxu1 %v4661_v8  ;;  %v5717_v34 = vld [vmem:[#allocation24_spill] sm:$0xff] }
 0x7c1   :  { %2190 = vmatprep.subr.bf16.mxu0 %v4664_v59  ;;  %2231 = vmatprep.subr.bf16.mxu1 %v4667_v48  ;;  %v5719_v8 = vld [vmem:[#allocation44_spill] sm:$0xff]  ;;  %v5720_v59 = vld [vmem:[#allocation45_spill] sm:$0xff]  ;;  %v5721_v48 = vld [vmem:[#allocation46_spill] sm:$0xff] }
 0x7c4   :  { %2191 = vmatpush1.bf16.msra.mxu0 %v4670_v62  ;;  %2232 = vmatpush1.bf16.msra.mxu1 %v4673_v57  ;;  %v5722_v62 = vld [vmem:[#allocation47_spill] sm:$0xff]  ;;  %v5723_v57 = vld [vmem:[#allocation48_spill] sm:$0xff] }
 0x7c5   :  { %2192 = vmatprep.subr.bf16.mxu0 %v4676_v22  ;;  %2233 = vmatprep.subr.bf16.mxu1 %v4679_v50  ;;  %v5724_v22 = vld [vmem:[#allocation49_spill] sm:$0xff]  ;;  %v5725_v50 = vld [vmem:[#allocation50_spill] sm:$0xff] }
 0x7c8   :  { %2193 = vmatpush1.bf16.msra.mxu0 %v4682_v5  ;;  %2234 = vmatpush1.bf16.msra.mxu1 %v4685_v1  ;;  %v5726_v5 = vld [vmem:[#allocation51_spill] sm:$0xff]  ;;  %v5727_v1 = vld [vmem:[#allocation52_spill] sm:$0xff] }
 0x7c9   :  { %2284 = vmatprep.subr.bf16.mxu0 %v4688_v14  ;;  %2325 = vmatprep.subr.bf16.mxu1 %v4691_v17  ;;  %v5728_v14 = vld [vmem:[#allocation53_spill] sm:$0xff]  ;;  %v5729_v17 = vld [vmem:[#allocation54_spill] sm:$0xff] }
 0x7cb   :  { %2211 = vmatmul.mubr.bf16.vlgmr.msra.gmra.mxu0 %v2071_v46  ;;  %2252 = vmatmul.mubr.bf16.vlgmr.msra.gmra.mxu1 %v2071_v46 }
 0x7cc   :  { %2285 = vmatpush1.bf16.msra.mxu0 %v4694_v18  ;;  %2326 = vmatpush1.bf16.msra.mxu1 %v4697_v20  ;;  %v5730_v18 = vld [vmem:[#allocation55_spill] sm:$0xff]  ;;  %v5731_v20 = vld [vmem:[#allocation56_spill] sm:$0xff] }
 0x7cd   :  { %2286 = vmatprep.subr.bf16.mxu0 %v4700_v21  ;;  %2327 = vmatprep.subr.bf16.mxu1 %v4703_v58  ;;  %v5732_v21 = vld [vmem:[#allocation57_spill] sm:$0xff]  ;;  %v5733_v58 = vld [vmem:[#allocation58_spill] sm:$0xff] }
 0x7d0   :  { %2287 = vmatpush1.bf16.msra.mxu0 %v4706_v26  ;;  %2328 = vmatpush1.bf16.msra.mxu1 %v4709_v28  ;;  %v5734_v26 = vld [vmem:[#allocation59_spill] sm:$0xff]  ;;  %v5735_v28 = vld [vmem:[#allocation60_spill] sm:$0xff] }
 0x7d1   :  { %2288 = vmatprep.subr.bf16.mxu0 %v4712_v29  ;;  %2329 = vmatprep.subr.bf16.mxu1 %v4715_v30  ;;  %v5736_v29 = vld [vmem:[#allocation61_spill] sm:$0xff]  ;;  %v5737_v30 = vld [vmem:[#allocation62_spill] sm:$0xff] }
 0x7d4   :  { %2289 = vmatpush1.bf16.msra.mxu0 %v5696_v2  ;;  %2330 = vmatpush1.bf16.msra.mxu1 %v5697_v7 }
 0x7d5   :  { %2290 = vmatprep.subr.bf16.mxu0 %v5698_v39  ;;  %2331 = vmatprep.subr.bf16.mxu1 %v5699_v19 }
 0x7d8   :  { %2291 = vmatpush1.bf16.msra.mxu0 %v5700_v16  ;;  %2332 = vmatpush1.bf16.msra.mxu1 %v5701_v15  ;;  %v5752_v15 = vld [vmem:[#allocation20_spill] sm:$0xff] }
 0x7d9   :  { %2292 = vmatprep.subr.bf16.mxu0 %v5702_v41  ;;  %2333 = vmatprep.subr.bf16.mxu1 %v5703_v10  ;;  %v5753_v10 = vld [vmem:[#allocation21_spill] sm:$0xff] }
 0x7dc   :  { %2293 = vmatpush1.bf16.msra.mxu0 %v5704_v40  ;;  %2334 = vmatpush1.bf16.msra.mxu1 %v5705_v42 }
 0x7dd   :  { %2294 = vmatprep.subr.bf16.mxu0 %v5706_v4  ;;  %2335 = vmatprep.subr.bf16.mxu1 %v5707_v11 }
 0x7e0   :  { %2295 = vmatpush1.bf16.msra.mxu0 %v5708_v12  ;;  %2336 = vmatpush1.bf16.msra.mxu1 %v5709_v44 }
 0x7e1   :  { %2296 = vmatprep.subr.bf16.mxu0 %v5710_v32  ;;  %2337 = vmatprep.subr.bf16.mxu1 %v5711_v9 }
 0x7e4   :  { %2297 = vmatpush1.bf16.msra.mxu0 %v5712_v3  ;;  %2338 = vmatpush1.bf16.msra.mxu1 %v5713_v38  ;;  %v5754_v38 = vld [vmem:[#allocation74_spill] sm:$0xff] }
 0x7e5   :  { %2298 = vmatprep.subr.bf16.mxu0 %v5714_v25  ;;  %2339 = vmatprep.subr.bf16.mxu1 %v5715_v43 }
 0x7e8   :  { %2299 = vmatpush1.bf16.msra.mxu0 %v5716_v6  ;;  %2340 = vmatpush1.bf16.msra.mxu1 %v5717_v34  ;;  %v2174_v34 = vld [vmem:[#allocation2 + $0xe0] sm:$0xff] }
 0x7e9   :  { %2300 = vmatprep.subr.bf16.mxu0 %v5718_v63  ;;  %2341 = vmatprep.subr.bf16.mxu1 %v5719_v8 }
 0x7ec   :  { %2301 = vmatpush2.bf16.msra.mxu0 %v5720_v59  ;;  %2342 = vmatpush2.bf16.msra.mxu1 %v5721_v48  ;;  %v2175_v59 = vld [vmem:[#allocation2 + $0xe8] sm:$0xff] }
 0x7ed   :  { %2302 = vmatprep.subr.bf16.mxu0 %v5722_v62  ;;  %2343 = vmatprep.subr.bf16.mxu1 %v5723_v57 }
 0x7f0   :  { %2303 = vmatpush2.bf16.msra.mxu0 %v5724_v22  ;;  %2344 = vmatpush2.bf16.msra.mxu1 %v5725_v50 }
 0x7f1   :  { %2304 = vmatprep.subr.bf16.mxu0 %v5726_v5  ;;  %2345 = vmatprep.subr.bf16.mxu1 %v5727_v1  ;;  %v2177_v1 = vld [vmem:[#allocation2 + $0xf8] sm:$0xff] }
 0x7f4   :  { %2305 = vmatpush2.bf16.msra.mxu0 %v5728_v14  ;;  %2346 = vmatpush2.bf16.msra.mxu1 %v5729_v17 }
 0x7f5   :  { %2306 = vmatprep.subr.bf16.mxu0 %v5730_v18  ;;  %2347 = vmatprep.subr.bf16.mxu1 %v5731_v20 }
 0x7f8   :  { %2307 = vmatpush2.bf16.msra.mxu0 %v5732_v21  ;;  %2348 = vmatpush2.bf16.msra.mxu1 %v5733_v58 }
 0x7f9   :  { %2308 = vmatprep.subr.bf16.mxu0 %v5734_v26  ;;  %2349 = vmatprep.subr.bf16.mxu1 %v5735_v28 }
 0x7fc   :  { %2309 = vmatpush2.bf16.msra.mxu0 %v5736_v29  ;;  %2350 = vmatpush2.bf16.msra.mxu1 %v5737_v30  ;;  %v2176_v30 = vld [vmem:[#allocation2 + $0xf0] sm:$0xff] }
 0x7fd   :  { %2310 = vmatprep.subr.bf16.mxu0 %v5738_v51  ;;  %2351 = vmatprep.subr.bf16.mxu1 %v5739_v37 }
 0x800   :  { %2311 = vmatpush2.bf16.msra.mxu0 %v5740_v61  ;;  %2352 = vmatpush2.bf16.msra.mxu1 %v5741_v35 }
 0x801   :  { %2312 = vmatprep.subr.bf16.mxu0 %v5742_v52  ;;  %2353 = vmatprep.subr.bf16.mxu1 %v5743_v60 }
 0x804   :  { %2313 = vmatpush2.bf16.msra.mxu0 %v5744_v54  ;;  %2354 = vmatpush2.bf16.msra.mxu1 %v5745_v33 }
 0x805   :  { %2314 = vmatprep.subr.bf16.mxu0 %v5746_v27  ;;  %2355 = vmatprep.subr.bf16.mxu1 %v5747_v56 }
 0x808   :  { %2315 = vmatpush2.bf16.msra.mxu0 %v5748_v55  ;;  %2356 = vmatpush2.bf16.msra.mxu1 %v5749_v53 }
 0x86b   :  { %v2107_v0 = vpop.f32.mrf.mxu0  ;;  %v2148_v23 = vpop.f32.mrf.mxu1 }
 0x86c   :  { %v2108_v36 = vadd.f32 %v2107_v0, %v5750_v24  ;;  %v2149_v40 = vadd.f32 %v2148_v23, %v5753_v10 }
 0x86d   :  { %v2109_v49 = vpop.f32.mrf.mxu0  ;;  %v2150_v47 = vpop.f32.mrf.mxu1 }
 0x86e   :  { %v2155_v13 = vmul.f32 0.5, %v2108_v36  ;;  %v2110_v46 = vadd.f32 %v2109_v49, %v5751_v31  ;;  %v2151_v41 = vadd.f32 %v2150_v47, %v5752_v15  ;;  %v2157_v42 = vmul.f32 0.5, %v2149_v40  ;;  %v2964_v40 = vld [vmem:[#allocation8 + $0x10] sm:$0xff]  }
 0x86f   :  { %v2111_v2 = vpop.f32.mrf.mxu0  ;;  %v2152_v7 = vpop.f32.mrf.mxu1 }
 0x870   :  { %3105 = vtanh.f32 %v2155_v13  ;;  %v2156_v39 = vmul.f32 0.5, %v2110_v46  ;;  %v2959_v7 = vld [vmem:[#allocation8 + $0x38] sm:$0xff]  }
 0x871   :  { %v2112_v19 = vpop.f32.mrf.mxu0  ;;  %v2153_v16 = vpop.f32.mrf.mxu1 }
 0x872   :  { %3107 = vtanh.f32 %v2156_v39  ;;  %v3468_v39 = vmov 0.0   ;;  %v2961_v19 = vld [vmem:[#allocation8 + $0x28] sm:$0xff]   ;;  %v2962_v16 = vld [vmem:[#allocation8 + $0x20] sm:$0xff]  }
 0x873   :  { %3109 = vtanh.f32 %v2151_v41  ;;  %2759 = vmatprep.subr.bf16.mxu0 %v3468_v39  ;;  %2779 = vmatprep.subr.bf16.mxu1 %v3468_v39  ;;  %v2963_v41 = vld [vmem:[#allocation8 + $0x18] sm:$0xff]  }
 0x874   :  { %3111 = vtanh.f32 %v2157_v42  ;;  %v2965_v42 = vld [vmem:[#allocation8 + $0x8] sm:$0xff]  }
 0x87d   :  { %v3106_v4 = vpop.eup %3105 }
 0x87e   :  { %v2161_v11 = vadd.f32 1.0, %v3106_v4  ;;  %v2966_v4 = vld [vmem:[#allocation8] sm:$0xff]  }
 0x87f   :  { %v3108_v12 = vpop.eup %3107 }
 0x880   :  { %v2164_v44 = vmul.f32 0.5, %v2161_v11  ;;  %v2162_v32 = vadd.f32 1.0, %v3108_v12  ;;  %v3110_v3 = vpop.eup %3109  ;;  %v2967_v11 = vld [vmem:[#allocation10 + $0x38] sm:$0xff]   ;;  %v2968_v12 = vld [vmem:[#allocation10 + $0x30] sm:$0xff]  }
 0x881   :  { %v3112_v62 = vpop.eup %3111 }
 0x882   :  { %v2165_v9 = vmul.f32 0.5, %v2162_v32  ;;  %v2169_v43 = vmul.f32 %v3110_v3, %v2164_v44  ;;  %v2163_v18 = vadd.f32 1.0, %v3112_v62  ;;  %v2969_v44 = vld [vmem:[#allocation10 + $0x28] sm:$0xff]   ;;  %v2970_v32 = vld [vmem:[#allocation10 + $0x20] sm:$0xff]   ;;  %v2972_v3 = vld [vmem:[#allocation10 + $0x10] sm:$0xff]  }
 0x884   :  { %v2168_v25 = vmul.f32 %v2165_v9, %v5754_v38  ;;  %v2166_v28 = vmul.f32 0.5, %v2163_v18  ;;  %v2971_v9 = vld [vmem:[#allocation10 + $0x18] sm:$0xff]  }
 0x886   :  { %v4995_v6 = vadd.f32 %v2169_v43, %v2168_v25 }
 0x888   :  { %3113 = vtanh.f32 %v4995_v6 }
 0x88b   :  { %v2212_v63 = vpop.f32.mrf.mxu0  ;;  %v2253_v8 = vpop.f32.mrf.mxu1 }
 0x88c   :  { %v2260_v48 = vadd.f32 %v2212_v63, %v2174_v34  ;;  %v2262_v37 = vadd.f32 %v2253_v8, %v2176_v30 }
 0x88d   :  { %v2214_v57 = vpop.f32.mrf.mxu0  ;;  %v2255_v22 = vpop.f32.mrf.mxu1 }
 0x88e   :  { %v2264_v50 = vmul.f32 0.5, %v2260_v48  ;;  %v2261_v5 = vadd.f32 %v2214_v57, %v2175_v59  ;;  %v2263_v26 = vadd.f32 %v2255_v22, %v2177_v1  ;;  %v2266_v35 = vmul.f32 0.5, %v2262_v37 }
 0x88f   :  { %v2216_v14 = vpop.f32.mrf.mxu0  ;;  %v2257_v17 = vpop.f32.mrf.mxu1 }
 0x890   :  { %3115 = vtanh.f32 %v2264_v50  ;;  %v2265_v20 = vmul.f32 0.5, %v2261_v5 }
 0x891   :  { %v2217_v21 = vpop.f32.mrf.mxu0  ;;  %v2258_v58 = vpop.f32.mrf.mxu1 }
 0x892   :  { %3117 = vtanh.f32 %v2265_v20 }
 0x893   :  { %3119 = vtanh.f32 %v2263_v26 }
 0x894   :  { %3121 = vtanh.f32 %v2266_v35  ;;  %v2973_v35 = vld [vmem:[#allocation10 + $0x8] sm:$0xff]  }
 0x895   :  { %v3114_v29 = vpop.eup %3113 }
 0x896   :  { %v2172_v51 = vmul.f32 %v3114_v29, %v2166_v28 }
 0x898   :  { %v2283_v61 = vpack.c.bf16 %v2172_v51, %v2172_v51 }
 0x89a   :  { %2316 = vmatprep.mubr.bf16.mxu0 %v2283_v61  ;;  %2357 = vmatprep.mubr.bf16.mxu1 %v2283_v61 }
 0x89d   :  { %v3116_v52 = vpop.eup %3115 }
 0x89e   :  { %v2270_v60 = vadd.f32 1.0, %v3116_v52  ;;  %v2974_v52 = vld [vmem:[#allocation10] sm:$0xff]  }
 0x89f   :  { %v3118_v54 = vpop.eup %3117 }
 0x8a0   :  { %v2273_v33 = vmul.f32 0.5, %v2270_v60  ;;  %v2271_v27 = vadd.f32 1.0, %v3118_v54  ;;  %v3120_v55 = vpop.eup %3119 }
 0x8a1   :  { %v3122_v36 = vpop.eup %3121 }
 0x8a2   :  { %v2274_v56 = vmul.f32 0.5, %v2271_v27  ;;  %v2278_v0 = vmul.f32 %v3120_v55, %v2273_v33  ;;  %v2272_v49 = vadd.f32 1.0, %v3122_v36 }
 0x8a4   :  { %v2277_v53 = vmul.f32 %v2274_v56, %v4891_v45  ;;  %v2275_v47 = vmul.f32 0.5, %v2272_v49  ;;  %v2960_v45 = vld [vmem:[#allocation8 + $0x30] sm:$0xff]  }
 0x8a6   :  { %v2279_v23 = vadd.f32 %v2278_v0, %v2277_v53  ;;  %v2732_v0 = vld [vmem:[%s5038_s7] ss:$0 sm:$0xff] }
 0x8a8   :  { %3123 = vtanh.f32 %v2279_v23 }
 0x8b5   :  { %v3124_v13 = vpop.eup %3123 }
 0x8b6   :  { %v2281_v46 = vmul.f32 %v3124_v13, %v2275_v47 }
 0x8b8   :  { %v2282_v2 = vpack.c.bf16 %v2281_v46, %v2281_v46 }
 0x8ba   :  { %2317 = vmatmul.mubr.bf16.vlgmr.msra.gmra.mxu0 %v2282_v2  ;;  %2358 = vmatmul.mubr.bf16.vlgmr.msra.gmra.mxu1 %v2282_v2 }
 0x8bb   :  { %2760 = vmatpush3.bf16.msra.mxu0 %v2959_v7  ;;  %2775 = vmatprep.mubr.msk.bf16.mxu0 %vm3469_vm0, %v3468_v39 }
 0x8bc   :  { %2761 = vmatprep.subr.bf16.mxu0 %v3468_v39  ;;  %2795 = vmatprep.mubr.msk.bf16.mxu1 %vm3469_vm0, %v3468_v39 }
 0x8bd   :  { %2780 = vmatpush3.bf16.msra.mxu1 %v2967_v11 }
 0x8be   :  { %2781 = vmatprep.subr.bf16.mxu1 %v3468_v39 }
 0x8bf   :  { %2762 = vmatpush3.bf16.msra.mxu0 %v2960_v45 }
 0x8c0   :  { %2763 = vmatprep.subr.bf16.mxu0 %v3468_v39 }
 0x8c1   :  { %2782 = vmatpush3.bf16.msra.mxu1 %v2968_v12 }
 0x8c2   :  { %2783 = vmatprep.subr.bf16.mxu1 %v3468_v39 }
 0x8c3   :  { %2764 = vmatpush3.bf16.msra.mxu0 %v2961_v19 }
 0x8c4   :  { %2765 = vmatprep.subr.bf16.mxu0 %v3468_v39 }
 0x8c5   :  { %2784 = vmatpush3.bf16.msra.mxu1 %v2969_v44 }
 0x8c6   :  { %2785 = vmatprep.subr.bf16.mxu1 %v3468_v39 }
 0x8c7   :  { %2766 = vmatpush3.bf16.msra.mxu0 %v2962_v16 }
 0x8c8   :  { %2767 = vmatprep.subr.bf16.mxu0 %v3468_v39 }
 0x8c9   :  { %2786 = vmatpush3.bf16.msra.mxu1 %v2970_v32 }
 0x8ca   :  { %2787 = vmatprep.subr.bf16.mxu1 %v3468_v39 }
 0x8cb   :  { %2768 = vmatpush3.bf16.msra.mxu0 %v2963_v41 }
 0x8cc   :  { %2769 = vmatprep.subr.bf16.mxu0 %v3468_v39 }
 0x8cd   :  { %2788 = vmatpush3.bf16.msra.mxu1 %v2971_v9 }
 0x8ce   :  { %2789 = vmatprep.subr.bf16.mxu1 %v3468_v39 }
 0x8cf   :  { %2770 = vmatpush3.bf16.msra.mxu0 %v2964_v40 }
 0x8d0   :  { %2771 = vmatprep.subr.bf16.mxu0 %v3468_v39 }
 0x8d1   :  { %2790 = vmatpush3.bf16.msra.mxu1 %v2972_v3 }
 0x8d2   :  { %2791 = vmatprep.subr.bf16.mxu1 %v3468_v39 }
 0x8d3   :  { %2772 = vmatpush3.bf16.msra.mxu0 %v2965_v42 }
 0x8d4   :  { %2773 = vmatprep.subr.bf16.mxu0 %v3468_v39 }
 0x8d5   :  { %2792 = vmatpush3.bf16.msra.mxu1 %v2973_v35 }
 0x8d6   :  { %2793 = vmatprep.subr.bf16.mxu1 %v3468_v39 }
 0x8d7   :  { %2774 = vmatpush3.bf16.msra.mxu0 %v2966_v4 }
 0x8d9   :  { %2794 = vmatpush3.bf16.msra.mxu1 %v2974_v52 }
 0x97a   :  { %v2318_v38 = vpop.f32.mrf.mxu0  ;;  %v2359_v25 = vpop.f32.mrf.mxu1 }
 0x97b   :  { %v2319_v43 = vadd.f32 %v2318_v38, %v5750_v24  ;;  %v2360_v1 = vadd.f32 %v2359_v25, %v5753_v10 }
 0x97c   :  { %v2320_v34 = vpop.f32.mrf.mxu0  ;;  %v2361_v63 = vpop.f32.mrf.mxu1 }
 0x97d   :  { %v2366_v8 = vmul.f32 0.5, %v2319_v43  ;;  %v2321_v59 = vadd.f32 %v2320_v34, %v5751_v31  ;;  %v2362_v5 = vadd.f32 %v2361_v63, %v5752_v15  ;;  %v2368_v14 = vmul.f32 0.5, %v2360_v1 }
 0x97e   :  { %v2322_v48 = vpop.f32.mrf.mxu0  ;;  %v2363_v62 = vpop.f32.mrf.mxu1 }
 0x97f   :  { %3125 = vtanh.f32 %v2366_v8  ;;  %v2367_v57 = vmul.f32 0.5, %v2321_v59 }
 0x980   :  { %v2323_v22 = vpop.f32.mrf.mxu0  ;;  %v2364_v50 = vpop.f32.mrf.mxu1 }
 0x981   :  { %3127 = vtanh.f32 %v2367_v57 }
 0x982   :  { %3129 = vtanh.f32 %v2362_v5 }
 0x983   :  { %3131 = vtanh.f32 %v2368_v14 }
 0x98c   :  { %v3126_v17 = vpop.eup %3125 }
 0x98d   :  { %v2372_v24 = vadd.f32 1.0, %v3126_v17 }
 0x98e   :  { %v3128_v18 = vpop.eup %3127 }
 0x98f   :  { %v2375_v20 = vmul.f32 0.5, %v2372_v24  ;;  %v2373_v21 = vadd.f32 1.0, %v3128_v18  ;;  %v3130_v58 = vpop.eup %3129 }
 0x990   :  { %v3132_v30 = vpop.eup %3131 }
 0x991   :  { %v2376_v31 = vmul.f32 0.5, %v2373_v21  ;;  %v2380_v28 = vmul.f32 %v3130_v58, %v2375_v20  ;;  %v2374_v51 = vadd.f32 1.0, %v3132_v30 }
 0x993   :  { %v2379_v26 = vmul.f32 %v2376_v31, %v4995_v6  ;;  %v2377_v15 = vmul.f32 0.5, %v2374_v51  ;;  %v2723_v6 = vld [vmem:[%s5036_s5] ss:$0 sm:$0xff]  ;;  %s3427_s5 = scalar_lea.vmem %s2617_s15, 128 }
 0x994   :  { %p3428_p11 = scmp.ne.s32.totalorder %s2617_s15, %s3427_s5  ;;  %p3433_p13 = scmp.lt.s32.totalorder %s3427_s5, %s3427_s5 }
 0x995   :  { %v2381_v29 = vadd.f32 %v2380_v28, %v2379_v26 }
 0x996   :  { %p3434_p0 = por %p3433_p13, %p3432_p12 }
 0x997   :  { %3133 = vtanh.f32 %v2381_v29 }
 0x998   :  { %p3435_p1 = pnand %p3434_p0, %p3428_p11 }
 0x9a4   :  { %v3134_v37 = vpop.eup %3133 }
 0x9a5   :  { %v2383_v61 = vmul.f32 %v3134_v37, %v2377_v15 }
 0x9a7   :  { %v2384_v10 = vpack.c.bf16 %v2383_v61, %v2383_v61 }
 0x9a9   :  { %2776 = vmatmul.mubr.bf16.vlgmr.msra.gmra.mxu0 %v2384_v10 }
 0xa69   :  { %v2490_v60 = vpop.f32.mrf.mxu0 }
 0xa6a   :  { %v2491_v54 = vadd.f32 %v2723_v6, %v2490_v60 }
 0xa6b   :  { %v2777_v33 = vpop.f32.mrf.mxu0 }
 0xa6c   :  { %v2496_v27 = vmax.f32 %v2491_v54, 0.0 }
 0xa6d   :  { %v2493_v56 = vpop.f32.mrf.mxu0 }
 0xa6e   :  { %v2497_v55 = vpack.c.bf16 %v2496_v27, %v2496_v27 }
 0xa6f   :  { %v2778_v53 = vpop.f32.mrf.mxu0 }
 0xa70   :  { %2796 = vmatmul.mubr.bf16.vlgmr.msra.gmra.mxu1 %v2497_v55 }
 0xb30   :  { %v2603_v23 = vpop.f32.mrf.mxu1 }
 0xb31   :  { %v2604_v36 = vadd.f32 %v2732_v0, %v2603_v23 }
 0xb32   :  { %v2797_v49 = vpop.f32.mrf.mxu1 }
 0xb33   :  { %2609 = vst [vmem:[#allocation11] sm:$0xff] %v2604_v36 }
 0xb34   :  { %v2606_v47 = vpop.f32.mrf.mxu1 }
 0xb35   :  { %3438 = shalt.err (!%p3435_p1)
}
 0xb36   :  { %2619 = dma.vmem_to_hbm [thread:$0]  %s2617_s15, 128, %s5039_s8, [#allocation4]   ;;  %v2798_v13 = vpop.f32.mrf.mxu1 }
 0xb37   :  { %3453 = dma.done.wait [#allocation4], 128  }
 0xb38   :  { %3454 = vsyncadd [#allocation4], 4294967168 }
 0xb39   :  { %2623 = vsyncpa [#allocation3], 1 }
 0xb3a   :  { %2624 = vsyncpa [#allocation6], 1 }
 0xb3b   :  { %2625 = vsyncpa [#allocation9], 1 }
 0xb3c   :  { %2626 = vsyncpa [#allocation4], 1 }

</bundles_post_ra>
